<compile_context>
chip_gen: v5e
topology: v5e:2x2
jax: 0.10.0
libtpu: 0.0.40
codegen_flags: <defaults>
</compile_context>

<pallas_src>
import functools
import math

import jax
import jax.numpy as jnp
from jax import lax
from jax.experimental import pallas as pl
from jax.experimental.pallas import tpu as pltpu

_EPS = 1e-5
_N_STREAM_PARAMS = 16
_N_CLASSES = 3


# --------------------------------------------------------------------------
# Pallas kernel
# --------------------------------------------------------------------------
def _layernorm(h, g, b):
    mu = jnp.mean(h, axis=-1, keepdims=True)
    var = jnp.mean(jnp.square(h - mu), axis=-1, keepdims=True)
    return (h - mu) * lax.rsqrt(var + _EPS) * g + b


def _encode_stream(x_col, p_refs, d):
    """linear_in -> TransformerEncoderLayer (nhead=1, post-norm, ReLU FFN,
    dropout = identity) -> linear_out, for one batch element.

    x_col: (S, 1).  Parameters are stored pre-transposed (W^T) so every matmul
    is a plain row-major (S, K) @ (K, N) MXU op.
    """
    (in_w, in_b, wqkv, bqkv, wo, bo, ln1_g, ln1_b,
     w1, b1, w2, b2, ln2_g, ln2_b, out_w, out_b) = [r[...] for r in p_refs]

    # Linear(1, d): outer-product broadcast (avoids a degenerate K=1 matmul).
    h0 = x_col * in_w + in_b                                             # (S, d)

    # --- single-head self-attention ---
    qkv = jnp.dot(h0, wqkv, preferred_element_type=jnp.float32) + bqkv   # (S, 3d)
    q, k, v = qkv[:, :d], qkv[:, d:2 * d], qkv[:, 2 * d:]
    scores = lax.dot_general(
        q, k, (((1,), (1,)), ((), ())),
        preferred_element_type=jnp.float32) * (1.0 / math.sqrt(d))       # (S, S)
    probs = jax.nn.softmax(scores, axis=-1)                              # lane-dense
    ctx = jnp.dot(probs, v, preferred_element_type=jnp.float32)          # (S, d)
    sa = jnp.dot(ctx, wo, preferred_element_type=jnp.float32) + bo
    h1 = _layernorm(h0 + sa, ln1_g, ln1_b)

    # --- feed-forward ---
    ff = jnp.maximum(jnp.dot(h1, w1, preferred_element_type=jnp.float32) + b1, 0.0)
    ff = jnp.dot(ff, w2, preferred_element_type=jnp.float32) + b2
    h2 = _layernorm(h1 + ff, ln2_g, ln2_b)

    # Linear(d, 1)
    return jnp.dot(h2, out_w, preferred_element_type=jnp.float32) + out_b  # (S, 1)


def _mafm_kernel(*refs, d):
    img_ref, ind_ref = refs[0], refs[1]
    p1 = refs[2:2 + _N_STREAM_PARAMS]
    p2 = refs[2 + _N_STREAM_PARAMS:2 + 2 * _N_STREAM_PARAMS]
    cls_wi_ref, cls_wn_ref, cls_b_ref = refs[2 + 2 * _N_STREAM_PARAMS:
                                             5 + 2 * _N_STREAM_PARAMS]
    o_ref = refs[-1]

    img_out = _encode_stream(img_ref[0], p1, d)            # (S1, 1)
    ind_out = _encode_stream(ind_ref[0], p2, d)            # (S2, 1)

    # Final Linear(S1 + S2, 3): the torch.cat is folded into a split weight so
    # no in-kernel concatenation / relayout is needed.
    logits = (jnp.dot(cls_wi_ref[...], img_out, preferred_element_type=jnp.float32)
              + jnp.dot(cls_wn_ref[...], ind_out, preferred_element_type=jnp.float32)
              + cls_b_ref[...])                            # (3, 1)
    m = jnp.max(logits, axis=0, keepdims=True)
    e = jnp.exp(logits - m)
    o_ref[0] = e / jnp.sum(e, axis=0, keepdims=True)       # softmax(dim=-1)


def mafm_forward(image_embeds, indicator_embeds, params):
    """image_embeds: (B, image_dim, 1); indicator_embeds: (B, 1, indicator_dim)."""
    img = image_embeds.astype(jnp.float32)                          # (B, S1, 1)
    ind = jnp.swapaxes(indicator_embeds, 1, 2).astype(jnp.float32)  # (B, S2, 1)
    B, S1, _ = img.shape
    S2 = ind.shape[1]
    d = params["s1"][2].shape[0]                                    # wqkv^T: (d, 3d)

    flat_params = (list(params["s1"]) + list(params["s2"])
                   + [params["cls_w_img"], params["cls_w_ind"], params["cls_b"]])

    in_specs = [
        pl.BlockSpec((1, S1, 1), lambda b: (b, 0, 0)),
        pl.BlockSpec((1, S2, 1), lambda b: (b, 0, 0)),
    ] + [pl.BlockSpec(w.shape, lambda b: (0, 0)) for w in flat_params]

    out = pl.pallas_call(
        functools.partial(_mafm_kernel, d=d),
        out_shape=jax.ShapeDtypeStruct((B, _N_CLASSES, 1), jnp.float32),
        grid=(B,),
        in_specs=in_specs,
        out_specs=pl.BlockSpec((1, _N_CLASSES, 1), lambda b: (b, 0, 0)),
        compiler_params=pltpu.CompilerParams(
            dimension_semantics=("parallel",)),   # batch across TCs on v7x
    )(img, ind, *flat_params)
    return out[:, :, 0]                                             # (B, 3)


# --------------------------------------------------------------------------
# Pure-JAX reference (mirrors the PyTorch forward) for a correctness check
# --------------------------------------------------------------------------
def _ln_ref(h, g, b):
    mu = jnp.mean(h, axis=-1, keepdims=True)
    var = jnp.mean(jnp.square(h - mu), axis=-1, keepdims=True)
    return (h - mu) / jnp.sqrt(var + _EPS) * g + b


def _ref_stream(x, p):
    (in_w, in_b, wqkv, bqkv, wo, bo, ln1_g, ln1_b,
     w1, b1, w2, b2, ln2_g, ln2_b, out_w, out_b) = p
    d = wo.shape[0]
    h0 = x * in_w + in_b                                   # (B, S, d)
    qkv = h0 @ wqkv + bqkv
    q, k, v = qkv[..., :d], qkv[..., d:2 * d], qkv[..., 2 * d:]
    scores = jnp.einsum("bqd,bkd->bqk", q, k) / math.sqrt(d)
    probs = jax.nn.softmax(scores, axis=-1)
    sa = jnp.einsum("bqk,bkd->bqd", probs, v) @ wo + bo
    h1 = _ln_ref(h0 + sa, ln1_g, ln1_b)
    ff = jnp.maximum(h1 @ w1 + b1, 0.0) @ w2 + b2
    h2 = _ln_ref(h1 + ff, ln2_g, ln2_b)
    return h2 @ out_w + out_b                              # (B, S, 1)


def mafm_reference(image_embeds, indicator_embeds, params):
    with jax.default_matmul_precision("highest"):
        img = image_embeds.astype(jnp.float32)
        ind = jnp.swapaxes(indicator_embeds, 1, 2).astype(jnp.float32)
        io = _ref_stream(img, params["s1"])[:, :, 0]       # (B, S1)
        no = _ref_stream(ind, params["s2"])[:, :, 0]       # (B, S2)
        w = jnp.concatenate([params["cls_w_img"], params["cls_w_ind"]], axis=1)
        logits = jnp.concatenate([io, no], axis=1) @ w.T + params["cls_b"][:, 0]
        return jax.nn.softmax(logits, axis=-1)


# --------------------------------------------------------------------------
# Deterministic parameter initialization (shapes follow the PyTorch module,
# stored pre-transposed for row-major matmuls inside the kernel)
# --------------------------------------------------------------------------
def init_params(key, image_dim=128, indicator_dim=11, expand=4, ff=16):
    keys = iter(jax.random.split(key, 64))

    def dense_t(fi, fo):  # returns W^T (fi, fo) and bias (1, fo)
        w = jax.random.normal(next(keys), (fi, fo), jnp.float32) / math.sqrt(fi)
        b = jax.random.normal(next(keys), (1, fo), jnp.float32) * 0.02
        return w, b

    def stream_params():
        in_w, in_b = dense_t(1, expand)            # linear_in
        wqkv, bqkv = dense_t(expand, 3 * expand)   # in_proj (Q|K|V)
        wo, bo = dense_t(expand, expand)           # out_proj
        ln1_g = 1.0 + 0.01 * jax.random.normal(next(keys), (1, expand), jnp.float32)
        ln1_b = 0.01 * jax.random.normal(next(keys), (1, expand), jnp.float32)
        w1, b1 = dense_t(expand, ff)               # linear1
        w2, b2 = dense_t(ff, expand)               # linear2
        ln2_g = 1.0 + 0.01 * jax.random.normal(next(keys), (1, expand), jnp.float32)
        ln2_b = 0.01 * jax.random.normal(next(keys), (1, expand), jnp.float32)
        out_w, out_b = dense_t(expand, 1)          # linear_out
        return (in_w, in_b, wqkv, bqkv, wo, bo, ln1_g, ln1_b,
                w1, b1, w2, b2, ln2_g, ln2_b, out_w, out_b)

    p = {"s1": stream_params(), "s2": stream_params()}
    total = image_dim + indicator_dim
    cls_w = jax.random.normal(next(keys), (_N_CLASSES, total), jnp.float32) / math.sqrt(total)
    p["cls_w_img"] = cls_w[:, :image_dim]
    p["cls_w_ind"] = cls_w[:, image_dim:]
    p["cls_b"] = 0.02 * jax.random.normal(next(keys), (_N_CLASSES, 1), jnp.float32)
    return p


# --------------------------------------------------------------------------
if __name__ == "__main__":
    B = 2
    IMAGE_DIM = 128
    INDICATOR_DIM = 11

    root = jax.random.PRNGKey(0)
    k_img, k_ind, k_par = jax.random.split(root, 3)
    image_embeds = jax.random.normal(k_img, (B, IMAGE_DIM, 1), jnp.float32)
    indicator_embeds = jax.random.normal(k_ind, (B, 1, INDICATOR_DIM), jnp.float32)
    params = init_params(k_par, image_dim=IMAGE_DIM, indicator_dim=INDICATOR_DIM)

    fwd = jax.jit(mafm_forward)
    out = jax.block_until_ready(fwd(image_embeds, indicator_embeds, params))
    ref = mafm_reference(image_embeds, indicator_embeds, params)

    assert out.shape == (B, _N_CLASSES), out.shape
    assert bool(jnp.all(jnp.isfinite(out)))
    assert bool(jnp.allclose(jnp.sum(out, axis=-1), 1.0, atol=1e-4))
    assert bool(jnp.allclose(out, ref, atol=5e-3, rtol=5e-3))
    print("KERNEL_OK")
</pallas_src>

<mosaic_0001>
module attributes {stable_mosaic.version = 11 : i64} {
  func.func @_mafm_kernel(%arg0: i32, %arg1: memref<1x128x1xf32, #tpu.memory_space<vmem>>, %arg2: memref<1x11x1xf32, #tpu.memory_space<vmem>>, %arg3: memref<1x4xf32, #tpu.memory_space<vmem>>, %arg4: memref<1x4xf32, #tpu.memory_space<vmem>>, %arg5: memref<4x12xf32, #tpu.memory_space<vmem>>, %arg6: memref<1x12xf32, #tpu.memory_space<vmem>>, %arg7: memref<4x4xf32, #tpu.memory_space<vmem>>, %arg8: memref<1x4xf32, #tpu.memory_space<vmem>>, %arg9: memref<1x4xf32, #tpu.memory_space<vmem>>, %arg10: memref<1x4xf32, #tpu.memory_space<vmem>>, %arg11: memref<4x16xf32, #tpu.memory_space<vmem>>, %arg12: memref<1x16xf32, #tpu.memory_space<vmem>>, %arg13: memref<16x4xf32, #tpu.memory_space<vmem>>, %arg14: memref<1x4xf32, #tpu.memory_space<vmem>>, %arg15: memref<1x4xf32, #tpu.memory_space<vmem>>, %arg16: memref<1x4xf32, #tpu.memory_space<vmem>>, %arg17: memref<4x1xf32, #tpu.memory_space<vmem>>, %arg18: memref<1x1xf32, #tpu.memory_space<vmem>>, %arg19: memref<1x4xf32, #tpu.memory_space<vmem>>, %arg20: memref<1x4xf32, #tpu.memory_space<vmem>>, %arg21: memref<4x12xf32, #tpu.memory_space<vmem>>, %arg22: memref<1x12xf32, #tpu.memory_space<vmem>>, %arg23: memref<4x4xf32, #tpu.memory_space<vmem>>, %arg24: memref<1x4xf32, #tpu.memory_space<vmem>>, %arg25: memref<1x4xf32, #tpu.memory_space<vmem>>, %arg26: memref<1x4xf32, #tpu.memory_space<vmem>>, %arg27: memref<4x16xf32, #tpu.memory_space<vmem>>, %arg28: memref<1x16xf32, #tpu.memory_space<vmem>>, %arg29: memref<16x4xf32, #tpu.memory_space<vmem>>, %arg30: memref<1x4xf32, #tpu.memory_space<vmem>>, %arg31: memref<1x4xf32, #tpu.memory_space<vmem>>, %arg32: memref<1x4xf32, #tpu.memory_space<vmem>>, %arg33: memref<4x1xf32, #tpu.memory_space<vmem>>, %arg34: memref<1x1xf32, #tpu.memory_space<vmem>>, %arg35: memref<3x128xf32, #tpu.memory_space<vmem>>, %arg36: memref<3x11xf32, #tpu.memory_space<vmem>>, %arg37: memref<3x1xf32, #tpu.memory_space<vmem>>, %arg38: memref<1x3x1xf32, #tpu.memory_space<vmem>>) attributes {dimension_semantics = [#tpu.dimension_semantics<parallel>], iteration_bounds = array<i64: 2>, scalar_prefetch = 0 : i64, scratch_operands = 0 : i64, tpu.core_type = #tpu.core_type<tc>, window_params = [{transform_indices = @transform_0, window_bounds = array<i64: 1, 128, 1>}, {transform_indices = @transform_1, window_bounds = array<i64: 1, 11, 1>}, {pipeline_mode = #tpu.pipeline_mode<synchronous>, transform_indices = @transform_2, window_bounds = array<i64: 1, 4>}, {pipeline_mode = #tpu.pipeline_mode<synchronous>, transform_indices = @transform_3, window_bounds = array<i64: 1, 4>}, {pipeline_mode = #tpu.pipeline_mode<synchronous>, transform_indices = @transform_4, window_bounds = array<i64: 4, 12>}, {pipeline_mode = #tpu.pipeline_mode<synchronous>, transform_indices = @transform_5, window_bounds = array<i64: 1, 12>}, {pipeline_mode = #tpu.pipeline_mode<synchronous>, transform_indices = @transform_6, window_bounds = array<i64: 4, 4>}, {pipeline_mode = #tpu.pipeline_mode<synchronous>, transform_indices = @transform_7, window_bounds = array<i64: 1, 4>}, {pipeline_mode = #tpu.pipeline_mode<synchronous>, transform_indices = @transform_8, window_bounds = array<i64: 1, 4>}, {pipeline_mode = #tpu.pipeline_mode<synchronous>, transform_indices = @transform_9, window_bounds = array<i64: 1, 4>}, {pipeline_mode = #tpu.pipeline_mode<synchronous>, transform_indices = @transform_10, window_bounds = array<i64: 4, 16>}, {pipeline_mode = #tpu.pipeline_mode<synchronous>, transform_indices = @transform_11, window_bounds = array<i64: 1, 16>}, {pipeline_mode = #tpu.pipeline_mode<synchronous>, transform_indices = @transform_12, window_bounds = array<i64: 16, 4>}, {pipeline_mode = #tpu.pipeline_mode<synchronous>, transform_indices = @transform_13, window_bounds = array<i64: 1, 4>}, {pipeline_mode = #tpu.pipeline_mode<synchronous>, transform_indices = @transform_14, window_bounds = array<i64: 1, 4>}, {pipeline_mode = #tpu.pipeline_mode<synchronous>, transform_indices = @transform_15, window_bounds = array<i64: 1, 4>}, {pipeline_mode = #tpu.pipeline_mode<synchronous>, transform_indices = @transform_16, window_bounds = array<i64: 4, 1>}, {pipeline_mode = #tpu.pipeline_mode<synchronous>, transform_indices = @transform_17, window_bounds = array<i64: 1, 1>}, {pipeline_mode = #tpu.pipeline_mode<synchronous>, transform_indices = @transform_18, window_bounds = array<i64: 1, 4>}, {pipeline_mode = #tpu.pipeline_mode<synchronous>, transform_indices = @transform_19, window_bounds = array<i64: 1, 4>}, {pipeline_mode = #tpu.pipeline_mode<synchronous>, transform_indices = @transform_20, window_bounds = array<i64: 4, 12>}, {pipeline_mode = #tpu.pipeline_mode<synchronous>, transform_indices = @transform_21, window_bounds = array<i64: 1, 12>}, {pipeline_mode = #tpu.pipeline_mode<synchronous>, transform_indices = @transform_22, window_bounds = array<i64: 4, 4>}, {pipeline_mode = #tpu.pipeline_mode<synchronous>, transform_indices = @transform_23, window_bounds = array<i64: 1, 4>}, {pipeline_mode = #tpu.pipeline_mode<synchronous>, transform_indices = @transform_24, window_bounds = array<i64: 1, 4>}, {pipeline_mode = #tpu.pipeline_mode<synchronous>, transform_indices = @transform_25, window_bounds = array<i64: 1, 4>}, {pipeline_mode = #tpu.pipeline_mode<synchronous>, transform_indices = @transform_26, window_bounds = array<i64: 4, 16>}, {pipeline_mode = #tpu.pipeline_mode<synchronous>, transform_indices = @transform_27, window_bounds = array<i64: 1, 16>}, {pipeline_mode = #tpu.pipeline_mode<synchronous>, transform_indices = @transform_28, window_bounds = array<i64: 16, 4>}, {pipeline_mode = #tpu.pipeline_mode<synchronous>, transform_indices = @transform_29, window_bounds = array<i64: 1, 4>}, {pipeline_mode = #tpu.pipeline_mode<synchronous>, transform_indices = @transform_30, window_bounds = array<i64: 1, 4>}, {pipeline_mode = #tpu.pipeline_mode<synchronous>, transform_indices = @transform_31, window_bounds = array<i64: 1, 4>}, {pipeline_mode = #tpu.pipeline_mode<synchronous>, transform_indices = @transform_32, window_bounds = array<i64: 4, 1>}, {pipeline_mode = #tpu.pipeline_mode<synchronous>, transform_indices = @transform_33, window_bounds = array<i64: 1, 1>}, {pipeline_mode = #tpu.pipeline_mode<synchronous>, transform_indices = @transform_34, window_bounds = array<i64: 3, 128>}, {pipeline_mode = #tpu.pipeline_mode<synchronous>, transform_indices = @transform_35, window_bounds = array<i64: 3, 11>}, {pipeline_mode = #tpu.pipeline_mode<synchronous>, transform_indices = @transform_36, window_bounds = array<i64: 3, 1>}, {transform_indices = @transform_37, window_bounds = array<i64: 1, 3, 1>}]} {
    %c0 = arith.constant 0 : index
    %c0_0 = arith.constant 0 : index
    %c0_1 = arith.constant 0 : index
    %0 = vector.load %arg1[%c0, %c0_0, %c0_1] : memref<1x128x1xf32, #tpu.memory_space<vmem>>, vector<1x128x1xf32>
    %1 = vector.shape_cast %0 : vector<1x128x1xf32> to vector<128x1xf32>
    %c0_2 = arith.constant 0 : index
    %c0_3 = arith.constant 0 : index
    %2 = vector.load %arg3[%c0_2, %c0_3] : memref<1x4xf32, #tpu.memory_space<vmem>>, vector<1x4xf32>
    %c0_4 = arith.constant 0 : index
    %c0_5 = arith.constant 0 : index
    %3 = vector.load %arg4[%c0_4, %c0_5] : memref<1x4xf32, #tpu.memory_space<vmem>>, vector<1x4xf32>
    %c0_6 = arith.constant 0 : index
    %c0_7 = arith.constant 0 : index
    %4 = vector.load %arg5[%c0_6, %c0_7] : memref<4x12xf32, #tpu.memory_space<vmem>>, vector<4x12xf32>
    %c0_8 = arith.constant 0 : index
    %c0_9 = arith.constant 0 : index
    %5 = vector.load %arg6[%c0_8, %c0_9] : memref<1x12xf32, #tpu.memory_space<vmem>>, vector<1x12xf32>
    %c0_10 = arith.constant 0 : index
    %c0_11 = arith.constant 0 : index
    %6 = vector.load %arg7[%c0_10, %c0_11] : memref<4x4xf32, #tpu.memory_space<vmem>>, vector<4x4xf32>
    %c0_12 = arith.constant 0 : index
    %c0_13 = arith.constant 0 : index
    %7 = vector.load %arg8[%c0_12, %c0_13] : memref<1x4xf32, #tpu.memory_space<vmem>>, vector<1x4xf32>
    %c0_14 = arith.constant 0 : index
    %c0_15 = arith.constant 0 : index
    %8 = vector.load %arg9[%c0_14, %c0_15] : memref<1x4xf32, #tpu.memory_space<vmem>>, vector<1x4xf32>
    %c0_16 = arith.constant 0 : index
    %c0_17 = arith.constant 0 : index
    %9 = vector.load %arg10[%c0_16, %c0_17] : memref<1x4xf32, #tpu.memory_space<vmem>>, vector<1x4xf32>
    %c0_18 = arith.constant 0 : index
    %c0_19 = arith.constant 0 : index
    %10 = vector.load %arg11[%c0_18, %c0_19] : memref<4x16xf32, #tpu.memory_space<vmem>>, vector<4x16xf32>
    %c0_20 = arith.constant 0 : index
    %c0_21 = arith.constant 0 : index
    %11 = vector.load %arg12[%c0_20, %c0_21] : memref<1x16xf32, #tpu.memory_space<vmem>>, vector<1x16xf32>
    %c0_22 = arith.constant 0 : index
    %c0_23 = arith.constant 0 : index
    %12 = vector.load %arg13[%c0_22, %c0_23] : memref<16x4xf32, #tpu.memory_space<vmem>>, vector<16x4xf32>
    %c0_24 = arith.constant 0 : index
    %c0_25 = arith.constant 0 : index
    %13 = vector.load %arg14[%c0_24, %c0_25] : memref<1x4xf32, #tpu.memory_space<vmem>>, vector<1x4xf32>
    %c0_26 = arith.constant 0 : index
    %c0_27 = arith.constant 0 : index
    %14 = vector.load %arg15[%c0_26, %c0_27] : memref<1x4xf32, #tpu.memory_space<vmem>>, vector<1x4xf32>
    %c0_28 = arith.constant 0 : index
    %c0_29 = arith.constant 0 : index
    %15 = vector.load %arg16[%c0_28, %c0_29] : memref<1x4xf32, #tpu.memory_space<vmem>>, vector<1x4xf32>
    %c0_30 = arith.constant 0 : index
    %c0_31 = arith.constant 0 : index
    %16 = vector.load %arg17[%c0_30, %c0_31] : memref<4x1xf32, #tpu.memory_space<vmem>>, vector<4x1xf32>
    %c0_32 = arith.constant 0 : index
    %c0_33 = arith.constant 0 : index
    %17 = vector.load %arg18[%c0_32, %c0_33] : memref<1x1xf32, #tpu.memory_space<vmem>>, vector<1x1xf32>
    %18 = vector.broadcast %1 : vector<128x1xf32> to vector<128x4xf32>
    %19 = vector.broadcast %2 : vector<1x4xf32> to vector<128x4xf32>
    %20 = arith.mulf %18, %19 : vector<128x4xf32>
    %21 = vector.broadcast %3 : vector<1x4xf32> to vector<128x4xf32>
    %22 = arith.addf %20, %21 : vector<128x4xf32>
    %cst = arith.constant dense<0.000000e+00> : vector<128x12xf32>
    %23 = tpu.matmul %22, %4, %cst {dimension_numbers = #tpu.dot_dimension_numbers<[1], [0], [0], [1], [0, 0, 1, 1], [], []>} : vector<128x4xf32>, vector<4x12xf32>, vector<128x12xf32> -> vector<128x12xf32>
    %24 = vector.broadcast %5 : vector<1x12xf32> to vector<128x12xf32>
    %25 = arith.addf %23, %24 : vector<128x12xf32>
    %26 = vector.extract_strided_slice %25 {offsets = [0, 0], sizes = [128, 4], strides = [1, 1]} : vector<128x12xf32> to vector<128x4xf32>
    %27 = vector.extract_strided_slice %25 {offsets = [0, 4], sizes = [128, 4], strides = [1, 1]} : vector<128x12xf32> to vector<128x4xf32>
    %28 = vector.extract_strided_slice %25 {offsets = [0, 8], sizes = [128, 4], strides = [1, 1]} : vector<128x12xf32> to vector<128x4xf32>
    %cst_34 = arith.constant dense<0.000000e+00> : vector<128x128xf32>
    %29 = tpu.matmul %26, %27, %cst_34 {dimension_numbers = #tpu.dot_dimension_numbers<[1], [1], [0], [0], [0, 0, 1, 0], [], []>} : vector<128x4xf32>, vector<128x4xf32>, vector<128x128xf32> -> vector<128x128xf32>
    %cst_35 = arith.constant 5.000000e-01 : f32
    %30 = vector.broadcast %cst_35 : f32 to vector<128x128xf32>
    %31 = arith.mulf %29, %30 : vector<128x128xf32>
    %cst_36 = arith.constant dense<0xFF800000> : vector<128xf32>
    %32 = vector.multi_reduction <maximumf>, %31, %cst_36 [1] : vector<128x128xf32> to vector<128xf32>
    %cst_37 = arith.constant 0xFF800000 : f32
    %33 = vector.broadcast %cst_37 : f32 to vector<128xf32>
    %34 = arith.maximumf %33, %32 : vector<128xf32>
    %35 = vector.shape_cast %34 : vector<128xf32> to vector<128x1xf32>
    %36 = vector.broadcast %35 : vector<128x1xf32> to vector<128x128xf32>
    %37 = arith.subf %31, %36 : vector<128x128xf32>
    %38 = math.exp %37 : vector<128x128xf32>
    %cst_38 = arith.constant dense<0.000000e+00> : vector<128xf32>
    %39 = vector.multi_reduction <add>, %38, %cst_38 [1] : vector<128x128xf32> to vector<128xf32>
    %40 = vector.shape_cast %39 : vector<128xf32> to vector<128x1xf32>
    %41 = vector.broadcast %40 : vector<128x1xf32> to vector<128x128xf32>
    %42 = arith.divf %38, %41 : vector<128x128xf32>
    %cst_39 = arith.constant dense<0.000000e+00> : vector<128x4xf32>
    %43 = tpu.matmul %42, %28, %cst_39 {dimension_numbers = #tpu.dot_dimension_numbers<[1], [0], [0], [1], [0, 0, 1, 1], [], []>} : vector<128x128xf32>, vector<128x4xf32>, vector<128x4xf32> -> vector<128x4xf32>
    %cst_40 = arith.constant dense<0.000000e+00> : vector<128x4xf32>
    %44 = tpu.matmul %43, %6, %cst_40 {dimension_numbers = #tpu.dot_dimension_numbers<[1], [0], [0], [1], [0, 0, 1, 1], [], []>} : vector<128x4xf32>, vector<4x4xf32>, vector<128x4xf32> -> vector<128x4xf32>
    %45 = vector.broadcast %7 : vector<1x4xf32> to vector<128x4xf32>
    %46 = arith.addf %44, %45 : vector<128x4xf32>
    %47 = arith.addf %22, %46 : vector<128x4xf32>
    %cst_41 = arith.constant dense<0.000000e+00> : vector<128xf32>
    %48 = vector.multi_reduction <add>, %47, %cst_41 [1] : vector<128x4xf32> to vector<128xf32>
    %49 = vector.shape_cast %48 : vector<128xf32> to vector<128x1xf32>
    %cst_42 = arith.constant 4.000000e+00 : f32
    %50 = vector.broadcast %cst_42 : f32 to vector<128x1xf32>
    %51 = arith.divf %49, %50 : vector<128x1xf32>
    %52 = vector.broadcast %51 : vector<128x1xf32> to vector<128x4xf32>
    %53 = arith.subf %47, %52 : vector<128x4xf32>
    %54 = arith.mulf %53, %53 : vector<128x4xf32>
    %cst_43 = arith.constant dense<0.000000e+00> : vector<128xf32>
    %55 = vector.multi_reduction <add>, %54, %cst_43 [1] : vector<128x4xf32> to vector<128xf32>
    %56 = vector.shape_cast %55 : vector<128xf32> to vector<128x1xf32>
    %cst_44 = arith.constant 4.000000e+00 : f32
    %57 = vector.broadcast %cst_44 : f32 to vector<128x1xf32>
    %58 = arith.divf %56, %57 : vector<128x1xf32>
    %59 = vector.broadcast %51 : vector<128x1xf32> to vector<128x4xf32>
    %60 = arith.subf %47, %59 : vector<128x4xf32>
    %cst_45 = arith.constant 9.99999974E-6 : f32
    %61 = vector.broadcast %cst_45 : f32 to vector<128x1xf32>
    %62 = arith.addf %58, %61 : vector<128x1xf32>
    %63 = math.rsqrt %62 : vector<128x1xf32>
    %64 = vector.broadcast %63 : vector<128x1xf32> to vector<128x4xf32>
    %65 = arith.mulf %60, %64 : vector<128x4xf32>
    %66 = vector.broadcast %8 : vector<1x4xf32> to vector<128x4xf32>
    %67 = arith.mulf %65, %66 : vector<128x4xf32>
    %68 = vector.broadcast %9 : vector<1x4xf32> to vector<128x4xf32>
    %69 = arith.addf %67, %68 : vector<128x4xf32>
    %cst_46 = arith.constant dense<0.000000e+00> : vector<128x16xf32>
    %70 = tpu.matmul %69, %10, %cst_46 {dimension_numbers = #tpu.dot_dimension_numbers<[1], [0], [0], [1], [0, 0, 1, 1], [], []>} : vector<128x4xf32>, vector<4x16xf32>, vector<128x16xf32> -> vector<128x16xf32>
    %71 = vector.broadcast %11 : vector<1x16xf32> to vector<128x16xf32>
    %72 = arith.addf %70, %71 : vector<128x16xf32>
    %cst_47 = arith.constant 0.000000e+00 : f32
    %73 = vector.broadcast %cst_47 : f32 to vector<128x16xf32>
    %74 = arith.maximumf %72, %73 : vector<128x16xf32>
    %cst_48 = arith.constant dense<0.000000e+00> : vector<128x4xf32>
    %75 = tpu.matmul %74, %12, %cst_48 {dimension_numbers = #tpu.dot_dimension_numbers<[1], [0], [0], [1], [0, 0, 1, 1], [], []>} : vector<128x16xf32>, vector<16x4xf32>, vector<128x4xf32> -> vector<128x4xf32>
    %76 = vector.broadcast %13 : vector<1x4xf32> to vector<128x4xf32>
    %77 = arith.addf %75, %76 : vector<128x4xf32>
    %78 = arith.addf %69, %77 : vector<128x4xf32>
    %cst_49 = arith.constant dense<0.000000e+00> : vector<128xf32>
    %79 = vector.multi_reduction <add>, %78, %cst_49 [1] : vector<128x4xf32> to vector<128xf32>
    %80 = vector.shape_cast %79 : vector<128xf32> to vector<128x1xf32>
    %cst_50 = arith.constant 4.000000e+00 : f32
    %81 = vector.broadcast %cst_50 : f32 to vector<128x1xf32>
    %82 = arith.divf %80, %81 : vector<128x1xf32>
    %83 = vector.broadcast %82 : vector<128x1xf32> to vector<128x4xf32>
    %84 = arith.subf %78, %83 : vector<128x4xf32>
    %85 = arith.mulf %84, %84 : vector<128x4xf32>
    %cst_51 = arith.constant dense<0.000000e+00> : vector<128xf32>
    %86 = vector.multi_reduction <add>, %85, %cst_51 [1] : vector<128x4xf32> to vector<128xf32>
    %87 = vector.shape_cast %86 : vector<128xf32> to vector<128x1xf32>
    %cst_52 = arith.constant 4.000000e+00 : f32
    %88 = vector.broadcast %cst_52 : f32 to vector<128x1xf32>
    %89 = arith.divf %87, %88 : vector<128x1xf32>
    %90 = vector.broadcast %82 : vector<128x1xf32> to vector<128x4xf32>
    %91 = arith.subf %78, %90 : vector<128x4xf32>
    %cst_53 = arith.constant 9.99999974E-6 : f32
    %92 = vector.broadcast %cst_53 : f32 to vector<128x1xf32>
    %93 = arith.addf %89, %92 : vector<128x1xf32>
    %94 = math.rsqrt %93 : vector<128x1xf32>
    %95 = vector.broadcast %94 : vector<128x1xf32> to vector<128x4xf32>
    %96 = arith.mulf %91, %95 : vector<128x4xf32>
    %97 = vector.broadcast %14 : vector<1x4xf32> to vector<128x4xf32>
    %98 = arith.mulf %96, %97 : vector<128x4xf32>
    %99 = vector.broadcast %15 : vector<1x4xf32> to vector<128x4xf32>
    %100 = arith.addf %98, %99 : vector<128x4xf32>
    %cst_54 = arith.constant dense<0.000000e+00> : vector<128x1xf32>
    %101 = tpu.matmul %100, %16, %cst_54 {dimension_numbers = #tpu.dot_dimension_numbers<[1], [0], [0], [1], [0, 0, 1, 1], [], []>} : vector<128x4xf32>, vector<4x1xf32>, vector<128x1xf32> -> vector<128x1xf32>
    %102 = vector.broadcast %17 : vector<1x1xf32> to vector<128x1xf32>
    %103 = arith.addf %101, %102 : vector<128x1xf32>
    %c0_55 = arith.constant 0 : index
    %c0_56 = arith.constant 0 : index
    %c0_57 = arith.constant 0 : index
    %104 = vector.load %arg2[%c0_55, %c0_56, %c0_57] : memref<1x11x1xf32, #tpu.memory_space<vmem>>, vector<1x11x1xf32>
    %105 = vector.shape_cast %104 : vector<1x11x1xf32> to vector<11x1xf32>
    %c0_58 = arith.constant 0 : index
    %c0_59 = arith.constant 0 : index
    %106 = vector.load %arg19[%c0_58, %c0_59] : memref<1x4xf32, #tpu.memory_space<vmem>>, vector<1x4xf32>
    %c0_60 = arith.constant 0 : index
    %c0_61 = arith.constant 0 : index
    %107 = vector.load %arg20[%c0_60, %c0_61] : memref<1x4xf32, #tpu.memory_space<vmem>>, vector<1x4xf32>
    %c0_62 = arith.constant 0 : index
    %c0_63 = arith.constant 0 : index
    %108 = vector.load %arg21[%c0_62, %c0_63] : memref<4x12xf32, #tpu.memory_space<vmem>>, vector<4x12xf32>
    %c0_64 = arith.constant 0 : index
    %c0_65 = arith.constant 0 : index
    %109 = vector.load %arg22[%c0_64, %c0_65] : memref<1x12xf32, #tpu.memory_space<vmem>>, vector<1x12xf32>
    %c0_66 = arith.constant 0 : index
    %c0_67 = arith.constant 0 : index
    %110 = vector.load %arg23[%c0_66, %c0_67] : memref<4x4xf32, #tpu.memory_space<vmem>>, vector<4x4xf32>
    %c0_68 = arith.constant 0 : index
    %c0_69 = arith.constant 0 : index
    %111 = vector.load %arg24[%c0_68, %c0_69] : memref<1x4xf32, #tpu.memory_space<vmem>>, vector<1x4xf32>
    %c0_70 = arith.constant 0 : index
    %c0_71 = arith.constant 0 : index
    %112 = vector.load %arg25[%c0_70, %c0_71] : memref<1x4xf32, #tpu.memory_space<vmem>>, vector<1x4xf32>
    %c0_72 = arith.constant 0 : index
    %c0_73 = arith.constant 0 : index
    %113 = vector.load %arg26[%c0_72, %c0_73] : memref<1x4xf32, #tpu.memory_space<vmem>>, vector<1x4xf32>
    %c0_74 = arith.constant 0 : index
    %c0_75 = arith.constant 0 : index
    %114 = vector.load %arg27[%c0_74, %c0_75] : memref<4x16xf32, #tpu.memory_space<vmem>>, vector<4x16xf32>
    %c0_76 = arith.constant 0 : index
    %c0_77 = arith.constant 0 : index
    %115 = vector.load %arg28[%c0_76, %c0_77] : memref<1x16xf32, #tpu.memory_space<vmem>>, vector<1x16xf32>
    %c0_78 = arith.constant 0 : index
    %c0_79 = arith.constant 0 : index
    %116 = vector.load %arg29[%c0_78, %c0_79] : memref<16x4xf32, #tpu.memory_space<vmem>>, vector<16x4xf32>
    %c0_80 = arith.constant 0 : index
    %c0_81 = arith.constant 0 : index
    %117 = vector.load %arg30[%c0_80, %c0_81] : memref<1x4xf32, #tpu.memory_space<vmem>>, vector<1x4xf32>
    %c0_82 = arith.constant 0 : index
    %c0_83 = arith.constant 0 : index
    %118 = vector.load %arg31[%c0_82, %c0_83] : memref<1x4xf32, #tpu.memory_space<vmem>>, vector<1x4xf32>
    %c0_84 = arith.constant 0 : index
    %c0_85 = arith.constant 0 : index
    %119 = vector.load %arg32[%c0_84, %c0_85] : memref<1x4xf32, #tpu.memory_space<vmem>>, vector<1x4xf32>
    %c0_86 = arith.constant 0 : index
    %c0_87 = arith.constant 0 : index
    %120 = vector.load %arg33[%c0_86, %c0_87] : memref<4x1xf32, #tpu.memory_space<vmem>>, vector<4x1xf32>
    %c0_88 = arith.constant 0 : index
    %c0_89 = arith.constant 0 : index
    %121 = vector.load %arg34[%c0_88, %c0_89] : memref<1x1xf32, #tpu.memory_space<vmem>>, vector<1x1xf32>
    %122 = vector.broadcast %105 : vector<11x1xf32> to vector<11x4xf32>
    %123 = vector.broadcast %106 : vector<1x4xf32> to vector<11x4xf32>
    %124 = arith.mulf %122, %123 : vector<11x4xf32>
    %125 = vector.broadcast %107 : vector<1x4xf32> to vector<11x4xf32>
    %126 = arith.addf %124, %125 : vector<11x4xf32>
    %cst_90 = arith.constant dense<0.000000e+00> : vector<11x12xf32>
    %127 = tpu.matmul %126, %108, %cst_90 {dimension_numbers = #tpu.dot_dimension_numbers<[1], [0], [0], [1], [0, 0, 1, 1], [], []>} : vector<11x4xf32>, vector<4x12xf32>, vector<11x12xf32> -> vector<11x12xf32>
    %128 = vector.broadcast %109 : vector<1x12xf32> to vector<11x12xf32>
    %129 = arith.addf %127, %128 : vector<11x12xf32>
    %130 = vector.extract_strided_slice %129 {offsets = [0, 0], sizes = [11, 4], strides = [1, 1]} : vector<11x12xf32> to vector<11x4xf32>
    %131 = vector.extract_strided_slice %129 {offsets = [0, 4], sizes = [11, 4], strides = [1, 1]} : vector<11x12xf32> to vector<11x4xf32>
    %132 = vector.extract_strided_slice %129 {offsets = [0, 8], sizes = [11, 4], strides = [1, 1]} : vector<11x12xf32> to vector<11x4xf32>
    %cst_91 = arith.constant dense<0.000000e+00> : vector<11x11xf32>
    %133 = tpu.matmul %130, %131, %cst_91 {dimension_numbers = #tpu.dot_dimension_numbers<[1], [1], [0], [0], [0, 0, 1, 0], [], []>} : vector<11x4xf32>, vector<11x4xf32>, vector<11x11xf32> -> vector<11x11xf32>
    %cst_92 = arith.constant 5.000000e-01 : f32
    %134 = vector.broadcast %cst_92 : f32 to vector<11x11xf32>
    %135 = arith.mulf %133, %134 : vector<11x11xf32>
    %cst_93 = arith.constant dense<0xFF800000> : vector<11xf32>
    %136 = vector.multi_reduction <maximumf>, %135, %cst_93 [1] : vector<11x11xf32> to vector<11xf32>
    %cst_94 = arith.constant 0xFF800000 : f32
    %137 = vector.broadcast %cst_94 : f32 to vector<11xf32>
    %138 = arith.maximumf %137, %136 : vector<11xf32>
    %139 = vector.shape_cast %138 : vector<11xf32> to vector<11x1xf32>
    %140 = vector.broadcast %139 : vector<11x1xf32> to vector<11x11xf32>
    %141 = arith.subf %135, %140 : vector<11x11xf32>
    %142 = math.exp %141 : vector<11x11xf32>
    %cst_95 = arith.constant dense<0.000000e+00> : vector<11xf32>
    %143 = vector.multi_reduction <add>, %142, %cst_95 [1] : vector<11x11xf32> to vector<11xf32>
    %144 = vector.shape_cast %143 : vector<11xf32> to vector<11x1xf32>
    %145 = vector.broadcast %144 : vector<11x1xf32> to vector<11x11xf32>
    %146 = arith.divf %142, %145 : vector<11x11xf32>
    %cst_96 = arith.constant dense<0.000000e+00> : vector<11x4xf32>
    %147 = tpu.matmul %146, %132, %cst_96 {dimension_numbers = #tpu.dot_dimension_numbers<[1], [0], [0], [1], [0, 0, 1, 1], [], []>} : vector<11x11xf32>, vector<11x4xf32>, vector<11x4xf32> -> vector<11x4xf32>
    %cst_97 = arith.constant dense<0.000000e+00> : vector<11x4xf32>
    %148 = tpu.matmul %147, %110, %cst_97 {dimension_numbers = #tpu.dot_dimension_numbers<[1], [0], [0], [1], [0, 0, 1, 1], [], []>} : vector<11x4xf32>, vector<4x4xf32>, vector<11x4xf32> -> vector<11x4xf32>
    %149 = vector.broadcast %111 : vector<1x4xf32> to vector<11x4xf32>
    %150 = arith.addf %148, %149 : vector<11x4xf32>
    %151 = arith.addf %126, %150 : vector<11x4xf32>
    %cst_98 = arith.constant dense<0.000000e+00> : vector<11xf32>
    %152 = vector.multi_reduction <add>, %151, %cst_98 [1] : vector<11x4xf32> to vector<11xf32>
    %153 = vector.shape_cast %152 : vector<11xf32> to vector<11x1xf32>
    %cst_99 = arith.constant 4.000000e+00 : f32
    %154 = vector.broadcast %cst_99 : f32 to vector<11x1xf32>
    %155 = arith.divf %153, %154 : vector<11x1xf32>
    %156 = vector.broadcast %155 : vector<11x1xf32> to vector<11x4xf32>
    %157 = arith.subf %151, %156 : vector<11x4xf32>
    %158 = arith.mulf %157, %157 : vector<11x4xf32>
    %cst_100 = arith.constant dense<0.000000e+00> : vector<11xf32>
    %159 = vector.multi_reduction <add>, %158, %cst_100 [1] : vector<11x4xf32> to vector<11xf32>
    %160 = vector.shape_cast %159 : vector<11xf32> to vector<11x1xf32>
    %cst_101 = arith.constant 4.000000e+00 : f32
    %161 = vector.broadcast %cst_101 : f32 to vector<11x1xf32>
    %162 = arith.divf %160, %161 : vector<11x1xf32>
    %163 = vector.broadcast %155 : vector<11x1xf32> to vector<11x4xf32>
    %164 = arith.subf %151, %163 : vector<11x4xf32>
    %cst_102 = arith.constant 9.99999974E-6 : f32
    %165 = vector.broadcast %cst_102 : f32 to vector<11x1xf32>
    %166 = arith.addf %162, %165 : vector<11x1xf32>
    %167 = math.rsqrt %166 : vector<11x1xf32>
    %168 = vector.broadcast %167 : vector<11x1xf32> to vector<11x4xf32>
    %169 = arith.mulf %164, %168 : vector<11x4xf32>
    %170 = vector.broadcast %112 : vector<1x4xf32> to vector<11x4xf32>
    %171 = arith.mulf %169, %170 : vector<11x4xf32>
    %172 = vector.broadcast %113 : vector<1x4xf32> to vector<11x4xf32>
    %173 = arith.addf %171, %172 : vector<11x4xf32>
    %cst_103 = arith.constant dense<0.000000e+00> : vector<11x16xf32>
    %174 = tpu.matmul %173, %114, %cst_103 {dimension_numbers = #tpu.dot_dimension_numbers<[1], [0], [0], [1], [0, 0, 1, 1], [], []>} : vector<11x4xf32>, vector<4x16xf32>, vector<11x16xf32> -> vector<11x16xf32>
    %175 = vector.broadcast %115 : vector<1x16xf32> to vector<11x16xf32>
    %176 = arith.addf %174, %175 : vector<11x16xf32>
    %cst_104 = arith.constant 0.000000e+00 : f32
    %177 = vector.broadcast %cst_104 : f32 to vector<11x16xf32>
    %178 = arith.maximumf %176, %177 : vector<11x16xf32>
    %cst_105 = arith.constant dense<0.000000e+00> : vector<11x4xf32>
    %179 = tpu.matmul %178, %116, %cst_105 {dimension_numbers = #tpu.dot_dimension_numbers<[1], [0], [0], [1], [0, 0, 1, 1], [], []>} : vector<11x16xf32>, vector<16x4xf32>, vector<11x4xf32> -> vector<11x4xf32>
    %180 = vector.broadcast %117 : vector<1x4xf32> to vector<11x4xf32>
    %181 = arith.addf %179, %180 : vector<11x4xf32>
    %182 = arith.addf %173, %181 : vector<11x4xf32>
    %cst_106 = arith.constant dense<0.000000e+00> : vector<11xf32>
    %183 = vector.multi_reduction <add>, %182, %cst_106 [1] : vector<11x4xf32> to vector<11xf32>
    %184 = vector.shape_cast %183 : vector<11xf32> to vector<11x1xf32>
    %cst_107 = arith.constant 4.000000e+00 : f32
    %185 = vector.broadcast %cst_107 : f32 to vector<11x1xf32>
    %186 = arith.divf %184, %185 : vector<11x1xf32>
    %187 = vector.broadcast %186 : vector<11x1xf32> to vector<11x4xf32>
    %188 = arith.subf %182, %187 : vector<11x4xf32>
    %189 = arith.mulf %188, %188 : vector<11x4xf32>
    %cst_108 = arith.constant dense<0.000000e+00> : vector<11xf32>
    %190 = vector.multi_reduction <add>, %189, %cst_108 [1] : vector<11x4xf32> to vector<11xf32>
    %191 = vector.shape_cast %190 : vector<11xf32> to vector<11x1xf32>
    %cst_109 = arith.constant 4.000000e+00 : f32
    %192 = vector.broadcast %cst_109 : f32 to vector<11x1xf32>
    %193 = arith.divf %191, %192 : vector<11x1xf32>
    %194 = vector.broadcast %186 : vector<11x1xf32> to vector<11x4xf32>
    %195 = arith.subf %182, %194 : vector<11x4xf32>
    %cst_110 = arith.constant 9.99999974E-6 : f32
    %196 = vector.broadcast %cst_110 : f32 to vector<11x1xf32>
    %197 = arith.addf %193, %196 : vector<11x1xf32>
    %198 = math.rsqrt %197 : vector<11x1xf32>
    %199 = vector.broadcast %198 : vector<11x1xf32> to vector<11x4xf32>
    %200 = arith.mulf %195, %199 : vector<11x4xf32>
    %201 = vector.broadcast %118 : vector<1x4xf32> to vector<11x4xf32>
    %202 = arith.mulf %200, %201 : vector<11x4xf32>
    %203 = vector.broadcast %119 : vector<1x4xf32> to vector<11x4xf32>
    %204 = arith.addf %202, %203 : vector<11x4xf32>
    %cst_111 = arith.constant dense<0.000000e+00> : vector<11x1xf32>
    %205 = tpu.matmul %204, %120, %cst_111 {dimension_numbers = #tpu.dot_dimension_numbers<[1], [0], [0], [1], [0, 0, 1, 1], [], []>} : vector<11x4xf32>, vector<4x1xf32>, vector<11x1xf32> -> vector<11x1xf32>
    %206 = vector.broadcast %121 : vector<1x1xf32> to vector<11x1xf32>
    %207 = arith.addf %205, %206 : vector<11x1xf32>
    %c0_112 = arith.constant 0 : index
    %c0_113 = arith.constant 0 : index
    %208 = vector.load %arg35[%c0_112, %c0_113] : memref<3x128xf32, #tpu.memory_space<vmem>>, vector<3x128xf32>
    %cst_114 = arith.constant dense<0.000000e+00> : vector<3x1xf32>
    %209 = tpu.matmul %208, %103, %cst_114 {dimension_numbers = #tpu.dot_dimension_numbers<[1], [0], [0], [1], [0, 0, 1, 1], [], []>} : vector<3x128xf32>, vector<128x1xf32>, vector<3x1xf32> -> vector<3x1xf32>
    %c0_115 = arith.constant 0 : index
    %c0_116 = arith.constant 0 : index
    %210 = vector.load %arg36[%c0_115, %c0_116] : memref<3x11xf32, #tpu.memory_space<vmem>>, vector<3x11xf32>
    %cst_117 = arith.constant dense<0.000000e+00> : vector<3x1xf32>
    %211 = tpu.matmul %210, %207, %cst_117 {dimension_numbers = #tpu.dot_dimension_numbers<[1], [0], [0], [1], [0, 0, 1, 1], [], []>} : vector<3x11xf32>, vector<11x1xf32>, vector<3x1xf32> -> vector<3x1xf32>
    %212 = arith.addf %209, %211 : vector<3x1xf32>
    %c0_118 = arith.constant 0 : index
    %c0_119 = arith.constant 0 : index
    %213 = vector.load %arg37[%c0_118, %c0_119] : memref<3x1xf32, #tpu.memory_space<vmem>>, vector<3x1xf32>
    %214 = arith.addf %212, %213 : vector<3x1xf32>
    %cst_120 = arith.constant dense<0xFF800000> : vector<1xf32>
    %215 = vector.multi_reduction <maximumf>, %214, %cst_120 [0] : vector<3x1xf32> to vector<1xf32>
    %216 = vector.shape_cast %215 : vector<1xf32> to vector<1x1xf32>
    %217 = vector.broadcast %216 : vector<1x1xf32> to vector<3x1xf32>
    %218 = arith.subf %214, %217 : vector<3x1xf32>
    %219 = math.exp %218 : vector<3x1xf32>
    %cst_121 = arith.constant dense<0.000000e+00> : vector<1xf32>
    %220 = vector.multi_reduction <add>, %219, %cst_121 [0] : vector<3x1xf32> to vector<1xf32>
    %221 = vector.shape_cast %220 : vector<1xf32> to vector<1x1xf32>
    %222 = vector.broadcast %221 : vector<1x1xf32> to vector<3x1xf32>
    %223 = arith.divf %219, %222 : vector<3x1xf32>
    %c0_122 = arith.constant 0 : index
    %c0_123 = arith.constant 0 : index
    %c0_124 = arith.constant 0 : index
    %224 = vector.load %arg38[%c0_122, %c0_123, %c0_124] : memref<1x3x1xf32, #tpu.memory_space<vmem>>, vector<1x3x1xf32>
    %225 = vector.shape_cast %224 : vector<1x3x1xf32> to vector<3x1xf32>
    %226 = vector.shape_cast %223 : vector<3x1xf32> to vector<1x3x1xf32>
    tpu.vector_store %arg38[%c0_122, %c0_123, %c0_124], %226 {strides = array<i32>} : memref<1x3x1xf32, #tpu.memory_space<vmem>>, vector<1x3x1xf32>,
    return
  }
  func.func @transform_0(%arg0: i32) -> (i32, i32, i32) {
    %c0_i32 = arith.constant 0 : i32
    %c0_i32_0 = arith.constant 0 : i32
    %c0_i32_1 = arith.constant 0 : i32
    return %arg0, %c0_i32, %c0_i32_0 : i32, i32, i32
  }
  func.func @transform_1(%arg0: i32) -> (i32, i32, i32) {
    %c0_i32 = arith.constant 0 : i32
    %c0_i32_0 = arith.constant 0 : i32
    %c0_i32_1 = arith.constant 0 : i32
    return %arg0, %c0_i32, %c0_i32_0 : i32, i32, i32
  }
  func.func @transform_2(%arg0: i32) -> (i32, i32) {
    %c0_i32 = arith.constant 0 : i32
    %c0_i32_0 = arith.constant 0 : i32
    %c0_i32_1 = arith.constant 0 : i32
    return %c0_i32, %c0_i32_0 : i32, i32
  }
  func.func @transform_3(%arg0: i32) -> (i32, i32) {
    %c0_i32 = arith.constant 0 : i32
    %c0_i32_0 = arith.constant 0 : i32
    %c0_i32_1 = arith.constant 0 : i32
    return %c0_i32, %c0_i32_0 : i32, i32
  }
  func.func @transform_4(%arg0: i32) -> (i32, i32) {
    %c0_i32 = arith.constant 0 : i32
    %c0_i32_0 = arith.constant 0 : i32
    %c0_i32_1 = arith.constant 0 : i32
    return %c0_i32, %c0_i32_0 : i32, i32
  }
  func.func @transform_5(%arg0: i32) -> (i32, i32) {
    %c0_i32 = arith.constant 0 : i32
    %c0_i32_0 = arith.constant 0 : i32
    %c0_i32_1 = arith.constant 0 : i32
    return %c0_i32, %c0_i32_0 : i32, i32
  }
  func.func @transform_6(%arg0: i32) -> (i32, i32) {
    %c0_i32 = arith.constant 0 : i32
    %c0_i32_0 = arith.constant 0 : i32
    %c0_i32_1 = arith.constant 0 : i32
    return %c0_i32, %c0_i32_0 : i32, i32
  }
  func.func @transform_7(%arg0: i32) -> (i32, i32) {
    %c0_i32 = arith.constant 0 : i32
    %c0_i32_0 = arith.constant 0 : i32
    %c0_i32_1 = arith.constant 0 : i32
    return %c0_i32, %c0_i32_0 : i32, i32
  }
  func.func @transform_8(%arg0: i32) -> (i32, i32) {
    %c0_i32 = arith.constant 0 : i32
    %c0_i32_0 = arith.constant 0 : i32
    %c0_i32_1 = arith.constant 0 : i32
    return %c0_i32, %c0_i32_0 : i32, i32
  }
  func.func @transform_9(%arg0: i32) -> (i32, i32) {
    %c0_i32 = arith.constant 0 : i32
    %c0_i32_0 = arith.constant 0 : i32
    %c0_i32_1 = arith.constant 0 : i32
    return %c0_i32, %c0_i32_0 : i32, i32
  }
  func.func @transform_10(%arg0: i32) -> (i32, i32) {
    %c0_i32 = arith.constant 0 : i32
    %c0_i32_0 = arith.constant 0 : i32
    %c0_i32_1 = arith.constant 0 : i32
    return %c0_i32, %c0_i32_0 : i32, i32
  }
  func.func @transform_11(%arg0: i32) -> (i32, i32) {
    %c0_i32 = arith.constant 0 : i32
    %c0_i32_0 = arith.constant 0 : i32
    %c0_i32_1 = arith.constant 0 : i32
    return %c0_i32, %c0_i32_0 : i32, i32
  }
  func.func @transform_12(%arg0: i32) -> (i32, i32) {
    %c0_i32 = arith.constant 0 : i32
    %c0_i32_0 = arith.constant 0 : i32
    %c0_i32_1 = arith.constant 0 : i32
    return %c0_i32, %c0_i32_0 : i32, i32
  }
  func.func @transform_13(%arg0: i32) -> (i32, i32) {
    %c0_i32 = arith.constant 0 : i32
    %c0_i32_0 = arith.constant 0 : i32
    %c0_i32_1 = arith.constant 0 : i32
    return %c0_i32, %c0_i32_0 : i32, i32
  }
  func.func @transform_14(%arg0: i32) -> (i32, i32) {
    %c0_i32 = arith.constant 0 : i32
    %c0_i32_0 = arith.constant 0 : i32
    %c0_i32_1 = arith.constant 0 : i32
    return %c0_i32, %c0_i32_0 : i32, i32
  }
  func.func @transform_15(%arg0: i32) -> (i32, i32) {
    %c0_i32 = arith.constant 0 : i32
    %c0_i32_0 = arith.constant 0 : i32
    %c0_i32_1 = arith.constant 0 : i32
    return %c0_i32, %c0_i32_0 : i32, i32
  }
  func.func @transform_16(%arg0: i32) -> (i32, i32) {
    %c0_i32 = arith.constant 0 : i32
    %c0_i32_0 = arith.constant 0 : i32
    %c0_i32_1 = arith.constant 0 : i32
    return %c0_i32, %c0_i32_0 : i32, i32
  }
  func.func @transform_17(%arg0: i32) -> (i32, i32) {
    %c0_i32 = arith.constant 0 : i32
    %c0_i32_0 = arith.constant 0 : i32
    %c0_i32_1 = arith.constant 0 : i32
    return %c0_i32, %c0_i32_0 : i32, i32
  }
  func.func @transform_18(%arg0: i32) -> (i32, i32) {
    %c0_i32 = arith.constant 0 : i32
    %c0_i32_0 = arith.constant 0 : i32
    %c0_i32_1 = arith.constant 0 : i32
    return %c0_i32, %c0_i32_0 : i32, i32
  }
  func.func @transform_19(%arg0: i32) -> (i32, i32) {
    %c0_i32 = arith.constant 0 : i32
    %c0_i32_0 = arith.constant 0 : i32
    %c0_i32_1 = arith.constant 0 : i32
    return %c0_i32, %c0_i32_0 : i32, i32
  }
  func.func @transform_20(%arg0: i32) -> (i32, i32) {
    %c0_i32 = arith.constant 0 : i32
    %c0_i32_0 = arith.constant 0 : i32
    %c0_i32_1 = arith.constant 0 : i32
    return %c0_i32, %c0_i32_0 : i32, i32
  }
  func.func @transform_21(%arg0: i32) -> (i32, i32) {
    %c0_i32 = arith.constant 0 : i32
    %c0_i32_0 = arith.constant 0 : i32
    %c0_i32_1 = arith.constant 0 : i32
    return %c0_i32, %c0_i32_0 : i32, i32
  }
  func.func @transform_22(%arg0: i32) -> (i32, i32) {
    %c0_i32 = arith.constant 0 : i32
    %c0_i32_0 = arith.constant 0 : i32
    %c0_i32_1 = arith.constant 0 : i32
    return %c0_i32, %c0_i32_0 : i32, i32
  }
  func.func @transform_23(%arg0: i32) -> (i32, i32) {
    %c0_i32 = arith.constant 0 : i32
    %c0_i32_0 = arith.constant 0 : i32
    %c0_i32_1 = arith.constant 0 : i32
    return %c0_i32, %c0_i32_0 : i32, i32
  }
  func.func @transform_24(%arg0: i32) -> (i32, i32) {
    %c0_i32 = arith.constant 0 : i32
    %c0_i32_0 = arith.constant 0 : i32
    %c0_i32_1 = arith.constant 0 : i32
    return %c0_i32, %c0_i32_0 : i32, i32
  }
  func.func @transform_25(%arg0: i32) -> (i32, i32) {
    %c0_i32 = arith.constant 0 : i32
    %c0_i32_0 = arith.constant 0 : i32
    %c0_i32_1 = arith.constant 0 : i32
    return %c0_i32, %c0_i32_0 : i32, i32
  }
  func.func @transform_26(%arg0: i32) -> (i32, i32) {
    %c0_i32 = arith.constant 0 : i32
    %c0_i32_0 = arith.constant 0 : i32
    %c0_i32_1 = arith.constant 0 : i32
    return %c0_i32, %c0_i32_0 : i32, i32
  }
  func.func @transform_27(%arg0: i32) -> (i32, i32) {
    %c0_i32 = arith.constant 0 : i32
    %c0_i32_0 = arith.constant 0 : i32
    %c0_i32_1 = arith.constant 0 : i32
    return %c0_i32, %c0_i32_0 : i32, i32
  }
  func.func @transform_28(%arg0: i32) -> (i32, i32) {
    %c0_i32 = arith.constant 0 : i32
    %c0_i32_0 = arith.constant 0 : i32
    %c0_i32_1 = arith.constant 0 : i32
    return %c0_i32, %c0_i32_0 : i32, i32
  }
  func.func @transform_29(%arg0: i32) -> (i32, i32) {
    %c0_i32 = arith.constant 0 : i32
    %c0_i32_0 = arith.constant 0 : i32
    %c0_i32_1 = arith.constant 0 : i32
    return %c0_i32, %c0_i32_0 : i32, i32
  }
  func.func @transform_30(%arg0: i32) -> (i32, i32) {
    %c0_i32 = arith.constant 0 : i32
    %c0_i32_0 = arith.constant 0 : i32
    %c0_i32_1 = arith.constant 0 : i32
    return %c0_i32, %c0_i32_0 : i32, i32
  }
  func.func @transform_31(%arg0: i32) -> (i32, i32) {
    %c0_i32 = arith.constant 0 : i32
    %c0_i32_0 = arith.constant 0 : i32
    %c0_i32_1 = arith.constant 0 : i32
    return %c0_i32, %c0_i32_0 : i32, i32
  }
  func.func @transform_32(%arg0: i32) -> (i32, i32) {
    %c0_i32 = arith.constant 0 : i32
    %c0_i32_0 = arith.constant 0 : i32
    %c0_i32_1 = arith.constant 0 : i32
    return %c0_i32, %c0_i32_0 : i32, i32
  }
  func.func @transform_33(%arg0: i32) -> (i32, i32) {
    %c0_i32 = arith.constant 0 : i32
    %c0_i32_0 = arith.constant 0 : i32
    %c0_i32_1 = arith.constant 0 : i32
    return %c0_i32, %c0_i32_0 : i32, i32
  }
  func.func @transform_34(%arg0: i32) -> (i32, i32) {
    %c0_i32 = arith.constant 0 : i32
    %c0_i32_0 = arith.constant 0 : i32
    %c0_i32_1 = arith.constant 0 : i32
    return %c0_i32, %c0_i32_0 : i32, i32
  }
  func.func @transform_35(%arg0: i32) -> (i32, i32) {
    %c0_i32 = arith.constant 0 : i32
    %c0_i32_0 = arith.constant 0 : i32
    %c0_i32_1 = arith.constant 0 : i32
    return %c0_i32, %c0_i32_0 : i32, i32
  }
  func.func @transform_36(%arg0: i32) -> (i32, i32) {
    %c0_i32 = arith.constant 0 : i32
    %c0_i32_0 = arith.constant 0 : i32
    %c0_i32_1 = arith.constant 0 : i32
    return %c0_i32, %c0_i32_0 : i32, i32
  }
  func.func @transform_37(%arg0: i32) -> (i32, i32, i32) {
    %c0_i32 = arith.constant 0 : i32
    %c0_i32_0 = arith.constant 0 : i32
    %c0_i32_1 = arith.constant 0 : i32
    return %arg0, %c0_i32, %c0_i32_0 : i32, i32, i32
  }
}

</mosaic_0001>

<bundles_post_ra>
// kernel: mafm_forward.1
= control target key start
LH: loop header
LB: loop body
LE: loop exit
PB: predicated region body
PF: predicated region fallthrough
CT: control target
= control target key end

     0   :  { %s4467_s6 = smov 1   ;;  %s4468_s10 = smov 2   ;;  %s6014_s0 = inlined_call_operand.smem [shape: u32[38], index: -1, kind: input, shape index: {}] }
   0x1   :  { %s4516_s5 = sld [smem:[%s6014_s0]]   ;;  %s4469_s14 = smov 3  }
   0x2   :  { %s4521_s9 = sld [smem:[%s6014_s0 + %s4467_s6]]   ;;  %s4470_s18 = smov 4  }
   0x3   :  { %s4526_s13 = sld [smem:[%s6014_s0 + %s4468_s10]]   ;;  %s4471_s22 = smov 5  }
   0x4   :  { %s4531_s17 = sld [smem:[%s6014_s0 + %s4469_s14]]   ;;  %s4472_s26 = smov 6  }
   0x5   :  { %s4536_s21 = sld [smem:[%s6014_s0 + %s4470_s18]]   ;;  %s4473_s30 = smov 7  }
   0x6   :  { %s4541_s25 = sld [smem:[%s6014_s0 + %s4471_s22]]   ;;  %s4474_s4 = smov 8  }
   0x7   :  { %s4546_s29 = sld [smem:[%s6014_s0 + %s4472_s26]]   ;;  %s4475_s10 = smov 9  }
   0x8   :  { %s4551_s3 = sld [smem:[%s6014_s0 + %s4473_s30]]   ;;  %s4476_s15 = smov 10  }
   0x9   :  { %s4556_s8 = sld [smem:[%s6014_s0 + %s4474_s4]]   ;;  %s4477_s20 = smov 11  }
   0xa   :  { %s4561_s14 = sld [smem:[%s6014_s0 + %s4475_s10]]   ;;  %s4478_s26 = smov 12  }
   0xb   :  { %s4566_s19 = sld [smem:[%s6014_s0 + %s4476_s15]]   ;;  %s4479_s1 = smov 13  }
   0xc   :  { %s4571_s24 = sld [smem:[%s6014_s0 + %s4477_s20]]   ;;  %s4480_s7 = smov 14  }
   0xd   :  { %s4576_s30 = sld [smem:[%s6014_s0 + %s4478_s26]]   ;;  %s4481_s15 = smov 15  }
   0xe   :  { %s4581_s6 = sld [smem:[%s6014_s0 + %s4479_s1]]   ;;  %s4482_s22 = smov 16  }
   0xf   :  { %6017 = sst [smem:[#allocation4_spill]] %s4556_s8  ;;  %s4483_s28 = smov 17  }
  0x10   :  { %6018 = sst [smem:[#allocation5_spill]] %s4561_s14  ;;  %s4484_s10 = smov 18  }
  0x11   :  { %s4586_s12 = sld [smem:[%s6014_s0 + %s4480_s7]]   ;;  %s4485_s16 = smov 19  }
  0x12   :  { %6019 = sst [smem:[#allocation6_spill]] %s4571_s24  ;;  %s4486_s23 = smov 20  }
  0x13   :  { %6020 = sst [smem:[#allocation7_spill]] %s4576_s30  ;;  %s4487_s1 = smov 21  }
  0x14   :  { %6021 = sst [smem:[#allocation8_spill]] %s4581_s6  ;;  %s4492_s7 = smov 26  }
  0x15   :  { %s4591_s20 = sld [smem:[%s6014_s0 + %s4481_s15]]   ;;  %s4495_s14 = smov 29  }
  0x16   :  { %s4596_s27 = sld [smem:[%s6014_s0 + %s4482_s22]]   ;;  %s4496_s8 = smov 30  }
  0x17   :  { %6022 = sst [smem:[#allocation9_spill]] %s4586_s12 }
  0x18   :  { %s4005_s4 = sld [smem:[%s6014_s0 + %s4483_s28]]  }
  0x19   :  { %s4604_s12 = sld [smem:[%s6014_s0 + %s4484_s10]]   ;;  %s4488_s10 = smov 22  }
  0x1a   :  { %s4619_s6 = sld [smem:[%s6014_s0 + %s4487_s1]]   ;;  %s4491_s1 = smov 25  }
  0x1b   :  { %6023 = sst [smem:[#allocation10_spill]] %s4591_s20 }
  0x1c   :  { %6024 = sst [smem:[#allocation11_spill]] %s4596_s27 }
  0x1d   :  { %s4609_s20 = sld [smem:[%s6014_s0 + %s4485_s16]]   ;;  %s4489_s16 = smov 23  }
  0x1e   :  { %s4614_s27 = sld [smem:[%s6014_s0 + %s4486_s23]]   ;;  %v80_v0 = vstv %s4005_s4  ;;  %s4490_s23 = smov 24  }
  0x1f   :  { %s4624_s24 = sld [smem:[%s6014_s0 + %s4488_s10]]   ;;  %81 = vst [vmem:[#allocation2] sm:$0x1] %v80_v0  ;;  %s4493_s4 = smov 27  }
  0x20   :  { %s4629_s30 = sld [smem:[%s6014_s0 + %s4489_s16]]  }
  0x21   :  { %s4634_s28 = sld [smem:[%s6014_s0 + %s4490_s23]]   ;;  %s4494_s23 = smov 28  }
  0x22   :  { %s4639_s10 = sld [smem:[%s6014_s0 + %s4491_s1]]  }
  0x23   :  { %s4644_s16 = sld [smem:[%s6014_s0 + %s4492_s7]]  }
  0x24   :  { %s4649_s22 = sld [smem:[%s6014_s0 + %s4493_s4]]   ;;  %s4497_s4 = smov 31  }
  0x26   :  { %6025 = sst [smem:[#allocation12_spill]] %s4629_s30 }
  0x27   :  { %6026 = sst [smem:[#allocation13_spill]] %s4634_s28  ;;  %s4498_s28 = smov 32  }
  0x28   :  { %6027 = sst [smem:[#allocation14_spill]] %s4639_s10 }
  0x29   :  { %6028 = sst [smem:[#allocation15_spill]] %s4644_s16 }
  0x2a   :  { %6029 = sst [smem:[#allocation16_spill]] %s4649_s22 }
  0x2b   :  { %s4654_s30 = sld [smem:[%s6014_s0 + %s4494_s23]]  }
  0x2c   :  { %s4659_s10 = sld [smem:[%s6014_s0 + %s4495_s14]]   ;;  %s4499_s14 = smov 34  }
  0x2d   :  { %s4664_s16 = sld [smem:[%s6014_s0 + %s4496_s8]]   ;;  %s4500_s8 = smov 35  }
  0x2e   :  { %s4669_s22 = sld [smem:[%s6014_s0 + %s4497_s4]]   ;;  %s4501_s4 = smov 36  }
  0x31   :  { %6030 = sst [smem:[#allocation17_spill]] %s4654_s30 }
  0x32   :  { %6031 = sst [smem:[#allocation18_spill]] %s4659_s10 }
  0x33   :  { %6032 = sst [smem:[#allocation19_spill]] %s4664_s16 }
  0x34   :  { %6033 = sst [smem:[#allocation20_spill]] %s4669_s22 }
  0x35   :  { %s4674_s30 = sld [smem:[%s6014_s0 + %s4498_s28]]   ;;  %s4502_s28 = smov 37  }
  0x36   :  { %s4679_s10 = sld [smem:[%s6014_s0 + %s4499_s14]]   ;;  %s4503_s14 = smov 33  }
  0x37   :  { %s4684_s16 = sld [smem:[%s6014_s0 + %s4500_s8]]   ;;  %s4699_s8 = smov 0  }
  0x38   :  { %s4689_s22 = sld [smem:[%s6014_s0 + %s4501_s4]]  }
  0x3b   :  { %6034 = sst [smem:[#allocation21_spill]] %s4674_s30 }
  0x3c   :  { %6035 = sst [smem:[#allocation22_spill]] %s4679_s10 }
  0x3d   :  { %s4694_s30 = sld [smem:[%s6014_s0 + %s4502_s28]]  }
  0x3e   :  { %s4021_s10 = sld [smem:[%s6014_s0 + %s4503_s14]]  }
  0x44   :  { %v82_v1 = vstv %s4021_s10 }
  0x45   :  { %83 = vst [vmem:[#allocation3] sm:$0x1] %v82_v1 }
  0x46 LB: > { %s4026_s7 = sadd.s32 4294967295, %s4465_s8   ;;  %p4030_p0 = scmp.ge.s32.totalorder %s4465_s8, 1  ;;  %s4465_s8 = sphi %s4699_s8, %s89_s8  }
  0x47   : > { %p1039_p1 = scmp.lt.s32.totalorder %s4465_s8, 3 }
  0x49   : > { %p1040_p2 = pnand %p4030_p0, %p1039_p1 }
  0x4a   : > { %p1135_p3 = scmp.lt.s32.totalorder (!%p1040_p2), %s4026_s7, 1  ;;  %s4505_s11 = smov (!%p1040_p2), 124  }
  0x4b   : > { %1043 = sbr.rel (%p1040_p2) target bundleno = 2833 (0xb11), region = 168  ;;  %s4506_s18 = smov (!%p1040_p2), 120  }
  0x4c   : > { %s6040_s28 = sld [smem:[#allocation4_spill]] (!%p1040_p2) }
  0x4d   : > { %s6041_s23 = sld [smem:[#allocation5_spill]] (!%p1040_p2) }
  0x4e   : > { %s6042_s26 = sld [smem:[#allocation12_spill]] (!%p1040_p2) }
  0x4f   : > { %s6043_s14 = sld [smem:[#allocation7_spill]] (!%p1040_p2) }
  0x50   : > { %v4504_v2 = vmov 0   ;;  %s6060_s7 = smov (!%p1135_p3, %s4026_s7), 1  ;;  %v1167_v19 = vld [vmem:[%s4536_s21] sm:$0xf]  ;;  %vm1352_vm0 = vcmask 1043456   ;;  %vm1303_vm1 = vcmask 31744  }
  0x51   : > { %4245 = vset.pattern.permute.xlu1 %v4504_v2  ;;  %4244 = vset.pattern.permute.xlu0 %v4504_v2  ;;  %s4177_s0 = sshll.u32 %s6060_s7, 7  ;;  %v4287_v22 = vld [vmem:[%s4526_s13] ss:$0 sm:$0xff]  ;;  %s4178_s4 = sshll.u32 %s6060_s7, 4 }
  0x52   : > { %4246 = vset.pattern.permute.xlu2 %v4504_v2  ;;  %s4711_s10 = scalar_lea.vmem %s4516_s5, %s4177_s0  ;;  %4036 = vmatpush.msk.msra.mxu0 %vm1352_vm0, %v1167_v19  ;;  %v4288_v24 = vld [vmem:[%s4531_s17] ss:$0 sm:$0xff]  ;;  %s1144_s15 = scalar_lea.vmem %s4521_s9, %s4178_s4 }
  0x53   : > { %v1151_v3 = vld [vmem:[%s4711_s10 + $0x10] sm:$0xff]  ;;  %v1149_v4 = vld [vmem:[%s4711_s10] sm:$0xff]  ;;  %v1152_v6 = vld [vmem:[%s4711_s10 + $0x18] sm:$0xff]  ;;  %s6044_s1 = sld [smem:[#allocation6_spill]] }
  0x54   : > { %1194 = vperm.xlu1 %4245, %v1151_v3   ;;  %1184 = vperm.xlu0 %4244, %v1149_v4   ;;  %v1153_v5 = vld [vmem:[%s4711_s10 + $0x20] sm:$0xff]  ;;  %v1150_v7 = vld [vmem:[%s4711_s10 + $0x8] sm:$0xff]  ;;  %v1156_v9 = vld [vmem:[%s4711_s10 + $0x38] sm:$0xff]  ;;  %s6045_s2 = sld [smem:[#allocation8_spill]] }
  0x55   : > { %1204 = vperm.xlu2 %4246, %v1153_v5   ;;  %v1154_v8 = vld [vmem:[%s4711_s10 + $0x28] sm:$0xff]  ;;  %v1155_v10 = vld [vmem:[%s4711_s10 + $0x30] sm:$0xff]  ;;  %v1157_v11 = vld [vmem:[%s4711_s10 + $0x40] sm:$0xff]  ;;  %s6046_s0 = sld [smem:[#allocation15_spill]] }
  0x56   : > { %v1159_v12 = vld [vmem:[%s4711_s10 + $0x50] sm:$0xff]  ;;  %v1158_v13 = vld [vmem:[%s4711_s10 + $0x48] sm:$0xff]  ;;  %v1160_v14 = vld [vmem:[%s4711_s10 + $0x58] sm:$0xff]  ;;  %s6049_s4 = sld [smem:[#allocation17_spill]] }
  0x57   : > { %v1162_v15 = vld [vmem:[%s4711_s10 + $0x68] sm:$0xff]  ;;  %v1161_v16 = vld [vmem:[%s4711_s10 + $0x60] sm:$0xff]  ;;  %v1163_v17 = vld [vmem:[%s4711_s10 + $0x70] sm:$0xff] }
  0x58   : > { %v1164_v18 = vld [vmem:[%s4711_s10 + $0x78] sm:$0xff]  ;;  %v4289_v19 = vld [vmem:[%s4541_s25] ss:$0 sm:$0xff]  ;;  %s6047_s10 = sld [smem:[#allocation13_spill]] }
  0x5c   : > { %1199 = vperm.xlu1 %4245, %v1152_v6   ;;  %1189 = vperm.xlu0 %4244, %v1150_v7  }
  0x5d   : > { %1209 = vperm.xlu2 %4246, %v1154_v8  }
  0x64   : > { %1219 = vperm.xlu1 %4245, %v1156_v9   ;;  %1214 = vperm.xlu0 %4244, %v1155_v10  }
  0x65   : > { %1224 = vperm.xlu2 %4246, %v1157_v11  }
  0x6c   : > { %1234 = vperm.xlu1 %4245, %v1159_v12   ;;  %1229 = vperm.xlu0 %4244, %v1158_v13  }
  0x6d   : > { %1239 = vperm.xlu2 %4246, %v1160_v14  }
  0x74   : > { %1249 = vperm.xlu1 %4245, %v1162_v15   ;;  %1244 = vperm.xlu0 %4244, %v1161_v16  }
  0x75   : > { %1254 = vperm.xlu2 %4246, %v1163_v17  }
  0x7c   : > { %1259 = vperm.xlu0 %4244, %v1164_v18  }
  0xaf   : > { %v1205_v20 = vpop.permute.xlu2 %1204 }
  0xb0   : > { %v1269_v53 = vmul.f32 %v4287_v22, %v1205_v20 }
  0xb2   : > { %v4759_v56 = vadd.f32 %v4288_v24, %v1269_v53 }
  0xb7   : > { %v1210_v21 = vpop.permute.xlu2 %1209 }
  0xb8   : > { %v1270_v61 = vmul.f32 %v4287_v22, %v1210_v21 }
  0xba   : > { %v4767_v0 = vadd.f32 %v4288_v24, %v1270_v61 }
  0xbf   : > { %v1225_v23 = vpop.permute.xlu2 %1224 }
  0xc0   : > { %v1273_v25 = vmul.f32 %v4287_v22, %v1225_v23 }
  0xc2   : > { %v4733_v26 = vadd.f32 %v4288_v24, %v1273_v25 }
  0xc6   : > { %v1195_v27 = vpop.permute.xlu1 %1194  ;;  %v1185_v28 = vpop.permute.xlu0 %1184 }
  0xc7   : > { %v1265_v29 = vmul.f32 %v4287_v22, %v1185_v28  ;;  %v1240_v30 = vpop.permute.xlu2 %1239  ;;  %v1267_v40 = vmul.f32 %v4287_v22, %v1195_v27 }
  0xc8   : > { %v1276_v32 = vmul.f32 %v4287_v22, %v1240_v30 }
  0xc9   : > { %v4735_v31 = vadd.f32 %v4288_v24, %v1265_v29  ;;  %v4747_v44 = vadd.f32 %v4288_v24, %v1267_v40 }
  0xca   : > { %v4739_v33 = vadd.f32 %v4288_v24, %v1276_v32 }
  0xcb   : > { %4037 = vmatmul.msk.f32.vlgmr.msra.gmra.mxu0 %vm1303_vm1, %v4735_v31 }
  0xce   : > { %v1200_v34 = vpop.permute.xlu1 %1199  ;;  %v1190_v35 = vpop.permute.xlu0 %1189 }
  0xcf   : > { %v1266_v36 = vmul.f32 %v4287_v22, %v1190_v35  ;;  %v1255_v37 = vpop.permute.xlu2 %1254  ;;  %v1268_v45 = vmul.f32 %v4287_v22, %v1200_v34 }
  0xd0   : > { %v1279_v39 = vmul.f32 %v4287_v22, %v1255_v37 }
  0xd1   : > { %v4741_v38 = vadd.f32 %v4288_v24, %v1266_v36  ;;  %v4751_v50 = vadd.f32 %v4288_v24, %v1268_v45 }
  0xd2   : > { %v4745_v41 = vadd.f32 %v4288_v24, %v1279_v39  ;;  %v3389_v39 = vld [vmem:[%s1144_s15 + $0x8] sm:$0x7] }
  0xd3   : > { %4038 = vmatmul.msk.f32.gmra.mxu0 %vm1303_vm1, %v4741_v38 }
  0xd6   : > { %v1220_v42 = vpop.permute.xlu1 %1219  ;;  %v1215_v43 = vpop.permute.xlu0 %1214 }
  0xd7   : > { %v1271_v2 = vmul.f32 %v4287_v22, %v1215_v43  ;;  %v1272_v4 = vmul.f32 %v4287_v22, %v1220_v42  ;;  %v3388_v43 = vld [vmem:[%s1144_s15] sm:$0xff]  ;;  %s6050_s15 = sld [smem:[#allocation16_spill]] }
  0xd9   : > { %v4773_v3 = vadd.f32 %v4288_v24, %v1271_v2  ;;  %v4777_v5 = vadd.f32 %v4288_v24, %v1272_v4 }
  0xdb   : > { %4039 = vmatmul.msk.f32.gmra.mxu0 %vm1303_vm1, %v4747_v44 }
  0xde   : > { %v1235_v46 = vpop.permute.xlu1 %1234  ;;  %v1230_v47 = vpop.permute.xlu0 %1229 }
  0xdf   : > { %v1275_v48 = vmul.f32 %v4287_v22, %v1235_v46  ;;  %v1274_v49 = vmul.f32 %v4287_v22, %v1230_v47 }
  0xe1   : > { %v4753_v51 = vadd.f32 %v4288_v24, %v1275_v48  ;;  %v4755_v52 = vadd.f32 %v4288_v24, %v1274_v49 }
  0xe3   : > { %4040 = vmatmul.msk.f32.gmra.mxu0 %vm1303_vm1, %v4751_v50 }
  0xe6   : > { %v1250_v54 = vpop.permute.xlu1 %1249  ;;  %v1245_v55 = vpop.permute.xlu0 %1244 }
  0xe7   : > { %v1278_v57 = vmul.f32 %v4287_v22, %v1250_v54  ;;  %v1277_v58 = vmul.f32 %v4287_v22, %v1245_v55 }
  0xe9   : > { %v4761_v59 = vadd.f32 %v4288_v24, %v1278_v57  ;;  %v4763_v60 = vadd.f32 %v4288_v24, %v1277_v58 }
  0xeb   : > { %4041 = vmatmul.msk.f32.gmra.mxu0 %vm1303_vm1, %v4759_v56 }
  0xee   : > { %v1260_v62 = vpop.permute.xlu0 %1259 }
  0xef   : > { %v1280_v63 = vmul.f32 %v4287_v22, %v1260_v62 }
  0xf1   : > { %v4769_v1 = vadd.f32 %v4288_v24, %v1280_v63 }
  0xf3   : > { %4042 = vmatmul.msk.f32.gmra.mxu0 %vm1303_vm1, %v4767_v0 }
  0xfb   : > { %4043 = vmatmul.msk.f32.gmra.mxu0 %vm1303_vm1, %v4773_v3 }
 0x103   : > { %4044 = vmatmul.msk.f32.gmra.mxu0 %vm1303_vm1, %v4777_v5 }
 0x10b   : > { %4045 = vmatmul.msk.f32.gmra.mxu0 %vm1303_vm1, %v4733_v26 }
 0x113   : > { %4046 = vmatmul.msk.f32.gmra.mxu0 %vm1303_vm1, %v4755_v52 }
 0x11b   : > { %4047 = vmatmul.msk.f32.gmra.mxu0 %vm1303_vm1, %v4753_v51 }
 0x123   : > { %4048 = vmatmul.msk.f32.gmra.mxu0 %vm1303_vm1, %v4739_v33 }
 0x12b   : > { %4049 = vmatmul.msk.f32.gmra.mxu0 %vm1303_vm1, %v4763_v60 }
 0x133   : > { %4050 = vmatmul.msk.f32.gmra.mxu0 %vm1303_vm1, %v4761_v59 }
 0x13b   : > { %4051 = vmatmul.msk.f32.gmra.mxu0 %vm1303_vm1, %v4745_v41 }
 0x143   : > { %4052 = vmatmul.msk.f32.gmra.mxu0 %vm1303_vm1, %v4769_v1 }
 0x148   : > { %v1373_v6 = vpop.f32.mrf.mxu0 }
 0x149   : > { %v4865_v48 = vadd.f32 %v4289_v19, %v1373_v6 }
 0x150   : > { %v1376_v7 = vpop.f32.mrf.mxu0 }
 0x151   : > { %v4834_v35 = vadd.f32 %v4289_v19, %v1376_v7 }
 0x158   : > { %v1379_v8 = vpop.f32.mrf.mxu0 }
 0x159   : > { %v4848_v40 = vadd.f32 %v4289_v19, %v1379_v8 }
 0x160   : > { %v1382_v9 = vpop.f32.mrf.mxu0 }
 0x161   : > { %v4858_v46 = vadd.f32 %v4289_v19, %v1382_v9 }
 0x168   : > { %v1385_v10 = vpop.f32.mrf.mxu0 }
 0x169   : > { %v4822_v30 = vadd.f32 %v4289_v19, %v1385_v10 }
 0x170   : > { %v1388_v11 = vpop.f32.mrf.mxu0 }
 0x171   : > { %v4836_v36 = vadd.f32 %v4289_v19, %v1388_v11 }
 0x178   : > { %v1391_v12 = vpop.f32.mrf.mxu0 }
 0x179   : > { %v4850_v42 = vadd.f32 %v4289_v19, %v1391_v12 }
 0x180   : > { %v1394_v13 = vpop.f32.mrf.mxu0 }
 0x181   : > { %v4810_v27 = vadd.f32 %v4289_v19, %v1394_v13 }
 0x188   : > { %v1397_v14 = vpop.f32.mrf.mxu0 }
 0x189   : > { %v4824_v32 = vadd.f32 %v4289_v19, %v1397_v14 }
 0x190   : > { %v1400_v15 = vpop.f32.mrf.mxu0 }
 0x191   : > { %v4838_v37 = vadd.f32 %v4289_v19, %v1400_v15 }
 0x198   : > { %v1403_v16 = vpop.f32.mrf.mxu0 }
 0x199   : > { %v4802_v23 = vadd.f32 %v4289_v19, %v1403_v16 }
 0x1a0   : > { %v1406_v17 = vpop.f32.mrf.mxu0 }
 0x1a1   : > { %v4812_v28 = vadd.f32 %v4289_v19, %v1406_v17 }
 0x1a3   : > { %v4252_v45 = vpack.i.bf16 %v4802_v23, %v4812_v28 }
 0x1a8   : > { %v1409_v18 = vpop.f32.mrf.mxu0 }
 0x1a9   : > { %v4826_v34 = vadd.f32 %v4289_v19, %v1409_v18 }
 0x1b0   : > { %v1412_v20 = vpop.f32.mrf.mxu0 }
 0x1b1   : > { %v4798_v21 = vadd.f32 %v4289_v19, %v1412_v20 }
 0x1b3   : > { %1463 = vrot.lane.b32.xlu0 %v4798_v21, %s4505_s11  ;;  %v4247_v49 = vpack.i.bf16 %v4826_v34, %v4798_v21 }
 0x1b8   : > { %v1415_v22 = vpop.f32.mrf.mxu0 }
 0x1b9   : > { %v4804_v24 = vadd.f32 %v4289_v19, %v1415_v22 }
 0x1bb   : > { %1465 = vrot.lane.b32.xlu2 %v4804_v24, %s4505_s11  ;;  %1457 = vrot.lane.b32.xlu0 %v4802_v23, %s4505_s11 }
 0x1c0   : > { %v1418_v25 = vpop.f32.mrf.mxu0 }
 0x1c1   : > { %v4814_v29 = vadd.f32 %v4289_v19, %v1418_v25 }
 0x1c3   : > { %1459 = vrot.lane.b32.xlu2 %v4812_v28, %s4505_s11  ;;  %1451 = vrot.lane.b32.xlu0 %v4810_v27, %s4505_s11  ;;  %v4257_v47 = vpack.i.bf16 %v4804_v24, %v4814_v29 }
 0x1c4   : > { %1467 = vrot.lane.b32.xlu1 %v4814_v29, %s4505_s11 }
 0x1cb   : > { %1453 = vrot.lane.b32.xlu2 %v4824_v32, %s4505_s11  ;;  %1445 = vrot.lane.b32.xlu0 %v4822_v30, %s4505_s11 }
 0x1cc   : > { %1461 = vrot.lane.b32.xlu1 %v4826_v34, %s4505_s11 }
 0x1d3   : > { %1447 = vrot.lane.b32.xlu2 %v4836_v36, %s4505_s11  ;;  %1439 = vrot.lane.b32.xlu0 %v4834_v35, %s4505_s11 }
 0x1d4   : > { %1455 = vrot.lane.b32.xlu1 %v4838_v37, %s4505_s11 }
 0x1db   : > { %1441 = vrot.lane.b32.xlu2 %v4848_v40, %s4505_s11  ;;  %3414 = vperm.xlu0 %4244, %v3389_v39   ;;  %v3392_v39 = vld [vmem:[%s4614_s27] sm:$0xf] }
 0x1dc   : > { %1449 = vrot.lane.b32.xlu1 %v4850_v42, %s4505_s11 }
 0x1e3   : > { %3409 = vperm.xlu2 %4246, %v3388_v43   ;;  %4253 = vrot.lane.b32.xlu0 %v4252_v45, %s4506_s18  ;;  %v4290_v43 = vld [vmem:[%s4604_s12] ss:$0 sm:$0xff] }
 0x1e4   : > { %1443 = vrot.lane.b32.xlu1 %v4858_v46, %s4505_s11  ;;  %v4291_v45 = vld [vmem:[%s4609_s20] ss:$0 sm:$0xff] }
 0x1eb   : > { %4258 = vrot.lane.b32.xlu2 %v4257_v47, %s4506_s18 }
 0x1ec   : > { %1437 = vrot.lane.b32.xlu1 %v4865_v48, %s4505_s11 }
 0x1f4   : > { %4248 = vrot.lane.b32.xlu1 %v4247_v49, %s4506_s18 }
 0x215   : > { %v1466_v53 = vpop.permute.xlu2 %1465 }
 0x21d   : > { %v1460_v54 = vpop.permute.xlu2 %1459 }
 0x225   : > { %v1454_v55 = vpop.permute.xlu2 %1453  ;;  %v1464_v57 = vpop.permute.xlu0 %1463 }
 0x22d   : > { %v1448_v58 = vpop.permute.xlu2 %1447  ;;  %v1458_v62 = vpop.permute.xlu0 %1457 }
 0x235   : > { %v1442_v61 = vpop.permute.xlu2 %1441  ;;  %v1452_v6 = vpop.permute.xlu0 %1451 }
 0x236   : > { %v1468_v63 = vpop.permute.xlu1 %1467 }
 0x237   : > { %4053 = vmatpush.xpose.msk.msra.mxu1 %vm1303_vm1, %v1468_v63 }
 0x23b   : > { %4054 = vmatpush.xpose.msk.msra.mxu1 %vm1303_vm1, %v1466_v53 }
 0x23d   : > { %v4875_v2 = vpop.permute.xlu2 %3409  ;;  %v1446_v11 = vpop.permute.xlu0 %1445 }
 0x23e   : > { %v1462_v4 = vpop.permute.xlu1 %1461  ;;  %v3420_v47 = vmul.f32 %v4290_v43, %v4875_v2 }
 0x23f   : > { %4055 = vmatpush.xpose.msk.msra.mxu1 %vm1303_vm1, %v1464_v57 }
 0x240   : > { %v4928_v49 = vadd.f32 %v4291_v45, %v3420_v47 }
 0x243   : > { %4056 = vmatpush.xpose.msk.msra.mxu1 %vm1303_vm1, %v1462_v4 }
 0x245   : > { %v4259_v7 = vpop.permute.xlu2 %4258  ;;  %v1440_v13 = vpop.permute.xlu0 %1439 }
 0x246   : > { %v1456_v8 = vpop.permute.xlu1 %1455  ;;  %v4260_v9 = vunpack.i.l.bf16 %v4259_v7  ;;  %v4261_v10 = vunpack.i.h.bf16 %v4259_v7 }
 0x247   : > { %4057 = vmatpush.xpose.msk.msra.mxu1 %vm1303_vm1, %v1460_v54 }
 0x248   : > { %2014 = vmatpush.msrb.mxu0 %v4260_v9  ;;  %4179 = vmatpush.msra.mxu2 %v4260_v9 }
 0x24a   : > { %2015 = vmatpush.msrb.mxu0 %v4261_v10  ;;  %4180 = vmatpush.msra.mxu2 %v4261_v10 }
 0x24b   : > { %4058 = vmatpush.xpose.msk.msra.mxu1 %vm1303_vm1, %v1458_v62 }
 0x24d   : > { %v3415_v15 = vpop.permute.xlu0 %3414 }
 0x24e   : > { %v1450_v12 = vpop.permute.xlu1 %1449 }
 0x24f   : > { %4059 = vmatpush.xpose.msk.msra.mxu1 %vm1303_vm1, %v1456_v8  ;;  %v4262_v8 = vpack.i.bf16 %v4824_v32, %v4838_v37 }
 0x253   : > { %4060 = vmatpush.xpose.msk.msra.mxu1 %vm1303_vm1, %v1454_v55 }
 0x255   : > { %v4254_v19 = vpop.permute.xlu0 %4253 }
 0x256   : > { %v1444_v14 = vpop.permute.xlu1 %1443  ;;  %v4255_v22 = vunpack.i.l.bf16 %v4254_v19  ;;  %v4256_v25 = vunpack.i.h.bf16 %v4254_v19  ;;  %v4292_v19 = vld [vmem:[%s4619_s6] ss:$0 sm:$0xff] }
 0x257   : > { %4061 = vmatpush.xpose.msk.msra.mxu1 %vm1303_vm1, %v1452_v6 }
 0x25b   : > { %4062 = vmatpush.xpose.msk.msra.mxu1 %vm1303_vm1, %v1450_v12 }
 0x25e   : > { %v1438_v16 = vpop.permute.xlu1 %1437 }
 0x25f   : > { %4063 = vmatpush.xpose.msk.msra.mxu1 %vm1303_vm1, %v1448_v58 }
 0x263   : > { %4064 = vmatpush.xpose.msk.msra.mxu1 %vm1303_vm1, %v1446_v11 }
 0x266   : > { %v4249_v17 = vpop.permute.xlu1 %4248 }
 0x267   : > { %4065 = vmatpush.xpose.msk.msra.mxu1 %vm1303_vm1, %v1444_v14  ;;  %v4250_v18 = vunpack.i.l.bf16 %v4249_v17  ;;  %v4251_v20 = vunpack.i.h.bf16 %v4249_v17 }
 0x269   : > { %2016 = vmatpush.msrb.mxu0 %v4250_v18  ;;  %4181 = vmatpush.msra.mxu2 %v4250_v18 }
 0x26b   : > { %4066 = vmatpush.xpose.msk.msra.mxu1 %vm1303_vm1, %v1442_v61  ;;  %2017 = vmatpush.msrb.mxu0 %v4251_v20 }
 0x26c   : > { %4182 = vmatpush.msra.mxu2 %v4251_v20 }
 0x26d   : > { %2018 = vmatpush.msrb.mxu0 %v4255_v22 }
 0x26e   : > { %4183 = vmatpush.msra.mxu2 %v4255_v22 }
 0x26f   : > { %4067 = vmatpush.xpose.msk.msra.mxu1 %vm1303_vm1, %v1440_v13  ;;  %2019 = vmatpush.msrb.mxu0 %v4256_v25 }
 0x270   : > { %4184 = vmatpush.msra.mxu2 %v4256_v25 }
 0x273   : > { %4068 = vmatpush.xpose.msk.msra.mxu1 %vm1303_vm1, %v1438_v16 }
 0x276   : > { %4069 = vmatmul.msk.f32.vlgmr.msra.gmra.mxu1 %vm1303_vm1, %v4865_v48 }
 0x277   : > { %4152 = vmatpush.msk.msrb.mxu1 %vm1352_vm0, %v3392_v39 }
 0x27e   : > { %4070 = vmatmul.msk.f32.gmra.mxu1 %vm1303_vm1, %v4834_v35 }
 0x286   : > { %4071 = vmatmul.msk.f32.gmra.mxu1 %vm1303_vm1, %v4848_v40 }
 0x28e   : > { %4072 = vmatmul.msk.f32.gmra.mxu1 %vm1303_vm1, %v4858_v46 }
 0x296   : > { %4073 = vmatmul.msk.f32.gmra.mxu1 %vm1303_vm1, %v4822_v30 }
 0x29e   : > { %4074 = vmatmul.msk.f32.gmra.mxu1 %vm1303_vm1, %v4836_v36 }
 0x2a6   : > { %4075 = vmatmul.msk.f32.gmra.mxu1 %vm1303_vm1, %v4850_v42 }
 0x2ae   : > { %4076 = vmatmul.msk.f32.gmra.mxu1 %vm1303_vm1, %v4810_v27 }
 0x2b6   : > { %4077 = vmatmul.msk.f32.gmra.mxu1 %vm1303_vm1, %v4824_v32 }
 0x2be   : > { %4078 = vmatmul.msk.f32.gmra.mxu1 %vm1303_vm1, %v4838_v37 }
 0x2c6   : > { %4079 = vmatmul.msk.f32.gmra.mxu1 %vm1303_vm1, %v4802_v23 }
 0x2ce   : > { %4080 = vmatmul.msk.f32.gmra.mxu1 %vm1303_vm1, %v4812_v28 }
 0x2d6   : > { %4081 = vmatmul.msk.f32.gmra.mxu1 %vm1303_vm1, %v4826_v34  ;;  %v3421_v34 = vmul.f32 %v4290_v43, %v3415_v15 }
 0x2d8   : > { %v4932_v53 = vadd.f32 %v4291_v45, %v3421_v34 }
 0x2de   : > { %4082 = vmatmul.msk.f32.gmra.mxu1 %vm1303_vm1, %v4798_v21 }
 0x2e6   : > { %4083 = vmatmul.msk.f32.gmra.mxu1 %vm1303_vm1, %v4804_v24 }
 0x2ee   : > { %4084 = vmatmul.msk.f32.gmra.mxu1 %vm1303_vm1, %v4814_v29 }
 0x2f3   : > { %v1550_v23 = vpop.f32.mrf.mxu1 }
 0x2f4   : > { %v1598_v28 = vmul.f32 0.5, %v1550_v23  ;;  %v4277_v23 = vpack.i.bf16 %v4848_v40, %v4858_v46  ;;  %v4267_v46 = vpack.i.bf16 %v4850_v42, %v4810_v27  ;;  %v4272_v27 = vpack.i.bf16 %v4822_v30, %v4836_v36 }
 0x2f5   : > { %v4282_v42 = vpack.i.bf16 %v4865_v48, %v4834_v35 }
 0x2f6   : > { %4153 = vmatmul.msk.f32.vlgmr.msrb.gmra.mxu1 %vm1303_vm1, %v4928_v49  ;;  %1614 = vmax.xlane.f32.xlu0 %v1598_v28 }
 0x2fb   : > { %v1553_v21 = vpop.f32.mrf.mxu1 }
 0x2fc   : > { %v1599_v24 = vmul.f32 0.5, %v1553_v21 }
 0x2fe   : > { %1616 = vmax.xlane.f32.xlu1 %v1599_v24  ;;  %4154 = vmatmul.msk.f32.gmra.mxu1 %vm1303_vm1, %v4932_v53 }
 0x303   : > { %v1556_v29 = vpop.f32.mrf.mxu1 }
 0x304   : > { %v1600_v54 = vmul.f32 0.5, %v1556_v29 }
 0x306   : > { %1618 = vmax.xlane.f32.xlu2 %v1600_v54 }
 0x30b   : > { %v1559_v55 = vpop.f32.mrf.mxu1 }
 0x30c   : > { %v4936_v57 = vmul.f32 0.5, %v1559_v55 }
 0x30e   : > { %1620 = vmax.xlane.f32.xlu2 %v4936_v57 }
 0x313   : > { %v1562_v58 = vpop.f32.mrf.mxu1 }
 0x314   : > { %v4939_v61 = vmul.f32 0.5, %v1562_v58 }
 0x316   : > { %1622 = vmax.xlane.f32.xlu0 %v4939_v61 }
 0x31b   : > { %v1565_v62 = vpop.f32.mrf.mxu1 }
 0x31c   : > { %v4942_v63 = vmul.f32 0.5, %v1565_v62 }
 0x31e   : > { %1624 = vmax.xlane.f32.xlu1 %v4942_v63 }
 0x323   : > { %v1568_v2 = vpop.f32.mrf.mxu1 }
 0x324   : > { %v4945_v4 = vmul.f32 0.5, %v1568_v2 }
 0x326   : > { %1626 = vmax.xlane.f32.xlu0 %v4945_v4 }
 0x32b   : > { %v1571_v6 = vpop.f32.mrf.mxu1 }
 0x32c   : > { %v4977_v34 = vmul.f32 0.5, %v1571_v6 }
 0x333   : > { %v1574_v7 = vpop.f32.mrf.mxu1 }
 0x334   : > { %v4983_v6 = vmul.f32 0.5, %v1574_v7 }
 0x33a   : > { %4263 = vrot.lane.b32.xlu0 %v4262_v8, %s4506_s18 }
 0x33b   : > { %v1577_v9 = vpop.f32.mrf.mxu1 }
 0x33c   : > { %v5002_v7 = vmul.f32 0.5, %v1577_v9 }
 0x343   : > { %v4951_v10 = vpop.f32.mrf.mxu1 }
 0x34b   : > { %v1583_v11 = vpop.f32.mrf.mxu1 }
 0x353   : > { %v1586_v12 = vpop.f32.mrf.mxu1 }
 0x35b   : > { %v4953_v13 = vpop.f32.mrf.mxu1 }
 0x35c   : > { %v5020_v9 = vmul.f32 0.5, %v4953_v13 }
 0x363   : > { %v4955_v14 = vpop.f32.mrf.mxu1 }
 0x369   : > { %v1615_v15 = vpop.xlane.xlu0 %1614 }
 0x36a   : > { %v1646_v16 = vsub.f32 %v1598_v28, %v1615_v15 }
 0x36b   : > { %v4957_v17 = vpop.f32.mrf.mxu1 }
 0x36c   : > { %v1662_v18 = vmul.f32 1.442695, %v1646_v16 }
 0x36e   : > { %4309 = vpow2.f32 %v1662_v18 }
 0x371   : > { %v1617_v20 = vpop.xlane.xlu1 %1616 }
 0x372   : > { %v1647_v32 = vsub.f32 %v1599_v24, %v1617_v20 }
 0x373   : > { %v3456_v37 = vpop.f32.mrf.mxu1 }
 0x374   : > { %v4960_v22 = vpop.eup %4309  ;;  %v1664_v25 = vmul.f32 1.442695, %v1647_v32  ;;  %v4962_v39 = vadd.f32 %v4292_v19, %v3456_v37 }
 0x375   : > { %1694 = vadd.xlane.f32.xlu1 %v4960_v22 }
 0x376   : > { %4311 = vpow2.f32 %v1664_v25  ;;  %3464 = vrot.lane.b32.xlu2 %v4962_v39, %s4505_s11 }
 0x379   : > { %v1619_v24 = vpop.xlane.xlu2 %1618 }
 0x37a   : > { %v1648_v29 = vsub.f32 %v1600_v54, %v1619_v24 }
 0x37b   : > { %v3459_v45 = vpop.f32.mrf.mxu1 }
 0x37c   : > { %v4967_v43 = vpop.eup %4311  ;;  %v4970_v47 = vadd.f32 %v4292_v19, %v3459_v45  ;;  %v1666_v2 = vmul.f32 1.442695, %v1648_v29  ;;  %v5006_v19 = vmul.f32 0.5, %v1583_v11 }
 0x37d   : > { %1696 = vadd.xlane.f32.xlu0 %v4967_v43 }
 0x37e   : > { %4313 = vpow2.f32 %v1666_v2 }
 0x381   : > { %v1621_v8 = vpop.xlane.xlu2 %1620 }
 0x382   : > { %v1649_v40 = vsub.f32 %v4936_v57, %v1621_v8  ;;  %v4993_v57 = vmul.f32 0.5, %v1586_v12 }
 0x384   : > { %v1668_v54 = vmul.f32 1.442695, %v1649_v40  ;;  %v4987_v15 = vpop.eup %4313 }
 0x386   : > { %4315 = vpow2.f32 %v1668_v54 }
 0x389   : > { %v1623_v28 = vpop.xlane.xlu0 %1622 }
 0x38a   : > { %v1650_v18 = vsub.f32 %v4939_v61, %v1623_v28 }
 0x38c   : > { %v4990_v16 = vpop.eup %4315  ;;  %v1670_v12 = vmul.f32 1.442695, %v1650_v18 }
 0x38e   : > { %3466 = vrot.lane.b32.xlu1 %v4970_v47, %s4505_s11  ;;  %4317 = vpow2.f32 %v1670_v12  ;;  %s6048_s11 = sld [smem:[#allocation14_spill]] }
 0x391   : > { %4278 = vrot.lane.b32.xlu0 %v4277_v23, %s4506_s18  ;;  %v1625_v20 = vpop.xlane.xlu1 %1624 }
 0x392   : > { %v1651_v30 = vsub.f32 %v4942_v63, %v1625_v20  ;;  %v5024_v63 = vmul.f32 0.5, %v4951_v10  ;;  %v5037_v10 = vmul.f32 0.5, %v4955_v14 }
 0x394   : > { %v1672_v36 = vmul.f32 1.442695, %v1651_v30  ;;  %v5010_v32 = vpop.eup %4317 }
 0x396   : > { %4319 = vpow2.f32 %v1672_v36 }
 0x399   : > { %v1627_v21 = vpop.xlane.xlu0 %1626 }
 0x39a   : > { %v1652_v61 = vsub.f32 %v4945_v4, %v1627_v21 }
 0x39c   : > { %v5013_v35 = vpop.eup %4319  ;;  %v1674_v11 = vmul.f32 1.442695, %v1652_v61 }
 0x39e   : > { %4321 = vpow2.f32 %v1674_v11 }
 0x39f   : > { %1628 = vmax.xlane.f32.xlu2 %v4977_v34 }
 0x3a4   : > { %v5031_v4 = vpop.eup %4321 }
 0x3ac   : > { %v4264_v55 = vpop.permute.xlu0 %4263 }
 0x3ad   : > { %v4265_v58 = vunpack.i.l.bf16 %v4264_v55  ;;  %v4266_v62 = vunpack.i.h.bf16 %v4264_v55  ;;  %v5045_v55 = vmul.f32 0.5, %v4957_v17 }
 0x3af   : > { %2020 = vmatpush.msrb.mxu0 %v4265_v58  ;;  %4185 = vmatpush.msra.mxu2 %v4265_v58 }
 0x3b1   : > { %2021 = vmatpush.msrb.mxu0 %v4266_v62  ;;  %4186 = vmatpush.msra.mxu2 %v4266_v62 }
 0x3b7   : > { %4268 = vrot.lane.b32.xlu2 %v4267_v46, %s4506_s18 }
 0x3b8   : > { %1630 = vmax.xlane.f32.xlu1 %v4983_v6 }
 0x3bb   : > { %1698 = vadd.xlane.f32.xlu0 %v4987_v15 }
 0x3c3   : > { %1700 = vadd.xlane.f32.xlu0 %v4990_v16 }
 0x3cb   : > { %1638 = vmax.xlane.f32.xlu0 %v4993_v57 }
 0x3d0   : > { %v3465_v25 = vpop.permute.xlu2 %3464 }
 0x3d1   : > { %4273 = vrot.lane.b32.xlu1 %v4272_v27, %s4506_s18 }
 0x3d9   : > { %4283 = vrot.lane.b32.xlu1 %v4282_v42, %s4506_s18 }
 0x3e0   : > { %1632 = vmax.xlane.f32.xlu2 %v5002_v7 }
 0x3e8   : > { %1636 = vmax.xlane.f32.xlu2 %v5006_v19  ;;  %v5015_v48 = vpop.xlane.xlu1 %1694 }
 0x3e9   : > { %vm1731_vm4 = vweird.f32 %v5015_v48 }
 0x3f0   : > { %1702 = vadd.xlane.f32.xlu2 %v5010_v32  ;;  %v1697_v14 = vpop.xlane.xlu0 %1696 }
 0x3f1   : > { %vm1746_vm6 = vweird.f32 %v1697_v14 }
 0x3f8   : > { %1704 = vadd.xlane.f32.xlu2 %v5013_v35 }
 0x400   : > { %v3467_v37 = vpop.permute.xlu1 %3466  ;;  %1640 = vmax.xlane.f32.xlu2 %v5020_v9 }
 0x401   : > { %4155 = vmatpush.xpose.msk.msra.mxu1 %vm1303_vm1, %v3467_v37 }
 0x403   : > { %1634 = vmax.xlane.f32.xlu1 %v5024_v63 }
 0x405   : > { %4156 = vmatpush.xpose.msk.msra.mxu1 %vm1303_vm1, %v3465_v25 }
 0x408   : > { %4157 = vmatmul.msk.f32.vlgmr.msra.gmra.mxu1 %vm1303_vm1, %v4962_v39 }
 0x40b   : > { %1706 = vadd.xlane.f32.xlu1 %v5031_v4 }
 0x410   : > { %4158 = vmatmul.msk.f32.gmra.mxu1 %vm1303_vm1, %v4970_v47 }
 0x412   : > { %v1629_v13 = vpop.xlane.xlu2 %1628 }
 0x413   : > { %v1653_v45 = vsub.f32 %v4977_v34, %v1629_v13  ;;  %1642 = vmax.xlane.f32.xlu1 %v5037_v10  ;;  %v4279_v34 = vpop.permute.xlu0 %4278 }
 0x415   : > { %v1676_v23 = vmul.f32 1.442695, %v1653_v45 }
 0x417   : > { %4323 = vpow2.f32 %v1676_v23  ;;  %v1737_v23 = vand.u32 2147483648, %v5015_v48 }
 0x418   : > { %4325 = vrcp.f32 %v5015_v48 }
 0x419   : > { %4327 = vrcp.f32 %v1697_v14 }
 0x41a   : > { %v4269_v28 = vpop.permute.xlu2 %4268 }
 0x41b   : > { %v4270_v21 = vunpack.i.l.bf16 %v4269_v28  ;;  %v4271_v29 = vunpack.i.h.bf16 %v4269_v28 }
 0x41d   : > { %v5041_v24 = vpop.eup %4323  ;;  %2022 = vmatpush.msrb.mxu0 %v4270_v21  ;;  %4187 = vmatpush.msra.mxu2 %v4270_v21  ;;  %v1752_v21 = vand.u32 2147483648, %v1697_v14 }
 0x41e   : > { %1708 = vadd.xlane.f32.xlu0 %v5041_v24  ;;  %v4326_v40 = vpop.eup %4325 }
 0x41f   : > { %2023 = vmatpush.msrb.mxu0 %v4271_v29  ;;  %4188 = vmatpush.msra.mxu2 %v4271_v29  ;;  %v4328_v46 = vpop.eup %4327  ;;  %v1727_v17 = vmul.f32 %v4326_v40, %v5015_v48  ;;  %vm1732_vm2 = vweird.f32 %v4326_v40 }
 0x420   : > { %v1742_v27 = vmul.f32 %v4328_v46, %v1697_v14  ;;  %vm1747_vm3 = vweird.f32 %v4328_v46  ;;  %vm5068_vm5 = vmor %vm1731_vm4, %vm1732_vm2 }
 0x421   : > { %v1728_v42 = vsub.f32 1.0, %v1727_v17  ;;  %vm5074_vm7 = vmor %vm1746_vm6, %vm1747_vm3 }
 0x423   : > { %v1729_v20 = vmul.f32 %v4326_v40, %v1728_v42 }
 0x425   : > { %v1730_v25 = vadd.f32 %v4326_v40, %v1729_v20  ;;  %v4281_v20 = vunpack.i.h.bf16 %v4279_v34 }
 0x426   : > { %1644 = vmax.xlane.f32.xlu0 %v5045_v55 }
 0x42b   : > { %v1631_v58 = vpop.xlane.xlu1 %1630 }
 0x42c   : > { %v1654_v62 = vsub.f32 %v4983_v6, %v1631_v58  ;;  %v1743_v6 = vsub.f32 1.0, %v1742_v27  ;;  %v1735_v58 = vand.u32 2147483647, %v5015_v48 }
 0x42e   : > { %v1678_v2 = vmul.f32 1.442695, %v1654_v62  ;;  %v5050_v8 = vpop.xlane.xlu0 %1698  ;;  %v1744_v30 = vmul.f32 %v4328_v46, %v1743_v6  ;;  %v1750_v62 = vand.u32 2147483647, %v1697_v14  ;;  %v1734_v6 = vsel %vm5068_vm5, %v4326_v40, %v1730_v25 }
 0x42f   : > { %v1738_v14 = vor.u32 1.1754944e-38, %v1737_v23  ;;  %vm1736_vm8 = vcmp.eq.f32.partialorder %v1735_v58, 8.507059e+37  ;;  %vm1761_vm11 = vweird.f32 %v5050_v8 }
 0x430   : > { %4329 = vpow2.f32 %v1678_v2  ;;  %v1745_v13 = vadd.f32 %v4328_v46, %v1744_v30  ;;  %v4280_v2 = vunpack.i.l.bf16 %v4279_v34  ;;  %v1753_v30 = vor.u32 1.1754944e-38, %v1752_v21 }
 0x431   : > { %4331 = vrcp.f32 %v5050_v8  ;;  %vm1751_vm9 = vcmp.eq.f32.partialorder %v1750_v62, 8.507059e+37 }
 0x432   : > { %v1749_v48 = vsel %vm5074_vm7, %v4328_v46, %v1745_v13  ;;  %v1767_v46 = vand.u32 2147483648, %v5050_v8  ;;  %v1765_v13 = vand.u32 2147483647, %v5050_v8 }
 0x434   : > { %v1768_v58 = vor.u32 1.1754944e-38, %v1767_v46  ;;  %vm1766_vm13 = vcmp.eq.f32.partialorder %v1765_v13, 8.507059e+37 }
 0x436   : > { %v5052_v54 = vpop.eup %4329  ;;  %v5057_v18 = vpop.xlane.xlu0 %1700 }
 0x437   : > { %1710 = vadd.xlane.f32.xlu2 %v5052_v54  ;;  %v5059_v12 = vpop.eup %4331  ;;  %4333 = vrcp.f32 %v5057_v18  ;;  %vm1776_vm15 = vweird.f32 %v5057_v18 }
 0x438   : > { %v1757_v36 = vmul.f32 %v5059_v12, %v5050_v8  ;;  %vm1762_vm10 = vweird.f32 %v5059_v12 }
 0x439   : > { %vm1763_vm12 = vmor %vm1761_vm11, %vm1762_vm10 }
 0x43a   : > { %v1758_v37 = vsub.f32 1.0, %v1757_v36 }
 0x43c   : > { %v1759_v27 = vmul.f32 %v5059_v12, %v1758_v37  ;;  %v1754_v37 = vsel %vm1751_vm9, %v1753_v30, %v1749_v48 }
 0x43d   : > { %v5064_v45 = vpop.eup %4333  ;;  %v1755_v25 = vmul.f32 %v4967_v43, %v1754_v37 }
 0x43e   : > { %v1772_v42 = vmul.f32 %v5064_v45, %v5057_v18  ;;  %v1760_v29 = vadd.f32 %v5059_v12, %v1759_v27  ;;  %vm1777_vm14 = vweird.f32 %v5064_v45  ;;  %v1782_v27 = vand.u32 2147483648, %v5057_v18 }
 0x43f   : > { %vm1778_vm2 = vmor %vm1776_vm15, %vm1777_vm14 }
 0x440   : > { %v1764_v21 = vsel %vm1763_vm12, %v5059_v12, %v1760_v29  ;;  %v1780_v12 = vand.u32 2147483647, %v5057_v18  ;;  %v1783_v48 = vor.u32 1.1754944e-38, %v1782_v27  ;;  %vm3501_vm12 = vcmask 89088  }
 0x441   : > { %v1769_v43 = vsel %vm1766_vm13, %v1768_v58, %v1764_v21 }
 0x442   : > { %vm1781_vm3 = vcmp.eq.f32.partialorder %v1780_v12, 8.507059e+37 }
 0x443   : > { %v4274_v61 = vpop.permute.xlu1 %4273 }
 0x444   : > { %v4275_v11 = vunpack.i.l.bf16 %v4274_v61  ;;  %v4276_v28 = vunpack.i.h.bf16 %v4274_v61 }
 0x446   : > { %2024 = vmatpush.msrb.mxu0 %v4275_v11  ;;  %4189 = vmatpush.msra.mxu2 %v4275_v11  ;;  %v1739_v11 = vsel %vm1736_vm8, %v1738_v14, %v1734_v6  ;;  %v1770_v6 = vmul.f32 %v4987_v15, %v1769_v43 }
 0x447   : > { %v1740_v34 = vmul.f32 %v4960_v22, %v1739_v11 }
 0x448   : > { %2025 = vmatpush.msrb.mxu0 %v4276_v28  ;;  %4190 = vmatpush.msra.mxu2 %v4276_v28  ;;  %v1773_v28 = vsub.f32 1.0, %v1772_v42 }
 0x44a   : > { %2026 = vmatpush.msrb.mxu0 %v4280_v2  ;;  %4191 = vmatpush.msra.mxu2 %v4280_v2  ;;  %v1774_v23 = vmul.f32 %v5064_v45, %v1773_v28  ;;  %v1639_v2 = vpop.xlane.xlu0 %1638 }
 0x44b   : > { %v4284_v36 = vpop.permute.xlu1 %4283  ;;  %v1658_v42 = vsub.f32 %v4993_v57, %v1639_v2 }
 0x44c   : > { %2027 = vmatpush.msrb.mxu0 %v4281_v20  ;;  %4192 = vmatpush.msra.mxu2 %v4281_v20  ;;  %v4285_v61 = vunpack.i.l.bf16 %v4284_v36  ;;  %v4286_v40 = vunpack.i.h.bf16 %v4284_v36  ;;  %v1775_v17 = vadd.f32 %v5064_v45, %v1774_v23 }
 0x44d   : > { %v1686_v14 = vmul.f32 1.442695, %v1658_v42 }
 0x44e   : > { %2028 = vmatpush.msrb.mxu0 %v4285_v61  ;;  %4193 = vmatpush.msra.mxu2 %v4285_v61 }
 0x450   : > { %2029 = vmatpush.msrb.mxu0 %v4286_v40  ;;  %4194 = vmatpush.msra.mxu2 %v4286_v40 }
 0x451   : > { %2030 = vmatmul.f32.vlgmr.msrb.gmra.mxu0 %v1740_v34  ;;  %2033 = vmatmul.f32.vlgmr.msra.gmra.mxu2 %v1755_v25 }
 0x453   : > { %v1633_v62 = vpop.xlane.xlu2 %1632 }
 0x454   : > { %v1655_v22 = vsub.f32 %v5002_v7, %v1633_v62  ;;  %v1779_v7 = vsel %vm1778_vm2, %v5064_v45, %v1775_v17 }
 0x455   : > { %v1784_v36 = vsel %vm1781_vm3, %v1783_v48, %v1779_v7  ;;  %vm3505_vm3 = vcmask 83968  }
 0x456   : > { %v1680_v8 = vmul.f32 1.442695, %v1655_v22  ;;  %v1785_v15 = vmul.f32 %v4990_v16, %v1784_v36 }
 0x458   : > { %4335 = vpow2.f32 %v1680_v8 }
 0x459   : > { %2036 = vmatmul.f32.gmra.mxu2 %v1770_v6  ;;  %4337 = vpow2.f32 %v1686_v14 }
 0x45b   : > { %v1637_v20 = vpop.xlane.xlu2 %1636 }
 0x45c   : > { %v1657_v30 = vsub.f32 %v5006_v19, %v1637_v20 }
 0x45e   : > { %v5104_v61 = vpop.eup %4335  ;;  %v1684_v57 = vmul.f32 1.442695, %v1657_v30 }
 0x45f   : > { %1712 = vadd.xlane.f32.xlu1 %v5104_v61  ;;  %v5108_v45 = vpop.eup %4337 }
 0x460   : > { %4339 = vpow2.f32 %v1684_v57 }
 0x461   : > { %2039 = vmatmul.f32.gmra.mxu2 %v1785_v15 }
 0x463   : > { %v1703_v18 = vpop.xlane.xlu2 %1702 }
 0x464   : > { %4341 = vrcp.f32 %v1703_v18  ;;  %v1797_v40 = vand.u32 2147483648, %v1703_v18  ;;  %v1795_v16 = vand.u32 2147483647, %v1703_v18  ;;  %vm1791_vm5 = vweird.f32 %v1703_v18 }
 0x466   : > { %v5110_v11 = vpop.eup %4339  ;;  %v1798_v13 = vor.u32 1.1754944e-38, %v1797_v40  ;;  %vm1796_vm7 = vcmp.eq.f32.partialorder %v1795_v16, 8.507059e+37 }
 0x467   : > { %1716 = vadd.xlane.f32.xlu0 %v5110_v11  ;;  %1718 = vadd.xlane.f32.xlu1 %v5108_v45 }
 0x46a   : > { %v4342_v19 = vpop.eup %4341 }
 0x46b   : > { %v1787_v37 = vmul.f32 %v4342_v19, %v1703_v18  ;;  %v1705_v28 = vpop.xlane.xlu2 %1704  ;;  %vm1792_vm4 = vweird.f32 %v4342_v19 }
 0x46c   : > { %4343 = vrcp.f32 %v1705_v28  ;;  %vm1793_vm6 = vmor %vm1791_vm5, %vm1792_vm4  ;;  %v1812_v43 = vand.u32 2147483648, %v1705_v28  ;;  %v1810_v27 = vand.u32 2147483647, %v1705_v28  ;;  %vm1806_vm9 = vweird.f32 %v1705_v28 }
 0x46d   : > { %v1788_v29 = vsub.f32 1.0, %v1787_v37 }
 0x46e   : > { %v1813_v7 = vor.u32 1.1754944e-38, %v1812_v43  ;;  %vm1811_vm11 = vcmp.eq.f32.partialorder %v1810_v27, 8.507059e+37 }
 0x46f   : > { %v1789_v46 = vmul.f32 %v4342_v19, %v1788_v29 }
 0x471   : > { %v1790_v34 = vadd.f32 %v4342_v19, %v1789_v46 }
 0x472   : > { %v4344_v25 = vpop.eup %4343 }
 0x473   : > { %v1802_v23 = vmul.f32 %v4344_v25, %v1705_v28  ;;  %v1794_v21 = vsel %vm1793_vm6, %v4342_v19, %v1790_v34  ;;  %vm1807_vm8 = vweird.f32 %v4344_v25  ;;  %v1641_v42 = vpop.xlane.xlu2 %1640 }
 0x474   : > { %v1799_v58 = vsel %vm1796_vm7, %v1798_v13, %v1794_v21  ;;  %vm1808_vm10 = vmor %vm1806_vm9, %vm1807_vm8  ;;  %v1659_v48 = vsub.f32 %v5020_v9, %v1641_v42 }
 0x475   : > { %v1803_v62 = vsub.f32 1.0, %v1802_v23  ;;  %v1800_v2 = vmul.f32 %v5010_v32, %v1799_v58 }
 0x476   : > { %v1635_v22 = vpop.xlane.xlu1 %1634  ;;  %v1688_v36 = vmul.f32 1.442695, %v1659_v48 }
 0x477   : > { %v1804_v17 = vmul.f32 %v4344_v25, %v1803_v62  ;;  %v1656_v8 = vsub.f32 %v5024_v63, %v1635_v22  ;;  %2042 = vmatmul.f32.gmra.mxu2 %v1800_v2 }
 0x479   : > { %v1682_v6 = vmul.f32 1.442695, %v1656_v8  ;;  %v1805_v12 = vadd.f32 %v4344_v25, %v1804_v17 }
 0x47b   : > { %4345 = vpow2.f32 %v1682_v6  ;;  %v1809_v14 = vsel %vm1808_vm10, %v4344_v25, %v1805_v12 }
 0x47c   : > { %v1814_v32 = vsel %vm1811_vm11, %v1813_v7, %v1809_v14 }
 0x47d   : > { %v1815_v20 = vmul.f32 %v5013_v35, %v1814_v32 }
 0x47e   : > { %v1707_v30 = vpop.xlane.xlu1 %1706 }
 0x47f   : > { %4347 = vrcp.f32 %v1707_v30  ;;  %2045 = vmatmul.f32.gmra.mxu2 %v1815_v20  ;;  %v1827_v46 = vand.u32 2147483648, %v1707_v30  ;;  %v1825_v34 = vand.u32 2147483647, %v1707_v30  ;;  %vm1821_vm14 = vweird.f32 %v1707_v30 }
 0x480   : > { %4349 = vpow2.f32 %v1688_v36 }
 0x481   : > { %v5118_v63 = vpop.eup %4345  ;;  %v1828_v13 = vor.u32 1.1754944e-38, %v1827_v46  ;;  %vm1826_vm2 = vcmp.eq.f32.partialorder %v1825_v34, 8.507059e+37 }
 0x482   : > { %1714 = vadd.xlane.f32.xlu2 %v5118_v63 }
 0x485   : > { %v4348_v57 = vpop.eup %4347  ;;  %v3493_v15 = vpop.f32.mrf.mxu1 }
 0x486   : > { %v1817_v18 = vmul.f32 %v4348_v57, %v1707_v30  ;;  %v5121_v9 = vmul.f32 0.5, %v3493_v15  ;;  %v1643_v19 = vpop.xlane.xlu1 %1642  ;;  %v5126_v29 = vpop.eup %4349  ;;  %vm1822_vm13 = vweird.f32 %v4348_v57  ;;  %v1169_v15 = vld [vmem:[%s4546_s29] sm:$0xf] }
 0x487   : > { %v1660_v37 = vsub.f32 %v5037_v10, %v1643_v19  ;;  %vm1823_vm15 = vmor %vm1821_vm14, %vm1822_vm13  ;;  %4085 = vmatpush.msk.msra.mxu3 %vm1352_vm0, %v1169_v15 }
 0x488   : > { %v1818_v28 = vsub.f32 1.0, %v1817_v18  ;;  %v3502_v35 = vsel %vm3501_vm12, %v5121_v9, -inf }
 0x489   : > { %v1690_v40 = vmul.f32 1.442695, %v1660_v37  ;;  %3503 = vmax.xlane.f32.xlu1 %v3502_v35 }
 0x48a   : > { %v1819_v16 = vmul.f32 %v4348_v57, %v1818_v28  ;;  %1720 = vadd.xlane.f32.xlu2 %v5126_v29 }
 0x48b   : > { %4351 = vpow2.f32 %v1690_v40 }
 0x48c   : > { %v1820_v25 = vadd.f32 %v4348_v57, %v1819_v16 }
 0x48d   : > { %v3496_v2 = vpop.f32.mrf.mxu1 }
 0x48e   : > { %v1824_v10 = vsel %vm1823_vm15, %v4348_v57, %v1820_v25  ;;  %v5133_v22 = vmul.f32 0.5, %v3496_v2 }
 0x48f   : > { %v1829_v23 = vsel %vm1826_vm2, %v1828_v13, %v1824_v10 }
 0x490   : > { %v1830_v21 = vmul.f32 %v5031_v4, %v1829_v23  ;;  %v3506_v27 = vsel %vm3505_vm3, %v5133_v22, -inf }
 0x491   : > { %v5130_v58 = vpop.eup %4351  ;;  %v1709_v62 = vpop.xlane.xlu0 %1708 }
 0x492   : > { %4353 = vrcp.f32 %v1709_v62  ;;  %1722 = vadd.xlane.f32.xlu0 %v5130_v58  ;;  %2048 = vmatmul.f32.gmra.mxu2 %v1830_v21  ;;  %v1842_v12 = vand.u32 2147483648, %v1709_v62  ;;  %v1840_v48 = vand.u32 2147483647, %v1709_v62  ;;  %vm1836_vm5 = vweird.f32 %v1709_v62 }
 0x494   : > { %v1843_v32 = vor.u32 1.1754944e-38, %v1842_v12  ;;  %vm1841_vm7 = vcmp.eq.f32.partialorder %v1840_v48, 8.507059e+37 }
 0x498   : > { %v4354_v43 = vpop.eup %4353 }
 0x499   : > { %v1832_v17 = vmul.f32 %v4354_v43, %v1709_v62  ;;  %v1645_v8 = vpop.xlane.xlu0 %1644  ;;  %vm1837_vm4 = vweird.f32 %v4354_v43 }
 0x49a   : > { %v1661_v42 = vsub.f32 %v5045_v55, %v1645_v8  ;;  %3507 = vmax.xlane.f32.xlu0 %v3506_v27  ;;  %vm1838_vm6 = vmor %vm1836_vm5, %vm1837_vm4 }
 0x49b   : > { %v1833_v4 = vsub.f32 1.0, %v1832_v17 }
 0x49c   : > { %v1692_v6 = vmul.f32 1.442695, %v1661_v42 }
 0x49d   : > { %v1834_v7 = vmul.f32 %v4354_v43, %v1833_v4 }
 0x49e   : > { %4355 = vpow2.f32 %v1692_v6 }
 0x49f   : > { %v1835_v14 = vadd.f32 %v4354_v43, %v1834_v7 }
 0x4a1   : > { %v1839_v20 = vsel %vm1838_vm6, %v4354_v43, %v1835_v14 }
 0x4a2   : > { %v1844_v30 = vsel %vm1841_vm7, %v1843_v32, %v1839_v20 }
 0x4a3   : > { %v1845_v36 = vmul.f32 %v5041_v24, %v1844_v30 }
 0x4a4   : > { %v5139_v57 = vpop.eup %4355 }
 0x4a5   : > { %1724 = vadd.xlane.f32.xlu2 %v5139_v57  ;;  %2051 = vmatmul.f32.gmra.mxu2 %v1845_v36 }
 0x4aa   : > { %v1711_v55 = vpop.xlane.xlu2 %1710 }
 0x4ab   : > { %4357 = vrcp.f32 %v1711_v55  ;;  %v1857_v28 = vand.u32 2147483648, %v1711_v55  ;;  %v1855_v24 = vand.u32 2147483647, %v1711_v55  ;;  %vm1851_vm9 = vweird.f32 %v1711_v55 }
 0x4ad   : > { %v1858_v46 = vor.u32 1.1754944e-38, %v1857_v28  ;;  %vm1856_vm11 = vcmp.eq.f32.partialorder %v1855_v24, 8.507059e+37 }
 0x4ae   : > { %3553 = vrot.lane.b32.xlu0 %v4970_v47, %s4506_s18 }
 0x4b1   : > { %v4358_v18 = vpop.eup %4357 }
 0x4b2   : > { %v1847_v19 = vmul.f32 %v4358_v18, %v1711_v55  ;;  %vm1852_vm8 = vweird.f32 %v4358_v18 }
 0x4b3   : > { %vm1853_vm10 = vmor %vm1851_vm9, %vm1852_vm8 }
 0x4b4   : > { %v1848_v37 = vsub.f32 1.0, %v1847_v19 }
 0x4b6   : > { %v1849_v35 = vmul.f32 %v4358_v18, %v1848_v37 }
 0x4b8   : > { %v1850_v40 = vadd.f32 %v4358_v18, %v1849_v35 }
 0x4ba   : > { %v1854_v16 = vsel %vm1853_vm10, %v4358_v18, %v1850_v40 }
 0x4bb   : > { %v1859_v34 = vsel %vm1856_vm11, %v1858_v46, %v1854_v16 }
 0x4bc   : > { %v1860_v25 = vmul.f32 %v5052_v54, %v1859_v34 }
 0x4be   : > { %2054 = vmatmul.f32.gmra.mxu2 %v1860_v25 }
 0x4ce   : > { %v2031_v47 = vpop.f32.mrf.mxu0 }
 0x4cf   : > { %4086 = vmatmul.msk.f32.vlgmr.msra.gmra.mxu3 %vm1303_vm1, %v2031_v47 }
 0x4d2   : > { %v1713_v13 = vpop.xlane.xlu1 %1712 }
 0x4d3   : > { %4359 = vrcp.f32 %v1713_v13  ;;  %v1872_v43 = vand.u32 2147483648, %v1713_v13  ;;  %v1870_v8 = vand.u32 2147483647, %v1713_v13  ;;  %vm1866_vm14 = vweird.f32 %v1713_v13 }
 0x4d4   : > { %v2034_v10 = vpop.f32.mrf.mxu2 }
 0x4d5   : > { %v1873_v27 = vor.u32 1.1754944e-38, %v1872_v43  ;;  %vm1871_vm2 = vcmp.eq.f32.partialorder %v1870_v8, 8.507059e+37 }
 0x4d7   : > { %4087 = vmatmul.msk.f32.gmra.mxu3 %vm1303_vm1, %v2034_v10 }
 0x4d9   : > { %v4360_v23 = vpop.eup %4359 }
 0x4da   : > { %v1862_v21 = vmul.f32 %v4360_v23, %v1713_v13  ;;  %vm1867_vm13 = vweird.f32 %v4360_v23  ;;  %v1717_v7 = vpop.xlane.xlu0 %1716  ;;  %v5152_v48 = vpop.xlane.xlu1 %1718 }
 0x4db   : > { %vm1868_vm15 = vmor %vm1866_vm14, %vm1867_vm13  ;;  %4361 = vrcp.f32 %v1717_v7  ;;  %v1902_v43 = vand.u32 2147483648, %v1717_v7  ;;  %vm1896_vm9 = vweird.f32 %v1717_v7  ;;  %vm1911_vm14 = vweird.f32 %v5152_v48 }
 0x4dc   : > { %v1863_v62 = vsub.f32 1.0, %v1862_v21  ;;  %v2037_v2 = vpop.f32.mrf.mxu2 }
 0x4de   : > { %v1864_v17 = vmul.f32 %v4360_v23, %v1863_v62 }
 0x4df   : > { %4088 = vmatmul.msk.f32.gmra.mxu3 %vm1303_vm1, %v2037_v2 }
 0x4e0   : > { %v1865_v54 = vadd.f32 %v4360_v23, %v1864_v17 }
 0x4e1   : > { %v4362_v14 = vpop.eup %4361 }
 0x4e2   : > { %v1869_v42 = vsel %vm1868_vm15, %v4360_v23, %v1865_v54  ;;  %v1892_v20 = vmul.f32 %v4362_v14, %v1717_v7  ;;  %vm1897_vm7 = vweird.f32 %v4362_v14  ;;  %v1900_v54 = vand.u32 2147483647, %v1717_v7 }
 0x4e3   : > { %v1874_v4 = vsel %vm1871_vm2, %v1873_v27, %v1869_v42  ;;  %vm1898_vm10 = vmor %vm1896_vm9, %vm1897_vm7  ;;  %vm3562_vm9 = vcmask 1042432  }
 0x4e4   : > { %v1875_v6 = vmul.f32 %v5104_v61, %v1874_v4  ;;  %v2040_v12 = vpop.f32.mrf.mxu2  ;;  %v1893_v55 = vsub.f32 1.0, %v1892_v20  ;;  %vm1901_vm11 = vcmp.eq.f32.partialorder %v1900_v54, 8.507059e+37 }
 0x4e6   : > { %2057 = vmatmul.f32.gmra.mxu2 %v1875_v6  ;;  %v1894_v40 = vmul.f32 %v4362_v14, %v1893_v55  ;;  %v1917_v55 = vand.u32 2147483648, %v5152_v48 }
 0x4e7   : > { %4089 = vmatmul.msk.f32.gmra.mxu3 %vm1303_vm1, %v2040_v12  ;;  %v1903_v12 = vor.u32 1.1754944e-38, %v1902_v43 }
 0x4e8   : > { %v1895_v21 = vadd.f32 %v4362_v14, %v1894_v40 }
 0x4ea   : > { %v1899_v6 = vsel %vm1898_vm10, %v4362_v14, %v1895_v21  ;;  %v1915_v14 = vand.u32 2147483647, %v5152_v48 }
 0x4ec   : > { %vm1916_vm2 = vcmp.eq.f32.partialorder %v1915_v14, 8.507059e+37 }
 0x4f5   : > { %v1715_v32 = vpop.xlane.xlu2 %1714 }
 0x4f6   : > { %4363 = vrcp.f32 %v1715_v32  ;;  %v1887_v46 = vand.u32 2147483648, %v1715_v32  ;;  %v1885_v34 = vand.u32 2147483647, %v1715_v32  ;;  %vm1881_vm5 = vweird.f32 %v1715_v32 }
 0x4f7   : > { %4365 = vrcp.f32 %v5152_v48 }
 0x4f8   : > { %vm1886_vm8 = vcmp.eq.f32.partialorder %v1885_v34, 8.507059e+37 }
 0x4fa   : > { %v2043_v30 = vpop.f32.mrf.mxu2 }
 0x4fb   : > { %4090 = vmatmul.msk.f32.gmra.mxu3 %vm1303_vm1, %v2043_v30 }
 0x4fc   : > { %v4364_v36 = vpop.eup %4363  ;;  %v3504_v61 = vpop.xlane.xlu1 %3503 }
 0x4fd   : > { %v5156_v15 = vpop.eup %4365  ;;  %v1877_v18 = vmul.f32 %v4364_v36, %v1715_v32  ;;  %v3509_v19 = vsub.f32 %v5121_v9, %v3504_v61  ;;  %v5159_v37 = vpop.xlane.xlu2 %1720  ;;  %vm1882_vm4 = vweird.f32 %v4364_v36  ;;  %v1888_v9 = vor.u32 1.1754944e-38, %v1887_v46 }
 0x4fe   : > { %v1907_v24 = vmul.f32 %v5156_v15, %v5152_v48  ;;  %4367 = vrcp.f32 %v5159_v37  ;;  %vm1883_vm6 = vmor %vm1881_vm5, %vm1882_vm4  ;;  %v1904_v32 = vsel %vm1901_vm11, %v1903_v12, %v1899_v6  ;;  %vm1912_vm13 = vweird.f32 %v5156_v15 }
 0x4ff   : > { %v1878_v28 = vsub.f32 1.0, %v1877_v18  ;;  %v3511_v35 = vmul.f32 1.442695, %v3509_v19  ;;  %v1905_v61 = vmul.f32 %v5110_v11, %v1904_v32  ;;  %vm1913_vm15 = vmor %vm1911_vm14, %vm1912_vm13  ;;  %v1932_v11 = vand.u32 2147483648, %v5159_v37 }
 0x500   : > { %v1908_v13 = vsub.f32 1.0, %v1907_v24  ;;  %v1918_v24 = vor.u32 1.1754944e-38, %v1917_v55  ;;  %vm1926_vm5 = vweird.f32 %v5159_v37  ;;  %v1930_v34 = vand.u32 2147483647, %v5159_v37 }
 0x501   : > { %v1879_v16 = vmul.f32 %v4364_v36, %v1878_v28  ;;  %4369 = vpow2.f32 %v3511_v35 }
 0x502   : > { %v2046_v25 = vpop.f32.mrf.mxu2  ;;  %v1909_v42 = vmul.f32 %v5156_v15, %v1908_v13  ;;  %vm1931_vm7 = vcmp.eq.f32.partialorder %v1930_v34, 8.507059e+37 }
 0x503   : > { %4091 = vmatmul.msk.f32.gmra.mxu3 %vm1303_vm1, %v2046_v25  ;;  %v1880_v47 = vadd.f32 %v4364_v36, %v1879_v16 }
 0x504   : > { %v4368_v62 = vpop.eup %4367  ;;  %v1910_v7 = vadd.f32 %v5156_v15, %v1909_v42 }
 0x505   : > { %v5165_v10 = vpop.xlane.xlu0 %1722  ;;  %v1884_v23 = vsel %vm1883_vm6, %v4364_v36, %v1880_v47  ;;  %v1922_v4 = vmul.f32 %v4368_v62, %v5159_v37  ;;  %vm1927_vm4 = vweird.f32 %v4368_v62 }
 0x506   : > { %v1889_v2 = vsel %vm1886_vm8, %v1888_v9, %v1884_v23  ;;  %4371 = vrcp.f32 %v5165_v10  ;;  %v1914_v35 = vsel %vm1913_vm15, %v5156_v15, %v1910_v7  ;;  %vm1928_vm6 = vmor %vm1926_vm5, %vm1927_vm4  ;;  %v1933_v23 = vor.u32 1.1754944e-38, %v1932_v11 }
 0x507   : > { %v5167_v17 = vpop.eup %4369  ;;  %v1890_v8 = vmul.f32 %v5118_v63, %v1889_v2  ;;  %v1923_v63 = vsub.f32 1.0, %v1922_v4  ;;  %v1947_v37 = vand.u32 2147483648, %v5165_v10  ;;  %vm1941_vm10 = vweird.f32 %v5165_v10 }
 0x508   : > { %v3515_v27 = vsel %vm3501_vm12, %v5167_v17, 0.0 }
 0x509   : > { %3516 = vadd.xlane.f32.xlu1 %v3515_v27  ;;  %2060 = vmatmul.f32.gmra.mxu2 %v1890_v8  ;;  %v1924_v19 = vmul.f32 %v4368_v62, %v1923_v63  ;;  %v1945_v8 = vand.u32 2147483647, %v5165_v10  ;;  %v1948_v4 = vor.u32 1.1754944e-38, %v1947_v37 }
 0x50b   : > { %v1925_v16 = vadd.f32 %v4368_v62, %v1924_v19  ;;  %vm1946_vm11 = vcmp.eq.f32.partialorder %v1945_v8, 8.507059e+37 }
 0x50c   : > { %v4372_v30 = vpop.eup %4371 }
 0x50d   : > { %v3508_v20 = vpop.xlane.xlu0 %3507  ;;  %v1937_v28 = vmul.f32 %v4372_v30, %v5165_v10  ;;  %v1929_v13 = vsel %vm1928_vm6, %v4368_v62, %v1925_v16  ;;  %vm1942_vm8 = vweird.f32 %v4372_v30 }
 0x50e   : > { %v3510_v36 = vsub.f32 %v5133_v22, %v3508_v20  ;;  %v1919_v22 = vsel %vm1916_vm2, %v1918_v24, %v1914_v35  ;;  %v1934_v21 = vsel %vm1931_vm7, %v1933_v23, %v1929_v13 }
 0x50f   : > { %v1938_v40 = vsub.f32 1.0, %v1937_v28  ;;  %v1920_v48 = vmul.f32 %v5108_v45, %v1919_v22  ;;  %v1935_v43 = vmul.f32 %v5126_v29, %v1934_v21 }
 0x510   : > { %v3513_v18 = vmul.f32 1.442695, %v3510_v36 }
 0x511   : > { %2063 = vmatmul.f32.gmra.mxu2 %v1905_v61  ;;  %v1939_v47 = vmul.f32 %v4372_v30, %v1938_v40  ;;  %v5206_v61 = vld [vmem:[%s4551_s3] ss:$0 sm:$0xff] }
 0x512   : > { %4373 = vpow2.f32 %v3513_v18 }
 0x513   : > { %v1940_v45 = vadd.f32 %v4372_v30, %v1939_v47 }
 0x515   : > { %v2049_v46 = vpop.f32.mrf.mxu2 }
 0x516   : > { %4092 = vmatmul.msk.f32.gmra.mxu3 %vm1303_vm1, %v2049_v46 }
 0x518   : > { %v5190_v25 = vpop.eup %4373  ;;  %v1725_v15 = vpop.xlane.xlu2 %1724 }
 0x519   : > { %4375 = vrcp.f32 %v1725_v15  ;;  %2066 = vmatmul.f32.gmra.mxu2 %v1920_v48  ;;  %v3518_v9 = vsel %vm3505_vm3, %v5190_v25, 0.0  ;;  %vm1943_vm3 = vmor %vm1941_vm10, %vm1942_vm8  ;;  %v1962_v32 = vand.u32 2147483648, %v1725_v15  ;;  %vm1956_vm14 = vweird.f32 %v1725_v15 }
 0x51a   : > { %3519 = vadd.xlane.f32.xlu2 %v3518_v9  ;;  %v1944_v62 = vsel %vm1943_vm3, %v4372_v30, %v1940_v45  ;;  %v1960_v63 = vand.u32 2147483647, %v1725_v15 }
 0x51b   : > { %v1949_v12 = vsel %vm1946_vm11, %v1948_v4, %v1944_v62  ;;  %v1963_v30 = vor.u32 1.1754944e-38, %v1962_v32 }
 0x51c   : > { %v1950_v10 = vmul.f32 %v5130_v58, %v1949_v12  ;;  %vm1961_vm2 = vcmp.eq.f32.partialorder %v1960_v63, 8.507059e+37 }
 0x51f   : > { %v4376_v2 = vpop.eup %4375 }
 0x520   : > { %v1952_v54 = vmul.f32 %v4376_v2, %v1725_v15  ;;  %v3554_v27 = vpop.permute.xlu0 %3553  ;;  %vm1957_vm13 = vweird.f32 %v4376_v2 }
 0x521   : > { %2069 = vmatmul.f32.gmra.mxu2 %v1935_v43  ;;  %4159 = vmatpush.msk.msrb.mxu1 %vm3562_vm9, %v3554_v27  ;;  %vm1958_vm15 = vmor %vm1956_vm14, %vm1957_vm13 }
 0x522   : > { %v1953_v42 = vsub.f32 1.0, %v1952_v54  ;;  %3551 = vrot.lane.b32.xlu1 %v4962_v39, %s4506_s18  ;;  %s6051_s18 = sld [smem:[#allocation11_spill]] }
 0x524   : > { %v1954_v6 = vmul.f32 %v4376_v2, %v1953_v42 }
 0x526   : > { %v1955_v29 = vadd.f32 %v4376_v2, %v1954_v6 }
 0x528   : > { %v2052_v20 = vpop.f32.mrf.mxu2  ;;  %v1959_v7 = vsel %vm1958_vm15, %v4376_v2, %v1955_v29 }
 0x529   : > { %2072 = vmatmul.f32.gmra.mxu2 %v1950_v10  ;;  %4093 = vmatmul.msk.f32.gmra.mxu3 %vm1303_vm1, %v2052_v20  ;;  %v1964_v39 = vsel %vm1961_vm2, %v1963_v30, %v1959_v7 }
 0x52a   : > { %v1965_v36 = vmul.f32 %v5139_v57, %v1964_v39 }
 0x531   : > { %2075 = vmatmul.f32.gmra.mxu2 %v1965_v36 }
 0x541   : > { %v2055_v55 = vpop.f32.mrf.mxu2 }
 0x542   : > { %4094 = vmatmul.msk.f32.gmra.mxu3 %vm1303_vm1, %v2055_v55 }
 0x552   : > { %v2150_v58 = vpop.f32.mrf.mxu3 }
 0x553   : > { %v2151_v14 = vadd.f32 %v5206_v61, %v2150_v58 }
 0x555   : > { %v5210_v18 = vadd.f32 %v2151_v14, %v4735_v31 }
 0x557   : > { %v2214_v19 = vsel %vm1303_vm1, %v5210_v18, 0.0 }
 0x558   : > { %2215 = vadd.xlane.f32.xlu2 %v2214_v19 }
 0x55a   : > { %v2153_v28 = vpop.f32.mrf.mxu3 }
 0x55b   : > { %v2154_v35 = vadd.f32 %v5206_v61, %v2153_v28 }
 0x55d   : > { %v5216_v57 = vadd.f32 %v2154_v35, %v4741_v38 }
 0x55f   : > { %v2217_v24 = vsel %vm1303_vm1, %v5216_v57, 0.0 }
 0x560   : > { %2218 = vadd.xlane.f32.xlu2 %v2217_v24 }
 0x562   : > { %v2156_v22 = vpop.f32.mrf.mxu3 }
 0x563   : > { %v2157_v40 = vadd.f32 %v5206_v61, %v2156_v22 }
 0x565   : > { %v5222_v31 = vadd.f32 %v2157_v40, %v4747_v44 }
 0x567   : > { %v2220_v46 = vsel %vm1303_vm1, %v5222_v31, 0.0 }
 0x568   : > { %2221 = vadd.xlane.f32.xlu0 %v2220_v46 }
 0x569   : > { %v2058_v16 = vpop.f32.mrf.mxu2 }
 0x56a   : > { %v2159_v11 = vpop.f32.mrf.mxu3  ;;  %4095 = vmatmul.msk.f32.gmra.mxu3 %vm1303_vm1, %v2058_v16 }
 0x56b   : > { %v2160_v38 = vadd.f32 %v5206_v61, %v2159_v11 }
 0x56d   : > { %v5229_v48 = vadd.f32 %v2160_v38, %v4751_v50 }
 0x56f   : > { %v2223_v34 = vsel %vm1303_vm1, %v5229_v48, 0.0 }
 0x570   : > { %2224 = vadd.xlane.f32.xlu2 %v2223_v34 }
 0x57c   : > { %v3517_v15 = vpop.xlane.xlu1 %3516 }
 0x57d   : > { %4377 = vrcp.f32 %v3517_v15  ;;  %v3532_v54 = vand.u32 2147483648, %v3517_v15  ;;  %vm3526_vm5 = vweird.f32 %v3517_v15  ;;  %v3530_v27 = vand.u32 2147483647, %v3517_v15 }
 0x57e   : > { %v2162_v44 = vpop.f32.mrf.mxu3 }
 0x57f   : > { %v2163_v47 = vadd.f32 %v5206_v61, %v2162_v44  ;;  %v3533_v6 = vor.u32 1.1754944e-38, %v3532_v54  ;;  %vm3531_vm7 = vcmp.eq.f32.partialorder %v3530_v27, 8.507059e+37 }
 0x581   : > { %v5235_v9 = vadd.f32 %v2163_v47, %v4759_v56 }
 0x583   : > { %v4378_v13 = vpop.eup %4377  ;;  %v2226_v23 = vsel %vm1303_vm1, %v5235_v9, 0.0 }
 0x584   : > { %v3522_v21 = vmul.f32 %v4378_v13, %v3517_v15  ;;  %2227 = vadd.xlane.f32.xlu1 %v2226_v23  ;;  %vm3527_vm4 = vweird.f32 %v4378_v13 }
 0x585   : > { %vm3528_vm6 = vmor %vm3526_vm5, %vm3527_vm4 }
 0x586   : > { %v3523_v50 = vsub.f32 1.0, %v3522_v21  ;;  %v2165_v45 = vpop.f32.mrf.mxu3 }
 0x587   : > { %v2166_v37 = vadd.f32 %v5206_v61, %v2165_v45 }
 0x588   : > { %v3524_v2 = vmul.f32 %v4378_v13, %v3523_v50 }
 0x589   : > { %v5241_v43 = vadd.f32 %v2166_v37, %v4767_v0 }
 0x58a   : > { %v3525_v8 = vadd.f32 %v4378_v13, %v3524_v2 }
 0x58b   : > { %v2229_v56 = vsel %vm1303_vm1, %v5241_v43, 0.0 }
 0x58c   : > { %v2061_v62 = vpop.f32.mrf.mxu2  ;;  %2230 = vadd.xlane.f32.xlu2 %v2229_v56  ;;  %v3529_v4 = vsel %vm3528_vm6, %v4378_v13, %v3525_v8 }
 0x58d   : > { %v3520_v42 = vpop.xlane.xlu2 %3519  ;;  %4096 = vmatmul.msk.f32.gmra.mxu3 %vm1303_vm1, %v2061_v62  ;;  %v3534_v0 = vsel %vm3531_vm7, %v3533_v6, %v3529_v4 }
 0x58e   : > { %4379 = vrcp.f32 %v3520_v42  ;;  %v3535_v10 = vmul.f32 %v5167_v17, %v3534_v0  ;;  %v3547_v7 = vand.u32 2147483648, %v3520_v42  ;;  %v3545_v36 = vand.u32 2147483647, %v3520_v42 }
 0x58f   : > { %vm3541_vm10 = vweird.f32 %v3520_v42 }
 0x590   : > { %v3548_v14 = vor.u32 1.1754944e-38, %v3547_v7  ;;  %vm3546_vm11 = vcmp.eq.f32.partialorder %v3545_v36, 8.507059e+37 }
 0x594   : > { %v4380_v12 = vpop.eup %4379  ;;  %v3552_v29 = vpop.permute.xlu1 %3551 }
 0x595   : > { %v2064_v32 = vpop.f32.mrf.mxu2  ;;  %v3537_v63 = vmul.f32 %v4380_v12, %v3520_v42  ;;  %3580 = vmatpush.msrb.mxu1 %v3552_v29  ;;  %vm3542_vm8 = vweird.f32 %v4380_v12 }
 0x596   : > { %4097 = vmatmul.msk.f32.gmra.mxu3 %vm1303_vm1, %v2064_v32  ;;  %4160 = vmatmul.msk.f32.vlgmr.msrb.gmra.mxu1 %vm3501_vm12, %v3535_v10  ;;  %vm3543_vm3 = vmor %vm3541_vm10, %vm3542_vm8 }
 0x597   : > { %v3538_v20 = vsub.f32 1.0, %v3537_v63 }
 0x599   : > { %v3539_v30 = vmul.f32 %v4380_v12, %v3538_v20  ;;  %v2168_v39 = vpop.f32.mrf.mxu3 }
 0x59a   : > { %v2169_v55 = vadd.f32 %v5206_v61, %v2168_v39 }
 0x59b   : > { %v3540_v58 = vadd.f32 %v4380_v12, %v3539_v30 }
 0x59c   : > { %v5251_v17 = vadd.f32 %v2169_v55, %v4773_v3  ;;  %v4507_v3 = vmov 4.0   ;;  %v3394_v55 = vld [vmem:[%s4624_s24] sm:$0xf] }
 0x59d   : > { %v2067_v19 = vpop.f32.mrf.mxu2  ;;  %v3544_v28 = vsel %vm3543_vm3, %v4380_v12, %v3540_v58  ;;  %4381 = vrcp.f32 %v4507_v3  ;;  %4162 = vmatpush.msk.msra.mxu1 %vm1352_vm0, %v3394_v55 }
 0x59e   : > { %4098 = vmatmul.msk.f32.gmra.mxu3 %vm1303_vm1, %v2067_v19  ;;  %v2232_v35 = vsel %vm1303_vm1, %v5251_v17, 0.0  ;;  %v3549_v24 = vsel %vm3546_vm11, %v3548_v14, %v3544_v28 }
 0x59f   : > { %2233 = vadd.xlane.f32.xlu2 %v2232_v35  ;;  %v3550_v22 = vmul.f32 %v5190_v25, %v3549_v24 }
 0x5a1   : > { %4161 = vmatmul.msk.f32.gmra.mxu1 %vm3501_vm12, %v3550_v22 }
 0x5a3   : > { %v4382_v11 = vpop.eup %4381 }
 0x5a4   : > { %v2263_v38 = vmul.f32 4.0, %v4382_v11  ;;  %vm2267_vm13 = vweird.f32 %v4382_v11 }
 0x5a5   : > { %v2070_v40 = vpop.f32.mrf.mxu2 }
 0x5a6   : > { %4099 = vmatmul.msk.f32.gmra.mxu3 %vm1303_vm1, %v2070_v40  ;;  %v2264_v15 = vsub.f32 1.0, %v2263_v38 }
 0x5a8   : > { %v2265_v44 = vmul.f32 %v4382_v11, %v2264_v15 }
 0x5aa   : > { %v2266_v25 = vadd.f32 %v4382_v11, %v2265_v44 }
 0x5ac   : > { %v2171_v34 = vpop.f32.mrf.mxu3  ;;  %v5265_v21 = vsel %vm2267_vm13, %v4382_v11, %v2266_v25 }
 0x5ad   : > { %v2073_v46 = vpop.f32.mrf.mxu2  ;;  %v2172_v42 = vadd.f32 %v5206_v61, %v2171_v34 }
 0x5ae   : > { %4100 = vmatmul.msk.f32.gmra.mxu3 %vm1303_vm1, %v2073_v46 }
 0x5af   : > { %v5289_v12 = vadd.f32 %v2172_v42, %v4777_v5 }
 0x5b1   : > { %v2235_v32 = vsel %vm1303_vm1, %v5289_v12, 0.0 }
 0x5b5   : > { %v2076_v16 = vpop.f32.mrf.mxu2 }
 0x5b6   : > { %4101 = vmatmul.msk.f32.gmra.mxu3 %vm1303_vm1, %v2076_v16 }
 0x5c5   : > { %v2174_v47 = vpop.f32.mrf.mxu3 }
 0x5c6   : > { %v2175_v13 = vadd.f32 %v5206_v61, %v2174_v47 }
 0x5c8   : > { %v5263_v23 = vadd.f32 %v2175_v13, %v4733_v26 }
 0x5ca   : > { %v2238_v50 = vsel %vm1303_vm1, %v5263_v23, 0.0 }
 0x5cb   : > { %2239 = vadd.xlane.f32.xlu1 %v2238_v50  ;;  %v2216_v45 = vpop.xlane.xlu2 %2215 }
 0x5cc   : > { %v2269_v37 = vmul.f32 %v5265_v21, %v2216_v45 }
 0x5ce   : > { %v5271_v2 = vsub.f32 %v5210_v18, %v2269_v37 }
 0x5d0   : > { %v2301_v8 = vmul.f32 %v5271_v2, %v5271_v2 }
 0x5d2   : > { %v2317_v54 = vsel %vm1303_vm1, %v2301_v8, 0.0 }
 0x5d3   : > { %2318 = vadd.xlane.f32.xlu2 %v2317_v54  ;;  %v2219_v26 = vpop.xlane.xlu2 %2218 }
 0x5d4   : > { %v2270_v56 = vmul.f32 %v5265_v21, %v2219_v26 }
 0x5d6   : > { %v5278_v27 = vsub.f32 %v5216_v57, %v2270_v56 }
 0x5d8   : > { %v2302_v62 = vmul.f32 %v5278_v27, %v5278_v27 }
 0x5da   : > { %v2320_v18 = vsel %vm1303_vm1, %v2302_v62, 0.0 }
 0x5db   : > { %v2222_v4 = vpop.xlane.xlu0 %2221  ;;  %2321 = vadd.xlane.f32.xlu2 %v2320_v18 }
 0x5dc   : > { %v2271_v6 = vmul.f32 %v5265_v21, %v2222_v4 }
 0x5de   : > { %v5286_v0 = vsub.f32 %v5222_v31, %v2271_v6 }
 0x5e0   : > { %v2303_v57 = vmul.f32 %v5286_v0, %v5286_v0 }
 0x5e2   : > { %v2323_v29 = vsel %vm1303_vm1, %v2303_v57, 0.0  ;;  %v1173_v57 = vld [vmem:[%s4566_s19] sm:$0xf] }
 0x5e3   : > { %2324 = vadd.xlane.f32.xlu0 %v2323_v29  ;;  %2236 = vadd.xlane.f32.xlu2 %v2235_v32  ;;  %v2225_v10 = vpop.xlane.xlu2 %2224 }
 0x5e4   : > { %v2272_v63 = vmul.f32 %v5265_v21, %v2225_v10  ;;  %4102 = vmatpush.msk.msra.mxu0 %vm1352_vm0, %v1173_v57 }
 0x5e6   : > { %v5298_v31 = vsub.f32 %v5229_v48, %v2272_v63 }
 0x5e8   : > { %v2304_v5 = vmul.f32 %v5298_v31, %v5298_v31 }
 0x5ea   : > { %v2326_v20 = vsel %vm1303_vm1, %v2304_v5, 0.0 }
 0x5eb   : > { %2327 = vadd.xlane.f32.xlu2 %v2326_v20 }
 0x5ed   : > { %v2177_v7 = vpop.f32.mrf.mxu3 }
 0x5ee   : > { %v2178_v30 = vadd.f32 %v5206_v61, %v2177_v7 }
 0x5f0   : > { %v5305_v39 = vadd.f32 %v2178_v30, %v4755_v52 }
 0x5f2   : > { %v2241_v36 = vsel %vm1303_vm1, %v5305_v39, 0.0 }
 0x5f3   : > { %2242 = vadd.xlane.f32.xlu0 %v2241_v36 }
 0x5f7   : > { %v2228_v48 = vpop.xlane.xlu1 %2227 }
 0x5f8   : > { %v2273_v58 = vmul.f32 %v5265_v21, %v2228_v48 }
 0x5fa   : > { %v5313_v14 = vsub.f32 %v5235_v9, %v2273_v58 }
 0x5fc   : > { %v2305_v19 = vmul.f32 %v5313_v14, %v5313_v14 }
 0x5fe   : > { %v2329_v28 = vsel %vm1303_vm1, %v2305_v19, 0.0 }
 0x5ff   : > { %2330 = vadd.xlane.f32.xlu1 %v2329_v28  ;;  %v2231_v52 = vpop.xlane.xlu2 %2230 }
 0x600   : > { %v2274_v35 = vmul.f32 %v5265_v21, %v2231_v52 }
 0x602   : > { %v5320_v24 = vsub.f32 %v5241_v43, %v2274_v35 }
 0x604   : > { %v2306_v22 = vmul.f32 %v5320_v24, %v5320_v24 }
 0x606   : > { %v2332_v40 = vsel %vm1303_vm1, %v2306_v22, 0.0 }
 0x607   : > { %2333 = vadd.xlane.f32.xlu0 %v2332_v40 }
 0x610   : > { %v2180_v9 = vpop.f32.mrf.mxu3 }
 0x611   : > { %v2181_v46 = vadd.f32 %v5206_v61, %v2180_v9 }
 0x612   : > { %v2234_v3 = vpop.xlane.xlu2 %2233 }
 0x613   : > { %v2275_v16 = vmul.f32 %v5265_v21, %v2234_v3  ;;  %v3582_v11 = vpop.f32.mrf.mxu1  ;;  %v5328_v38 = vadd.f32 %v2181_v46, %v4753_v51 }
 0x614   : > { %4163 = vmatmul.msk.f32.vlgmr.msra.gmra.mxu1 %vm1303_vm1, %v3582_v11 }
 0x615   : > { %v5332_v43 = vsub.f32 %v5251_v17, %v2275_v16  ;;  %v2244_v34 = vsel %vm1303_vm1, %v5328_v38, 0.0  ;;  %v5381_v16 = vld [vmem:[%s6040_s28] ss:$0 sm:$0xff]  ;;  %s6052_s28 = sld [smem:[#allocation9_spill]] }
 0x616   : > { %2245 = vadd.xlane.f32.xlu2 %v2244_v34 }
 0x617   : > { %v2307_v47 = vmul.f32 %v5332_v43, %v5332_v43 }
 0x619   : > { %v2183_v15 = vpop.f32.mrf.mxu3  ;;  %v2335_v13 = vsel %vm1303_vm1, %v2307_v47, 0.0 }
 0x61a   : > { %v2184_v44 = vadd.f32 %v5206_v61, %v2183_v15 }
 0x61c   : > { %v5340_v25 = vadd.f32 %v2184_v44, %v4739_v33 }
 0x61e   : > { %v2247_v51 = vsel %vm1303_vm1, %v5340_v25, 0.0  ;;  %v3585_v17 = vpop.f32.mrf.mxu1  ;;  %2336 = vadd.xlane.f32.xlu2 %v2335_v13 }
 0x61f   : > { %2248 = vadd.xlane.f32.xlu1 %v2247_v51  ;;  %4164 = vmatmul.msk.f32.gmra.mxu1 %vm1303_vm1, %v3585_v17 }
 0x621   : > { %v2186_v50 = vpop.f32.mrf.mxu3 }
 0x622   : > { %v2187_v45 = vadd.f32 %v5206_v61, %v2186_v50 }
 0x624   : > { %v5348_v37 = vadd.f32 %v2187_v45, %v4763_v60 }
 0x626   : > { %v2250_v33 = vsel %vm1303_vm1, %v5348_v37, 0.0 }
 0x627   : > { %2251 = vadd.xlane.f32.xlu0 %v2250_v33 }
 0x629   : > { %v2189_v8 = vpop.f32.mrf.mxu3 }
 0x62a   : > { %v2190_v54 = vadd.f32 %v5206_v61, %v2189_v8 }
 0x62c   : > { %v5354_v26 = vadd.f32 %v2190_v54, %v4761_v59 }
 0x62e   : > { %v2253_v56 = vsel %vm1303_vm1, %v5354_v26, 0.0 }
 0x62f   : > { %2254 = vadd.xlane.f32.xlu2 %v2253_v56 }
 0x631   : > { %v2192_v62 = vpop.f32.mrf.mxu3 }
 0x632   : > { %v2193_v44 = vadd.f32 %v5206_v61, %v2192_v62 }
 0x639   : > { %v2195_v4 = vpop.f32.mrf.mxu3 }
 0x63a   : > { %v2196_v59 = vadd.f32 %v5206_v61, %v2195_v4  ;;  %v5397_v61 = vadd.f32 %v2193_v44, %v4745_v41 }
 0x63c   : > { %v5370_v5 = vadd.f32 %v2196_v59, %v4769_v1  ;;  %v2256_v4 = vsel %vm1303_vm1, %v5397_v61, 0.0 }
 0x63e   : > { %v2240_v42 = vpop.xlane.xlu1 %2239 }
 0x63f   : > { %v2277_v18 = vmul.f32 %v5265_v21, %v2240_v42 }
 0x641   : > { %v5360_v60 = vsub.f32 %v5263_v23, %v2277_v18  ;;  %v2259_v23 = vsel %vm1303_vm1, %v5370_v5, 0.0 }
 0x643   : > { %v2309_v6 = vmul.f32 %v5360_v60, %v5360_v60 }
 0x645   : > { %v2341_v29 = vsel %vm1303_vm1, %v2309_v6, 0.0 }
 0x646   : > { %2342 = vadd.xlane.f32.xlu0 %v2341_v29  ;;  %v2319_v32 = vpop.xlane.xlu2 %2318 }
 0x647   : > { %v2365_v10 = vmul.f32 %v2319_v32, %v5265_v21 }
 0x649   : > { %v2381_v63 = vadd.f32 1e-05, %v2365_v10 }
 0x64b   : > { %4383 = vrsqrt.f32 %v2381_v63  ;;  %vm2403_vm15 = vweird.f32 %v2381_v63 }
 0x64e   : > { %2260 = vadd.xlane.f32.xlu0 %v2259_v23  ;;  %v2322_v20 = vpop.xlane.xlu2 %2321 }
 0x64f   : > { %v2366_v7 = vmul.f32 %v2322_v20, %v5265_v21 }
 0x651   : > { %v4384_v30 = vpop.eup %4383  ;;  %v2382_v36 = vadd.f32 1e-05, %v2366_v7 }
 0x652   : > { %v2398_v55 = vmul.f32 %v4384_v30, %v2381_v63  ;;  %vm2404_vm14 = vweird.f32 %v4384_v30 }
 0x653   : > { %4385 = vrsqrt.f32 %v2382_v36  ;;  %vm2405_vm2 = vmor %vm2403_vm15, %vm2404_vm14  ;;  %vm2413_vm5 = vweird.f32 %v2382_v36 }
 0x654   : > { %v2399_v48 = vmul.f32 %v4384_v30, %v2398_v55 }
 0x656   : > { %v2400_v58 = vmul.f32 0.5, %v2399_v48  ;;  %v2325_v19 = vpop.xlane.xlu0 %2324  ;;  %v2237_v28 = vpop.xlane.xlu2 %2236 }
 0x657   : > { %v2367_v1 = vmul.f32 %v2325_v19, %v5265_v21  ;;  %v2276_v52 = vmul.f32 %v5265_v21, %v2237_v28 }
 0x658   : > { %v2401_v35 = vsub.f32 1.5, %v2400_v58 }
 0x659   : > { %v4386_v22 = vpop.eup %4385  ;;  %v2383_v40 = vadd.f32 1e-05, %v2367_v1  ;;  %v5378_v9 = vsub.f32 %v5289_v12, %v2276_v52  ;;  %v5389_v12 = vld [vmem:[%s6041_s23] ss:$0 sm:$0xff]  ;;  %s6053_s23 = sld [smem:[#allocation10_spill]] }
 0x65a   : > { %v2402_v46 = vmul.f32 %v4384_v30, %v2401_v35  ;;  %v2408_v3 = vmul.f32 %v4386_v22, %v2382_v36  ;;  %vm2414_vm4 = vweird.f32 %v4386_v22 }
 0x65b   : > { %4387 = vrsqrt.f32 %v2383_v40  ;;  %v2308_v11 = vmul.f32 %v5378_v9, %v5378_v9  ;;  %vm2415_vm6 = vmor %vm2413_vm5, %vm2414_vm4  ;;  %vm2423_vm8 = vweird.f32 %v2383_v40 }
 0x65c   : > { %v2406_v34 = vsel %vm2405_vm2, %v4384_v30, %v2402_v46  ;;  %v2409_v15 = vmul.f32 %v4386_v22, %v2408_v3 }
 0x65d   : > { %v2557_v47 = vmul.f32 %v2406_v34, %v5271_v2  ;;  %v2338_v51 = vsel %vm1303_vm1, %v2308_v11, 0.0 }
 0x65e   : > { %v2410_v13 = vmul.f32 0.5, %v2409_v15  ;;  %2339 = vadd.xlane.f32.xlu1 %v2338_v51  ;;  %v2328_v17 = vpop.xlane.xlu2 %2327 }
 0x65f   : > { %v2576_v50 = vmul.f32 %v5381_v16, %v2557_v47  ;;  %v2368_v45 = vmul.f32 %v2328_v17, %v5265_v21 }
 0x660   : > { %v2411_v33 = vsub.f32 1.5, %v2410_v13 }
 0x661   : > { %v4388_v8 = vpop.eup %4387  ;;  %v2384_v54 = vadd.f32 1e-05, %v2368_v45  ;;  %v5394_v56 = vadd.f32 %v5389_v12, %v2576_v50 }
 0x662   : > { %v2412_v2 = vmul.f32 %v4386_v22, %v2411_v33  ;;  %v2418_v62 = vmul.f32 %v4388_v8, %v2383_v40  ;;  %vm2424_vm7 = vweird.f32 %v4388_v8 }
 0x663   : > { %4389 = vrsqrt.f32 %v2384_v54  ;;  %4103 = vmatmul.msk.f32.vlgmr.msra.gmra.mxu0 %vm1303_vm1, %v5394_v56  ;;  %vm2425_vm10 = vmor %vm2423_vm8, %vm2424_vm7  ;;  %vm2433_vm11 = vweird.f32 %v2384_v54 }
 0x664   : > { %v2416_v42 = vsel %vm2415_vm6, %v4386_v22, %v2412_v2  ;;  %v2419_v18 = vmul.f32 %v4388_v8, %v2418_v62 }
 0x665   : > { %v2558_v6 = vmul.f32 %v2416_v42, %v5278_v27 }
 0x666   : > { %v2420_v57 = vmul.f32 0.5, %v2419_v18  ;;  %v2243_v59 = vpop.xlane.xlu0 %2242  ;;  %2257 = vadd.xlane.f32.xlu1 %v2256_v4 }
 0x667   : > { %v2278_v41 = vmul.f32 %v5265_v21, %v2243_v59  ;;  %v2577_v29 = vmul.f32 %v5381_v16, %v2558_v6 }
 0x668   : > { %v2421_v32 = vsub.f32 1.5, %v2420_v57 }
 0x669   : > { %v4390_v10 = vpop.eup %4389  ;;  %v5407_v63 = vsub.f32 %v5305_v39, %v2278_v41  ;;  %v5410_v23 = vadd.f32 %v5389_v12, %v2577_v29 }
 0x66a   : > { %v2422_v20 = vmul.f32 %v4388_v8, %v2421_v32  ;;  %v2428_v7 = vmul.f32 %v4390_v10, %v2384_v54  ;;  %vm2434_vm3 = vweird.f32 %v4390_v10 }
 0x66b   : > { %4104 = vmatmul.msk.f32.gmra.mxu0 %vm1303_vm1, %v5410_v23  ;;  %v2310_v27 = vmul.f32 %v5407_v63, %v5407_v63  ;;  %vm2435_vm13 = vmor %vm2433_vm11, %vm2434_vm3  ;;  %vm3628_vm3 = vcmask 26624   ;;  %vm2749_vm11 = vcmask 130048  }
 0x66c   : > { %v2426_v30 = vsel %vm2425_vm10, %v4388_v8, %v2422_v20  ;;  %v2429_v36 = vmul.f32 %v4390_v10, %v2428_v7 }
 0x66d   : > { %v2344_v55 = vsel %vm1303_vm1, %v2310_v27, 0.0  ;;  %v2559_v39 = vmul.f32 %v2426_v30, %v5286_v0  ;;  %v4296_v30 = vld [vmem:[%s6042_s26] ss:$0 sm:$0xff]  ;;  %s6054_s26 = sld [smem:[#allocation18_spill]] }
 0x66e   : > { %v2430_v48 = vmul.f32 0.5, %v2429_v36  ;;  %2345 = vadd.xlane.f32.xlu2 %v2344_v55 }
 0x66f   : > { %v2578_v58 = vmul.f32 %v5381_v16, %v2559_v39 }
 0x670   : > { %v2431_v19 = vsub.f32 1.5, %v2430_v48 }
 0x671   : > { %v5420_v28 = vadd.f32 %v5389_v12, %v2578_v58 }
 0x672   : > { %v2432_v1 = vmul.f32 %v4390_v10, %v2431_v19  ;;  %v2331_v52 = vpop.xlane.xlu1 %2330 }
 0x673   : > { %v2369_v35 = vmul.f32 %v2331_v52, %v5265_v21  ;;  %4105 = vmatmul.msk.f32.gmra.mxu0 %vm1303_vm1, %v5420_v28 }
 0x674   : > { %v2436_v22 = vsel %vm2435_vm13, %v4390_v10, %v2432_v1 }
 0x675   : > { %v2385_v0 = vadd.f32 1e-05, %v2369_v35  ;;  %v2560_v40 = vmul.f32 %v2436_v22, %v5298_v31 }
 0x677   : > { %4391 = vrsqrt.f32 %v2385_v0  ;;  %v2579_v46 = vmul.f32 %v5381_v16, %v2560_v40  ;;  %vm2443_vm15 = vweird.f32 %v2385_v0 }
 0x679   : > { %v5428_v3 = vadd.f32 %v5389_v12, %v2579_v46 }
 0x67a   : > { %v2334_v11 = vpop.xlane.xlu0 %2333 }
 0x67b   : > { %v2370_v34 = vmul.f32 %v2334_v11, %v5265_v21  ;;  %4106 = vmatmul.msk.f32.gmra.mxu0 %vm1303_vm1, %v5428_v3 }
 0x67d   : > { %v4392_v15 = vpop.eup %4391  ;;  %v2386_v44 = vadd.f32 1e-05, %v2370_v34 }
 0x67e   : > { %v2438_v47 = vmul.f32 %v4392_v15, %v2385_v0  ;;  %vm2444_vm14 = vweird.f32 %v4392_v15 }
 0x67f   : > { %4393 = vrsqrt.f32 %v2386_v44  ;;  %vm2445_vm2 = vmor %vm2443_vm15, %vm2444_vm14  ;;  %vm2453_vm5 = vweird.f32 %v2386_v44 }
 0x680   : > { %v2439_v51 = vmul.f32 %v4392_v15, %v2438_v47 }
 0x682   : > { %v2440_v13 = vmul.f32 0.5, %v2439_v51 }
 0x684   : > { %v2441_v17 = vsub.f32 1.5, %v2440_v13 }
 0x685   : > { %v4394_v31 = vpop.eup %4393 }
 0x686   : > { %v2442_v50 = vmul.f32 %v4392_v15, %v2441_v17  ;;  %v2448_v45 = vmul.f32 %v4394_v31, %v2386_v44  ;;  %vm2454_vm4 = vweird.f32 %v4394_v31 }
 0x687   : > { %vm2455_vm6 = vmor %vm2453_vm5, %vm2454_vm4 }
 0x688   : > { %v2446_v33 = vsel %vm2445_vm2, %v4392_v15, %v2442_v50  ;;  %v2449_v8 = vmul.f32 %v4394_v31, %v2448_v45 }
 0x689   : > { %v2246_v54 = vpop.xlane.xlu2 %2245  ;;  %v2561_v2 = vmul.f32 %v2446_v33, %v5313_v14 }
 0x68a   : > { %v2450_v62 = vmul.f32 0.5, %v2449_v8  ;;  %v2279_v42 = vmul.f32 %v5265_v21, %v2246_v54 }
 0x68b   : > { %v2580_v18 = vmul.f32 %v5381_v16, %v2561_v2 }
 0x68c   : > { %v2451_v4 = vsub.f32 1.5, %v2450_v62  ;;  %v5437_v6 = vsub.f32 %v5328_v38, %v2279_v42  ;;  %v1176_v62 = vld [vmem:[%s6043_s14 + $0x8] sm:$0xff] }
 0x68d   : > { %v5440_v57 = vadd.f32 %v5389_v12, %v2580_v18  ;;  %2812 = vmatpush.msrb.mxu3 %v1176_v62 }
 0x68e   : > { %v2452_v59 = vmul.f32 %v4394_v31, %v2451_v4  ;;  %v2311_v41 = vmul.f32 %v5437_v6, %v5437_v6 }
 0x68f   : > { %4107 = vmatmul.msk.f32.gmra.mxu0 %vm1303_vm1, %v5440_v57 }
 0x690   : > { %v2456_v14 = vsel %vm2455_vm6, %v4394_v31, %v2452_v59  ;;  %v2347_v29 = vsel %vm1303_vm1, %v2311_v41, 0.0  ;;  %v1175_v59 = vld [vmem:[%s6043_s14] sm:$0xff] }
 0x691   : > { %2348 = vadd.xlane.f32.xlu1 %v2347_v29  ;;  %v2562_v38 = vmul.f32 %v2456_v14, %v5320_v24  ;;  %v2337_v20 = vpop.xlane.xlu2 %2336  ;;  %v3617_v55 = vpop.f32.mrf.mxu1  ;;  %2813 = vmatpush.msrb.mxu3 %v1175_v59 }
 0x692   : > { %v2249_v32 = vpop.xlane.xlu1 %2248  ;;  %v2371_v7 = vmul.f32 %v2337_v20, %v5265_v21  ;;  %v3618_v24 = vadd.f32 %v4296_v30, %v3617_v55 }
 0x693   : > { %v2280_v10 = vmul.f32 %v5265_v21, %v2249_v32  ;;  %v2581_v27 = vmul.f32 %v5381_v16, %v2562_v38 }
 0x694   : > { %v2387_v39 = vadd.f32 1e-05, %v2371_v7  ;;  %v5468_v35 = vadd.f32 %v3618_v24, %v4928_v49 }
 0x695   : > { %v5453_v36 = vsub.f32 %v5340_v25, %v2280_v10  ;;  %v5456_v48 = vadd.f32 %v5389_v12, %v2581_v27 }
 0x696   : > { %4395 = vrsqrt.f32 %v2387_v39  ;;  %v3625_v34 = vsel %vm1303_vm1, %v5468_v35, 0.0  ;;  %vm2463_vm8 = vweird.f32 %v2387_v39 }
 0x697   : > { %v2312_v58 = vmul.f32 %v5453_v36, %v5453_v36  ;;  %4108 = vmatmul.msk.f32.gmra.mxu0 %vm1303_vm1, %v5456_v48 }
 0x699   : > { %v2350_v19 = vsel %vm1303_vm1, %v2312_v58, 0.0 }
 0x69a   : > { %v2252_v1 = vpop.xlane.xlu0 %2251  ;;  %2351 = vadd.xlane.f32.xlu2 %v2350_v19  ;;  %v5510_v19 = vld [vmem:[%s6044_s1] ss:$0 sm:$0xff]  ;;  %s6055_s1 = sld [smem:[#allocation21_spill]] }
 0x69b   : > { %v2281_v25 = vmul.f32 %v5265_v21, %v2252_v1 }
 0x69c   : > { %v4396_v22 = vpop.eup %4395  ;;  %v3620_v51 = vpop.f32.mrf.mxu1 }
 0x69d   : > { %v5465_v52 = vsub.f32 %v5348_v37, %v2281_v25  ;;  %v2458_v0 = vmul.f32 %v4396_v22, %v2387_v39  ;;  %vm2464_vm7 = vweird.f32 %v4396_v22  ;;  %v3621_v50 = vadd.f32 %v4296_v30, %v3620_v51 }
 0x69e   : > { %vm2465_vm10 = vmor %vm2463_vm8, %vm2464_vm7 }
 0x69f   : > { %v2313_v40 = vmul.f32 %v5465_v52, %v5465_v52  ;;  %v2459_v46 = vmul.f32 %v4396_v22, %v2458_v0 }
 0x6a1   : > { %v2353_v11 = vsel %vm1303_vm1, %v2313_v40, 0.0  ;;  %v2460_v44 = vmul.f32 0.5, %v2459_v46 }
 0x6a2   : > { %2354 = vadd.xlane.f32.xlu0 %v2353_v11  ;;  %3626 = vadd.xlane.f32.xlu2 %v3625_v34  ;;  %v2255_v15 = vpop.xlane.xlu2 %2254 }
 0x6a3   : > { %v2282_v37 = vmul.f32 %v5265_v21, %v2255_v15  ;;  %v2461_v47 = vsub.f32 1.5, %v2460_v44 }
 0x6a5   : > { %v5477_v49 = vsub.f32 %v5354_v26, %v2282_v37  ;;  %v2462_v13 = vmul.f32 %v4396_v22, %v2461_v47  ;;  %v5485_v26 = vadd.f32 %v3621_v50, %v4932_v53 }
 0x6a7   : > { %v2314_v17 = vmul.f32 %v5477_v49, %v5477_v49  ;;  %v2466_v31 = vsel %vm2465_vm10, %v4396_v22, %v2462_v13  ;;  %v3629_v2 = vsel %vm3628_vm3, %v5485_v26, 0.0 }
 0x6a8   : > { %v2563_v33 = vmul.f32 %v2466_v31, %v5332_v43 }
 0x6a9   : > { %v2356_v45 = vsel %vm1303_vm1, %v2314_v17, 0.0 }
 0x6aa   : > { %2357 = vadd.xlane.f32.xlu1 %v2356_v45  ;;  %v2582_v8 = vmul.f32 %v5381_v16, %v2563_v33 }
 0x6ac   : > { %v5488_v54 = vadd.f32 %v5389_v12, %v2582_v8 }
 0x6ae   : > { %4109 = vmatmul.msk.f32.gmra.mxu0 %vm1303_vm1, %v5488_v54 }
 0x6b2   : > { %3630 = vadd.xlane.f32.xlu1 %v3629_v2 }
 0x6b9   : > { %v2343_v42 = vpop.xlane.xlu0 %2342 }
 0x6ba   : > { %v2373_v53 = vmul.f32 %v2343_v42, %v5265_v21 }
 0x6bc   : > { %v2389_v14 = vadd.f32 1e-05, %v2373_v53 }
 0x6be   : > { %4397 = vrsqrt.f32 %v2389_v14  ;;  %vm2483_vm4 = vweird.f32 %v2389_v14 }
 0x6c1   : > { %v2261_v43 = vpop.xlane.xlu0 %2260 }
 0x6c2   : > { %v2284_v18 = vmul.f32 %v5265_v21, %v2261_v43 }
 0x6c4   : > { %v5498_v4 = vsub.f32 %v5370_v5, %v2284_v18  ;;  %v4398_v38 = vpop.eup %4397 }
 0x6c5   : > { %v2478_v7 = vmul.f32 %v4398_v38, %v2389_v14  ;;  %vm2484_vm14 = vweird.f32 %v4398_v38 }
 0x6c6   : > { %v2316_v41 = vmul.f32 %v5498_v4, %v5498_v4  ;;  %vm2485_vm5 = vmor %vm2483_vm4, %vm2484_vm14 }
 0x6c7   : > { %v2479_v5 = vmul.f32 %v4398_v38, %v2478_v7 }
 0x6c8   : > { %v2362_v29 = vsel %vm1303_vm1, %v2316_v41, 0.0 }
 0x6c9   : > { %2363 = vadd.xlane.f32.xlu2 %v2362_v29  ;;  %v2480_v58 = vmul.f32 0.5, %v2479_v5 }
 0x6cb   : > { %v2481_v40 = vsub.f32 1.5, %v2480_v58 }
 0x6cd   : > { %v2482_v47 = vmul.f32 %v4398_v38, %v2481_v40 }
 0x6cf   : > { %v2486_v50 = vsel %vm2485_vm5, %v4398_v38, %v2482_v47 }
 0x6d0   : > { %v2565_v62 = vmul.f32 %v2486_v50, %v5360_v60 }
 0x6d1   : > { %v2340_v32 = vpop.xlane.xlu1 %2339 }
 0x6d2   : > { %v2372_v10 = vmul.f32 %v2340_v32, %v5265_v21  ;;  %v2584_v53 = vmul.f32 %v5381_v16, %v2565_v62 }
 0x6d4   : > { %v2388_v20 = vadd.f32 1e-05, %v2372_v10  ;;  %v5531_v60 = vadd.f32 %v5389_v12, %v2584_v53 }
 0x6d6   : > { %4399 = vrsqrt.f32 %v2388_v20  ;;  %vm2473_vm15 = vweird.f32 %v2388_v20 }
 0x6d9   : > { %v2258_v27 = vpop.xlane.xlu1 %2257 }
 0x6da   : > { %v2283_v30 = vmul.f32 %v5265_v21, %v2258_v27 }
 0x6dc   : > { %v4400_v55 = vpop.eup %4399  ;;  %v5507_v39 = vsub.f32 %v5397_v61, %v2283_v30 }
 0x6dd   : > { %v2468_v24 = vmul.f32 %v4400_v55, %v2388_v20  ;;  %vm2474_vm13 = vweird.f32 %v4400_v55 }
 0x6de   : > { %v2315_v1 = vmul.f32 %v5507_v39, %v5507_v39  ;;  %vm2475_vm2 = vmor %vm2473_vm15, %vm2474_vm13 }
 0x6df   : > { %v2469_v25 = vmul.f32 %v4400_v55, %v2468_v24 }
 0x6e0   : > { %v2682_v22 = vpop.f32.mrf.mxu0  ;;  %v2359_v0 = vsel %vm1303_vm1, %v2315_v1, 0.0 }
 0x6e1   : > { %v2470_v46 = vmul.f32 0.5, %v2469_v25  ;;  %v2683_v11 = vadd.f32 %v5510_v19, %v2682_v22  ;;  %2360 = vadd.xlane.f32.xlu0 %v2359_v0  ;;  %v2346_v34 = vpop.xlane.xlu2 %2345 }
 0x6e2   : > { %v2374_v61 = vmul.f32 %v2346_v34, %v5265_v21 }
 0x6e3   : > { %v2471_v15 = vsub.f32 1.5, %v2470_v46  ;;  %v2730_v44 = vmax.f32 %v2683_v11, 0.0 }
 0x6e4   : > { %v2390_v37 = vadd.f32 1e-05, %v2374_v61 }
 0x6e5   : > { %v2472_v51 = vmul.f32 %v4400_v55, %v2471_v15  ;;  %4119 = vmatmul.msk.f32.vlgmr.msrb.gmra.mxu3 %vm2749_vm11, %v2730_v44 }
 0x6e6   : > { %4401 = vrsqrt.f32 %v2390_v37  ;;  %vm2493_vm7 = vweird.f32 %v2390_v37 }
 0x6e7   : > { %v2476_v13 = vsel %vm2475_vm2, %v4400_v55, %v2472_v51 }
 0x6e8   : > { %v2564_v17 = vmul.f32 %v2476_v13, %v5378_v9  ;;  %v2685_v31 = vpop.f32.mrf.mxu0 }
 0x6e9   : > { %v2686_v45 = vadd.f32 %v5510_v19, %v2685_v31 }
 0x6ea   : > { %v2583_v33 = vmul.f32 %v5381_v16, %v2564_v17 }
 0x6eb   : > { %v2731_v8 = vmax.f32 %v2686_v45, 0.0 }
 0x6ec   : > { %v4402_v2 = vpop.eup %4401  ;;  %v5523_v42 = vadd.f32 %v5389_v12, %v2583_v33 }
 0x6ed   : > { %v2488_v43 = vmul.f32 %v4402_v2, %v2390_v37  ;;  %4120 = vmatmul.msk.f32.gmra.mxu3 %vm2749_vm11, %v2731_v8  ;;  %vm2494_vm6 = vweird.f32 %v4402_v2 }
 0x6ee   : > { %4110 = vmatmul.msk.f32.gmra.mxu0 %vm1303_vm1, %v5523_v42  ;;  %vm2495_vm8 = vmor %vm2493_vm7, %vm2494_vm6 }
 0x6ef   : > { %v2489_v9 = vmul.f32 %v4402_v2, %v2488_v43 }
 0x6f0   : > { %v2688_v18 = vpop.f32.mrf.mxu0 }
 0x6f1   : > { %v2490_v59 = vmul.f32 0.5, %v2489_v9  ;;  %v2689_v41 = vadd.f32 %v5510_v19, %v2688_v18 }
 0x6f3   : > { %v2491_v14 = vsub.f32 1.5, %v2490_v59  ;;  %v2732_v29 = vmax.f32 %v2689_v41, 0.0 }
 0x6f5   : > { %v2492_v32 = vmul.f32 %v4402_v2, %v2491_v14  ;;  %4121 = vmatmul.msk.f32.gmra.mxu3 %vm2749_vm11, %v2732_v29 }
 0x6f6   : > { %4111 = vmatmul.msk.f32.gmra.mxu0 %vm1303_vm1, %v5531_v60 }
 0x6f7   : > { %v2496_v38 = vsel %vm2495_vm8, %v4402_v2, %v2492_v32 }
 0x6f8   : > { %v2566_v10 = vmul.f32 %v2496_v38, %v5407_v63  ;;  %v2691_v20 = vpop.f32.mrf.mxu0 }
 0x6f9   : > { %v2692_v7 = vadd.f32 %v5510_v19, %v2691_v20 }
 0x6fa   : > { %v2585_v5 = vmul.f32 %v5381_v16, %v2566_v10 }
 0x6fb   : > { %v2733_v27 = vmax.f32 %v2692_v7, 0.0 }
 0x6fc   : > { %v5540_v30 = vadd.f32 %v5389_v12, %v2585_v5 }
 0x6fd   : > { %4122 = vmatmul.msk.f32.gmra.mxu3 %vm2749_vm11, %v2733_v27 }
 0x6fe   : > { %4112 = vmatmul.msk.f32.gmra.mxu0 %vm1303_vm1, %v5540_v30 }
 0x704   : > { %v2349_v55 = vpop.xlane.xlu1 %2348 }
 0x705   : > { %v2375_v58 = vmul.f32 %v2349_v55, %v5265_v21 }
 0x707   : > { %v2391_v24 = vadd.f32 1e-05, %v2375_v58 }
 0x709   : > { %4403 = vrsqrt.f32 %v2391_v24  ;;  %vm2503_vm13 = vweird.f32 %v2391_v24 }
 0x70c   : > { %v2694_v63 = vpop.f32.mrf.mxu0 }
 0x70d   : > { %v2352_v1 = vpop.xlane.xlu2 %2351  ;;  %v2695_v25 = vadd.f32 %v5510_v19, %v2694_v63 }
 0x70e   : > { %v2376_v22 = vmul.f32 %v2352_v1, %v5265_v21 }
 0x70f   : > { %v4404_v0 = vpop.eup %4403  ;;  %v2734_v40 = vmax.f32 %v2695_v25, 0.0 }
 0x710   : > { %v2392_v46 = vadd.f32 1e-05, %v2376_v22  ;;  %v2498_v11 = vmul.f32 %v4404_v0, %v2391_v24  ;;  %vm2504_vm10 = vweird.f32 %v4404_v0 }
 0x711   : > { %4123 = vmatmul.msk.f32.gmra.mxu3 %vm2749_vm11, %v2734_v40  ;;  %vm2505_vm14 = vmor %vm2503_vm13, %vm2504_vm10 }
 0x712   : > { %4405 = vrsqrt.f32 %v2392_v46  ;;  %v2499_v34 = vmul.f32 %v4404_v0, %v2498_v11  ;;  %vm2513_vm2 = vweird.f32 %v2392_v46 }
 0x714   : > { %v2500_v61 = vmul.f32 0.5, %v2499_v34  ;;  %v2697_v44 = vpop.f32.mrf.mxu0 }
 0x715   : > { %v2355_v15 = vpop.xlane.xlu0 %2354  ;;  %v2698_v47 = vadd.f32 %v5510_v19, %v2697_v44  ;;  %v3627_v51 = vpop.xlane.xlu2 %3626 }
 0x716   : > { %v2377_v37 = vmul.f32 %v2355_v15, %v5265_v21  ;;  %v2501_v13 = vsub.f32 1.5, %v2500_v61  ;;  %v3632_v17 = vmul.f32 %v3627_v51, %v5265_v21 }
 0x717   : > { %v2735_v45 = vmax.f32 %v2698_v47, 0.0 }
 0x718   : > { %v4406_v31 = vpop.eup %4405  ;;  %v2393_v50 = vadd.f32 1e-05, %v2377_v37  ;;  %v2502_v33 = vmul.f32 %v4404_v0, %v2501_v13  ;;  %v5553_v2 = vsub.f32 %v5468_v35, %v3632_v17 }
 0x719   : > { %v2508_v8 = vmul.f32 %v4406_v31, %v2392_v46  ;;  %4124 = vmatmul.msk.f32.gmra.mxu3 %vm2749_vm11, %v2735_v45  ;;  %vm2514_vm15 = vweird.f32 %v4406_v31 }
 0x71a   : > { %4407 = vrsqrt.f32 %v2393_v50  ;;  %v2506_v62 = vsel %vm2505_vm14, %v4404_v0, %v2502_v33  ;;  %v3636_v9 = vmul.f32 %v5553_v2, %v5553_v2  ;;  %vm2515_vm4 = vmor %vm2513_vm2, %vm2514_vm15  ;;  %vm2523_vm6 = vweird.f32 %v2393_v50 }
 0x71b   : > { %v2509_v43 = vmul.f32 %v4406_v31, %v2508_v8  ;;  %v2567_v18 = vmul.f32 %v2506_v62, %v5437_v6 }
 0x71c   : > { %v3638_v41 = vsel %vm1303_vm1, %v3636_v9, 0.0 }
 0x71d   : > { %v2510_v53 = vmul.f32 0.5, %v2509_v43  ;;  %v2358_v59 = vpop.xlane.xlu1 %2357  ;;  %3639 = vadd.xlane.f32.xlu0 %v3638_v41  ;;  %v2586_v35 = vmul.f32 %v5381_v16, %v2567_v18 }
 0x71e   : > { %v2378_v14 = vmul.f32 %v2358_v59, %v5265_v21 }
 0x71f   : > { %v2511_v29 = vsub.f32 1.5, %v2510_v53  ;;  %v5563_v10 = vadd.f32 %v5389_v12, %v2586_v35 }
 0x720   : > { %v4408_v32 = vpop.eup %4407  ;;  %v2394_v38 = vadd.f32 1e-05, %v2378_v14 }
 0x721   : > { %v2512_v20 = vmul.f32 %v4406_v31, %v2511_v29  ;;  %v2518_v7 = vmul.f32 %v4408_v32, %v2393_v50  ;;  %4113 = vmatmul.msk.f32.gmra.mxu0 %vm1303_vm1, %v5563_v10  ;;  %vm2524_vm5 = vweird.f32 %v4408_v32 }
 0x722   : > { %4409 = vrsqrt.f32 %v2394_v38  ;;  %vm2525_vm7 = vmor %vm2523_vm6, %vm2524_vm5  ;;  %vm2533_vm10 = vweird.f32 %v2394_v38 }
 0x723   : > { %v2516_v6 = vsel %vm2515_vm4, %v4406_v31, %v2512_v20  ;;  %v2519_v5 = vmul.f32 %v4408_v32, %v2518_v7  ;;  %v5600_v7 = vld [vmem:[%s6045_s2] ss:$0 sm:$0xff]  ;;  %s6056_s2 = sld [smem:[#allocation19_spill]] }
 0x724   : > { %v2568_v27 = vmul.f32 %v2516_v6, %v5453_v36 }
 0x725   : > { %v2520_v55 = vmul.f32 0.5, %v2519_v5  ;;  %v3631_v58 = vpop.xlane.xlu1 %3630 }
 0x726   : > { %v3633_v24 = vmul.f32 %v3631_v58, %v5265_v21  ;;  %v2587_v63 = vmul.f32 %v5381_v16, %v2568_v27 }
 0x727   : > { %v2521_v1 = vsub.f32 1.5, %v2520_v55 }
 0x728   : > { %v4410_v25 = vpop.eup %4409  ;;  %v5571_v22 = vsub.f32 %v5485_v26, %v3633_v24  ;;  %v5574_v0 = vadd.f32 %v5389_v12, %v2587_v63 }
 0x729   : > { %v2522_v40 = vmul.f32 %v4408_v32, %v2521_v1  ;;  %v2528_v46 = vmul.f32 %v4410_v25, %v2394_v38  ;;  %vm2534_vm8 = vweird.f32 %v4410_v25 }
 0x72a   : > { %4114 = vmatmul.msk.f32.gmra.mxu0 %vm1303_vm1, %v5574_v0  ;;  %v3637_v36 = vmul.f32 %v5571_v22, %v5571_v22  ;;  %vm2535_vm13 = vmor %vm2533_vm10, %vm2534_vm8 }
 0x72b   : > { %v2526_v11 = vsel %vm2525_vm7, %v4408_v32, %v2522_v40  ;;  %v2529_v34 = vmul.f32 %v4410_v25, %v2528_v46  ;;  %v2700_v44 = vpop.f32.mrf.mxu0 }
 0x72c   : > { %v2569_v61 = vmul.f32 %v2526_v11, %v5465_v52  ;;  %v3641_v26 = vsel %vm3628_vm3, %v3637_v36, 0.0  ;;  %v2701_v37 = vadd.f32 %v5510_v19, %v2700_v44 }
 0x72d   : > { %v2530_v15 = vmul.f32 0.5, %v2529_v34  ;;  %3642 = vadd.xlane.f32.xlu1 %v3641_v26 }
 0x72e   : > { %v2588_v47 = vmul.f32 %v5381_v16, %v2569_v61  ;;  %v2736_v13 = vmax.f32 %v2701_v37, 0.0 }
 0x72f   : > { %v2531_v51 = vsub.f32 1.5, %v2530_v15 }
 0x730   : > { %v5585_v17 = vadd.f32 %v5389_v12, %v2588_v47  ;;  %4125 = vmatmul.msk.f32.gmra.mxu3 %vm2749_vm11, %v2736_v13 }
 0x731   : > { %v2532_v31 = vmul.f32 %v4410_v25, %v2531_v51 }
 0x732   : > { %4115 = vmatmul.msk.f32.gmra.mxu0 %vm1303_vm1, %v5585_v17 }
 0x733   : > { %v2536_v52 = vsel %vm2535_vm13, %v4410_v25, %v2532_v31 }
 0x734   : > { %v2570_v50 = vmul.f32 %v2536_v52, %v5477_v49 }
 0x736   : > { %v2589_v45 = vmul.f32 %v5381_v16, %v2570_v50 }
 0x738   : > { %v5593_v33 = vadd.f32 %v5389_v12, %v2589_v45 }
 0x73a   : > { %4116 = vmatmul.msk.f32.gmra.mxu0 %vm1303_vm1, %v5593_v33 }
 0x73c   : > { %v2364_v8 = vpop.xlane.xlu2 %2363 }
 0x73d   : > { %v2380_v62 = vmul.f32 %v2364_v8, %v5265_v21 }
 0x73f   : > { %v2396_v43 = vadd.f32 1e-05, %v2380_v62 }
 0x741   : > { %4411 = vrsqrt.f32 %v2396_v43  ;;  %vm2553_vm5 = vweird.f32 %v2396_v43 }
 0x747   : > { %v4412_v18 = vpop.eup %4411 }
 0x748   : > { %v2548_v49 = vmul.f32 %v4412_v18, %v2396_v43  ;;  %vm2554_vm15 = vweird.f32 %v4412_v18 }
 0x749   : > { %vm2555_vm6 = vmor %vm2553_vm5, %vm2554_vm15 }
 0x74a   : > { %v2549_v41 = vmul.f32 %v4412_v18, %v2548_v49 }
 0x74c   : > { %v2550_v35 = vmul.f32 0.5, %v2549_v41 }
 0x74e   : > { %v2551_v38 = vsub.f32 1.5, %v2550_v35 }
 0x750   : > { %v2552_v5 = vmul.f32 %v4412_v18, %v2551_v38 }
 0x752   : > { %v2556_v40 = vsel %vm2555_vm6, %v4412_v18, %v2552_v5 }
 0x753   : > { %v2572_v61 = vmul.f32 %v2556_v40, %v5498_v4 }
 0x754   : > { %v2361_v9 = vpop.xlane.xlu0 %2360 }
 0x755   : > { %v2379_v53 = vmul.f32 %v2361_v9, %v5265_v21  ;;  %v2591_v37 = vmul.f32 %v5381_v16, %v2572_v61 }
 0x757   : > { %v2395_v59 = vadd.f32 1e-05, %v2379_v53  ;;  %v5627_v13 = vadd.f32 %v5389_v12, %v2591_v37 }
 0x759   : > { %4413 = vrsqrt.f32 %v2395_v59  ;;  %vm2543_vm2 = vweird.f32 %v2395_v59 }
 0x75f   : > { %v4414_v14 = vpop.eup %4413 }
 0x760   : > { %v2538_v29 = vmul.f32 %v4414_v14, %v2395_v59  ;;  %vm2544_vm14 = vweird.f32 %v4414_v14 }
 0x761   : > { %vm2545_vm4 = vmor %vm2543_vm2, %vm2544_vm14 }
 0x762   : > { %v2539_v32 = vmul.f32 %v4414_v14, %v2538_v29 }
 0x764   : > { %v2540_v20 = vmul.f32 0.5, %v2539_v32 }
 0x766   : > { %v2541_v6 = vsub.f32 1.5, %v2540_v20 }
 0x768   : > { %v2542_v27 = vmul.f32 %v4414_v14, %v2541_v6  ;;  %v2815_v55 = vpop.f32.mrf.mxu3 }
 0x769   : > { %v2816_v58 = vadd.f32 %v5600_v7, %v2815_v55 }
 0x76a   : > { %v2546_v24 = vsel %vm2545_vm4, %v4414_v14, %v2542_v27 }
 0x76b   : > { %v2571_v63 = vmul.f32 %v2546_v24, %v5507_v39  ;;  %v2703_v1 = vpop.f32.mrf.mxu0  ;;  %v5605_v25 = vadd.f32 %v2816_v58, %v5394_v56 }
 0x76c   : > { %v2704_v46 = vadd.f32 %v5510_v19, %v2703_v1 }
 0x76d   : > { %v2879_v36 = vsel %vm1303_vm1, %v5605_v25, 0.0  ;;  %v2590_v11 = vmul.f32 %v5381_v16, %v2571_v63 }
 0x76e   : > { %v2737_v34 = vmax.f32 %v2704_v46, 0.0  ;;  %2880 = vadd.xlane.f32.xlu2 %v2879_v36  ;;  %v4299_v36 = vld [vmem:[%s6047_s10] ss:$0 sm:$0xff]  ;;  %s6058_s10 = sld [smem:[#allocation22_spill]] }
 0x76f   : > { %v5613_v26 = vadd.f32 %v5389_v12, %v2590_v11 }
 0x770   : > { %v2818_v39 = vpop.f32.mrf.mxu3  ;;  %4126 = vmatmul.msk.f32.gmra.mxu3 %vm2749_vm11, %v2737_v34  ;;  %v4300_v34 = vld [vmem:[%s6048_s11] ss:$0 sm:$0xff]  ;;  %s4035_s11 = sshll.u32 %s6060_s7, 2 }
 0x771   : > { %v2819_v56 = vadd.f32 %v5600_v7, %v2818_v39  ;;  %4117 = vmatmul.msk.f32.gmra.mxu0 %vm1303_vm1, %v5613_v26 }
 0x773   : > { %v2706_v15 = vpop.f32.mrf.mxu0  ;;  %v5620_v44 = vadd.f32 %v2819_v56, %v5410_v23 }
 0x774   : > { %v2707_v47 = vadd.f32 %v5510_v19, %v2706_v15 }
 0x775   : > { %v2882_v4 = vsel %vm1303_vm1, %v5620_v44, 0.0 }
 0x776   : > { %v2738_v51 = vmax.f32 %v2707_v47, 0.0  ;;  %2883 = vadd.xlane.f32.xlu0 %v2882_v4 }
 0x778   : > { %v2821_v31 = vpop.f32.mrf.mxu3  ;;  %4127 = vmatmul.msk.f32.gmra.mxu3 %vm2749_vm11, %v2738_v51 }
 0x779   : > { %v2822_v52 = vadd.f32 %v5600_v7, %v2821_v31  ;;  %4118 = vmatmul.msk.f32.gmra.mxu0 %vm1303_vm1, %v5627_v13 }
 0x77b   : > { %v2709_v16 = vpop.f32.mrf.mxu0  ;;  %v5634_v23 = vadd.f32 %v2822_v52, %v5420_v28  ;;  %v3398_v28 = vld [vmem:[%s6046_s0] sm:$0xf]  ;;  %s6057_s0 = sld [smem:[#allocation20_spill]] }
 0x77c   : > { %v2710_v50 = vadd.f32 %v5510_v19, %v2709_v16  ;;  %4165 = vmatpush.msk.msrb.mxu1 %vm1352_vm0, %v3398_v28 }
 0x77d   : > { %v2885_v45 = vsel %vm1303_vm1, %v5634_v23, 0.0 }
 0x77e   : > { %v2739_v12 = vmax.f32 %v2710_v50, 0.0  ;;  %2886 = vadd.xlane.f32.xlu1 %v2885_v45 }
 0x780   : > { %v2824_v8 = vpop.f32.mrf.mxu3  ;;  %4128 = vmatmul.msk.f32.gmra.mxu3 %vm2749_vm11, %v2739_v12 }
 0x781   : > { %v2825_v62 = vadd.f32 %v5600_v7, %v2824_v8 }
 0x783   : > { %v5642_v43 = vadd.f32 %v2825_v62, %v5428_v3 }
 0x785   : > { %v2888_v9 = vsel %vm1303_vm1, %v5642_v43, 0.0 }
 0x786   : > { %2889 = vadd.xlane.f32.xlu2 %v2888_v9 }
 0x790   : > { %v3640_v18 = vpop.xlane.xlu0 %3639 }
 0x791   : > { %v3644_v53 = vmul.f32 %v3640_v18, %v5265_v21 }
 0x793   : > { %v3646_v59 = vadd.f32 1e-05, %v3644_v53 }
 0x794   : > { %v2827_v49 = vpop.f32.mrf.mxu3 }
 0x795   : > { %4415 = vrsqrt.f32 %v3646_v59  ;;  %v2828_v41 = vadd.f32 %v5600_v7, %v2827_v49  ;;  %vm3654_vm8 = vweird.f32 %v3646_v59 }
 0x797   : > { %v5651_v14 = vadd.f32 %v2828_v41, %v5440_v57 }
 0x799   : > { %v2891_v3 = vsel %vm1303_vm1, %v5651_v14, 0.0 }
 0x79a   : > { %2892 = vadd.xlane.f32.xlu0 %v2891_v3 }
 0x79b   : > { %v4416_v35 = vpop.eup %4415 }
 0x79c   : > { %v3649_v29 = vmul.f32 %v4416_v35, %v3646_v59  ;;  %v2830_v32 = vpop.f32.mrf.mxu3  ;;  %vm3655_vm7 = vweird.f32 %v4416_v35 }
 0x79d   : > { %v2831_v38 = vadd.f32 %v5600_v7, %v2830_v32  ;;  %vm3656_vm10 = vmor %vm3654_vm8, %vm3655_vm7 }
 0x79e   : > { %v3650_v20 = vmul.f32 %v4416_v35, %v3649_v29  ;;  %v2712_v6 = vpop.f32.mrf.mxu0 }
 0x79f   : > { %v2713_v5 = vadd.f32 %v5510_v19, %v2712_v6  ;;  %v5658_v55 = vadd.f32 %v2831_v38, %v5456_v48 }
 0x7a0   : > { %v3643_v27 = vpop.xlane.xlu1 %3642  ;;  %v3651_v57 = vmul.f32 0.5, %v3650_v20 }
 0x7a1   : > { %v3645_v58 = vmul.f32 %v3643_v27, %v5265_v21  ;;  %v2740_v24 = vmax.f32 %v2713_v5, 0.0  ;;  %v2894_v63 = vsel %vm1303_vm1, %v5658_v55, 0.0 }
 0x7a2   : > { %v3652_v1 = vsub.f32 1.5, %v3651_v57  ;;  %2895 = vadd.xlane.f32.xlu1 %v2894_v63 }
 0x7a3   : > { %v3647_v40 = vadd.f32 1e-05, %v3645_v58  ;;  %4129 = vmatmul.msk.f32.gmra.mxu3 %vm2749_vm11, %v2740_v24 }
 0x7a4   : > { %v3653_v46 = vmul.f32 %v4416_v35, %v3652_v1 }
 0x7a5   : > { %4417 = vrsqrt.f32 %v3647_v40  ;;  %vm3664_vm14 = vweird.f32 %v3647_v40 }
 0x7a6   : > { %v3657_v48 = vsel %vm3656_vm10, %v4416_v35, %v3653_v46 }
 0x7a7   : > { %v2715_v11 = vpop.f32.mrf.mxu0  ;;  %v3668_v61 = vmul.f32 %v3657_v48, %v5553_v2 }
 0x7a8   : > { %v2716_v39 = vadd.f32 %v5510_v19, %v2715_v11 }
 0x7a9   : > { %v3673_v56 = vmul.f32 %v4299_v36, %v3668_v61 }
 0x7aa   : > { %v2741_v15 = vmax.f32 %v2716_v39, 0.0 }
 0x7ab   : > { %v4418_v37 = vpop.eup %4417  ;;  %v5668_v47 = vadd.f32 %v4300_v34, %v3673_v56 }
 0x7ac   : > { %v3659_v4 = vmul.f32 %v4418_v37, %v3647_v40  ;;  %4130 = vmatmul.msk.f32.gmra.mxu3 %vm2749_vm11, %v2741_v15  ;;  %vm3665_vm13 = vweird.f32 %v4418_v37 }
 0x7ad   : > { %4166 = vmatmul.msk.f32.vlgmr.msrb.gmra.mxu1 %vm1303_vm1, %v5668_v47  ;;  %vm3666_vm15 = vmor %vm3664_vm14, %vm3665_vm13 }
 0x7ae   : > { %v3660_v51 = vmul.f32 %v4418_v37, %v3659_v4 }
 0x7af   : > { %v2718_v31 = vpop.f32.mrf.mxu0 }
 0x7b0   : > { %v3661_v52 = vmul.f32 0.5, %v3660_v51  ;;  %v2719_v16 = vadd.f32 %v5510_v19, %v2718_v31 }
 0x7b2   : > { %v3662_v50 = vsub.f32 1.5, %v3661_v52  ;;  %v2742_v2 = vmax.f32 %v2719_v16, 0.0 }
 0x7b3   : > { %v2833_v12 = vpop.f32.mrf.mxu3 }
 0x7b4   : > { %v3663_v45 = vmul.f32 %v4418_v37, %v3662_v50  ;;  %4131 = vmatmul.msk.f32.gmra.mxu3 %vm2749_vm11, %v2742_v2  ;;  %v2834_v62 = vadd.f32 %v5600_v7, %v2833_v12  ;;  %v3400_v12 = vld [vmem:[%s6049_s4] sm:$0xff] }
 0x7b6   : > { %v3667_v8 = vsel %vm3666_vm15, %v4418_v37, %v3663_v45  ;;  %v5679_v53 = vadd.f32 %v2834_v62, %v5488_v54 }
 0x7b7   : > { %v3669_v9 = vmul.f32 %v3667_v8, %v5571_v22  ;;  %v2721_v28 = vpop.f32.mrf.mxu0  ;;  %v3401_v22 = vld [vmem:[%s6049_s4 + $0x8] sm:$0xff] }
 0x7b8   : > { %v2722_v18 = vadd.f32 %v5510_v19, %v2721_v28  ;;  %v2897_v41 = vsel %vm1303_vm1, %v5679_v53, 0.0  ;;  %3740 = vmatpush.msrb.mxu0 %v3401_v22  ;;  %v4301_v22 = vld [vmem:[%s6050_s15] ss:$0 sm:$0xff]  ;;  %s1148_s15 = scalar_lea.vmem %s4694_s30, %s4035_s11 }
 0x7b9   : > { %v3674_v59 = vmul.f32 %v4299_v36, %v3669_v9  ;;  %2898 = vadd.xlane.f32.xlu0 %v2897_v41 }
 0x7ba   : > { %v2743_v49 = vmax.f32 %v2722_v18, 0.0  ;;  %3741 = vmatpush.msrb.mxu0 %v3400_v12 }
 0x7bb   : > { %v5683_v3 = vadd.f32 %v4300_v34, %v3674_v59 }
 0x7bc   : > { %4132 = vmatmul.msk.f32.gmra.mxu3 %vm2749_vm11, %v2743_v49 }
 0x7bd   : > { %4167 = vmatmul.msk.f32.gmra.mxu1 %vm1303_vm1, %v5683_v3 }
 0x7e1   : > { %v2881_v35 = vpop.xlane.xlu2 %2880 }
 0x7e2   : > { %v2927_v29 = vmul.f32 %v2881_v35, %v5265_v21 }
 0x7e4   : > { %v5691_v54 = vsub.f32 %v5605_v25, %v2927_v29 }
 0x7e6   : > { %v2959_v32 = vmul.f32 %v5691_v54, %v5691_v54 }
 0x7e8   : > { %v2975_v38 = vsel %vm1303_vm1, %v2959_v32, 0.0 }
 0x7e9   : > { %v2884_v20 = vpop.xlane.xlu0 %2883  ;;  %2976 = vadd.xlane.f32.xlu2 %v2975_v38 }
 0x7ea   : > { %v2928_v6 = vmul.f32 %v2884_v20, %v5265_v21 }
 0x7ec   : > { %v5698_v5 = vsub.f32 %v5620_v44, %v2928_v6 }
 0x7ee   : > { %v2724_v27 = vpop.f32.mrf.mxu0  ;;  %v2960_v57 = vmul.f32 %v5698_v5, %v5698_v5 }
 0x7ef   : > { %v2725_v58 = vadd.f32 %v5510_v19, %v2724_v27 }
 0x7f0   : > { %v2978_v25 = vsel %vm1303_vm1, %v2960_v57, 0.0 }
 0x7f1   : > { %v2744_v24 = vmax.f32 %v2725_v58, 0.0  ;;  %v2887_v63 = vpop.xlane.xlu1 %2886  ;;  %2979 = vadd.xlane.f32.xlu1 %v2978_v25 }
 0x7f2   : > { %v2929_v1 = vmul.f32 %v2887_v63, %v5265_v21 }
 0x7f3   : > { %v2836_v40 = vpop.f32.mrf.mxu3  ;;  %4133 = vmatmul.msk.f32.gmra.mxu3 %vm2749_vm11, %v2744_v24 }
 0x7f4   : > { %v5707_v46 = vsub.f32 %v5634_v23, %v2929_v1  ;;  %v2837_v44 = vadd.f32 %v5600_v7, %v2836_v40 }
 0x7f6   : > { %v2727_v36 = vpop.f32.mrf.mxu0  ;;  %v2961_v48 = vmul.f32 %v5707_v46, %v5707_v46  ;;  %v5713_v11 = vadd.f32 %v2837_v44, %v5523_v42 }
 0x7f7   : > { %v2728_v34 = vadd.f32 %v5510_v19, %v2727_v36 }
 0x7f8   : > { %v2981_v61 = vsel %vm1303_vm1, %v2961_v48, 0.0  ;;  %v2900_v39 = vsel %vm1303_vm1, %v5713_v11, 0.0 }
 0x7f9   : > { %v2745_v56 = vmax.f32 %v2728_v34, 0.0  ;;  %2982 = vadd.xlane.f32.xlu0 %v2981_v61  ;;  %2901 = vadd.xlane.f32.xlu2 %v2900_v39  ;;  %v2890_v23 = vpop.xlane.xlu2 %2889 }
 0x7fa   : > { %v2930_v15 = vmul.f32 %v2890_v23, %v5265_v21 }
 0x7fb   : > { %v2839_v37 = vpop.f32.mrf.mxu3  ;;  %4134 = vmatmul.msk.f32.gmra.mxu3 %vm2749_vm11, %v2745_v56 }
 0x7fc   : > { %v5722_v42 = vsub.f32 %v5642_v43, %v2930_v15  ;;  %v2840_v19 = vadd.f32 %v5600_v7, %v2839_v37 }
 0x7fe   : > { %v5726_v4 = vadd.f32 %v2840_v19, %v5531_v60  ;;  %v2962_v51 = vmul.f32 %v5722_v42, %v5722_v42 }
 0x800   : > { %v2903_v31 = vsel %vm1303_vm1, %v5726_v4, 0.0  ;;  %v2984_v52 = vsel %vm1303_vm1, %v2962_v51, 0.0 }
 0x801   : > { %2904 = vadd.xlane.f32.xlu1 %v2903_v31  ;;  %2985 = vadd.xlane.f32.xlu2 %v2984_v52 }
 0x803   : > { %v2842_v16 = vpop.f32.mrf.mxu3 }
 0x804   : > { %v2843_v50 = vadd.f32 %v5600_v7, %v2842_v16 }
 0x806   : > { %v5735_v43 = vadd.f32 %v2843_v50, %v5540_v30 }
 0x808   : > { %v2906_v60 = vsel %vm1303_vm1, %v5735_v43, 0.0 }
 0x809   : > { %2907 = vadd.xlane.f32.xlu0 %v2906_v60 }
 0x80d   : > { %v2893_v2 = vpop.xlane.xlu0 %2892 }
 0x80e   : > { %v2931_v45 = vmul.f32 %v2893_v2, %v5265_v21 }
 0x810   : > { %v5742_v8 = vsub.f32 %v5651_v14, %v2931_v45 }
 0x812   : > { %v2963_v62 = vmul.f32 %v5742_v8, %v5742_v8 }
 0x814   : > { %v2987_v9 = vsel %vm1303_vm1, %v2963_v62, 0.0 }
 0x815   : > { %v2896_v30 = vpop.xlane.xlu1 %2895  ;;  %2988 = vadd.xlane.f32.xlu1 %v2987_v9 }
 0x816   : > { %v2932_v28 = vmul.f32 %v2896_v30, %v5265_v21 }
 0x818   : > { %v5749_v18 = vsub.f32 %v5658_v55, %v2932_v28 }
 0x81a   : > { %v2964_v59 = vmul.f32 %v5749_v18, %v5749_v18 }
 0x81c   : > { %v2990_v49 = vsel %vm1303_vm1, %v2964_v59, 0.0 }
 0x81d   : > { %2991 = vadd.xlane.f32.xlu0 %v2990_v49 }
 0x826   : > { %v2845_v14 = vpop.f32.mrf.mxu3 }
 0x827   : > { %v2846_v41 = vadd.f32 %v5600_v7, %v2845_v14 }
 0x829   : > { %v5757_v35 = vadd.f32 %v2846_v41, %v5563_v10  ;;  %v5800_v41 = vld [vmem:[%s6052_s28] ss:$0 sm:$0xff] }
 0x82a   : > { %v3709_v29 = vpop.f32.mrf.mxu1 }
 0x82b   : > { %v3710_v32 = vadd.f32 %v4301_v22, %v3709_v29  ;;  %v2909_v38 = vsel %vm1303_vm1, %v5757_v35, 0.0 }
 0x82c   : > { %2910 = vadd.xlane.f32.xlu2 %v2909_v38  ;;  %v2899_v20 = vpop.xlane.xlu0 %2898 }
 0x82d   : > { %v3715_v55 = vmax.f32 %v3710_v32, 0.0  ;;  %v2933_v6 = vmul.f32 %v2899_v20, %v5265_v21 }
 0x82f   : > { %v2848_v27 = vpop.f32.mrf.mxu3  ;;  %4168 = vmatmul.msk.f32.vlgmr.msrb.gmra.mxu0 %vm2749_vm11, %v3715_v55  ;;  %v5765_v58 = vsub.f32 %v5679_v53, %v2933_v6  ;;  %v5805_v55 = vld [vmem:[%s6053_s23] ss:$0 sm:$0xff] }
 0x830   : > { %v2849_v57 = vadd.f32 %v5600_v7, %v2848_v27 }
 0x831   : > { %v2965_v25 = vmul.f32 %v5765_v58, %v5765_v58 }
 0x832   : > { %v5768_v10 = vadd.f32 %v2849_v57, %v5574_v0 }
 0x833   : > { %v2993_v63 = vsel %vm1303_vm1, %v2965_v25, 0.0 }
 0x834   : > { %v2912_v24 = vsel %vm1303_vm1, %v5768_v10, 0.0  ;;  %2994 = vadd.xlane.f32.xlu2 %v2993_v63 }
 0x835   : > { %2913 = vadd.xlane.f32.xlu1 %v2912_v24 }
 0x837   : > { %v2851_v1 = vpop.f32.mrf.mxu3 }
 0x838   : > { %v2852_v40 = vadd.f32 %v5600_v7, %v2851_v1 }
 0x83a   : > { %v3712_v44 = vpop.f32.mrf.mxu1  ;;  %v5777_v53 = vadd.f32 %v2852_v40, %v5585_v17  ;;  %v1180_v17 = vld [vmem:[%s6051_s18] sm:$0xf] }
 0x83b   : > { %v3713_v0 = vadd.f32 %v4301_v22, %v3712_v44  ;;  %4135 = vmatpush.msk.msrb.mxu2 %vm1352_vm0, %v1180_v17 }
 0x83c   : > { %v2915_v36 = vsel %vm1303_vm1, %v5777_v53, 0.0 }
 0x83d   : > { %v3716_v48 = vmax.f32 %v3713_v0, 0.0  ;;  %2916 = vadd.xlane.f32.xlu0 %v2915_v36 }
 0x83f   : > { %v2854_v34 = vpop.f32.mrf.mxu3  ;;  %4169 = vmatmul.msk.f32.gmra.mxu0 %vm2749_vm11, %v3716_v48 }
 0x840   : > { %v2855_v61 = vadd.f32 %v5600_v7, %v2854_v34 }
 0x842   : > { %v5784_v39 = vadd.f32 %v2855_v61, %v5593_v33 }
 0x844   : > { %v2918_v56 = vsel %vm1303_vm1, %v5784_v39, 0.0 }
 0x845   : > { %2919 = vadd.xlane.f32.xlu2 %v2918_v56 }
 0x85c   : > { %v2977_v23 = vpop.xlane.xlu2 %2976 }
 0x85d   : > { %v3023_v15 = vmul.f32 %v2977_v23, %v5265_v21 }
 0x85f   : > { %v3039_v37 = vadd.f32 1e-05, %v3023_v15 }
 0x861   : > { %4419 = vrsqrt.f32 %v3039_v37  ;;  %vm3061_vm2 = vweird.f32 %v3039_v37 }
 0x864   : > { %v2980_v19 = vpop.xlane.xlu1 %2979 }
 0x865   : > { %v3024_v51 = vmul.f32 %v2980_v19, %v5265_v21 }
 0x867   : > { %v4420_v31 = vpop.eup %4419  ;;  %v3040_v52 = vadd.f32 1e-05, %v3024_v51 }
 0x868   : > { %v3056_v16 = vmul.f32 %v4420_v31, %v3039_v37  ;;  %vm3062_vm11 = vweird.f32 %v4420_v31 }
 0x869   : > { %4421 = vrsqrt.f32 %v3040_v52  ;;  %vm3063_vm4 = vmor %vm3061_vm2, %vm3062_vm11  ;;  %vm3071_vm6 = vweird.f32 %v3040_v52 }
 0x86a   : > { %v3057_v33 = vmul.f32 %v4420_v31, %v3056_v16 }
 0x86c   : > { %v3058_v50 = vmul.f32 0.5, %v3057_v33  ;;  %v2983_v60 = vpop.xlane.xlu0 %2982  ;;  %v2902_v2 = vpop.xlane.xlu2 %2901 }
 0x86d   : > { %v3025_v45 = vmul.f32 %v2983_v60, %v5265_v21  ;;  %v2934_v12 = vmul.f32 %v2902_v2, %v5265_v21 }
 0x86e   : > { %v3059_v62 = vsub.f32 1.5, %v3058_v50 }
 0x86f   : > { %v4422_v9 = vpop.eup %4421  ;;  %v3041_v30 = vadd.f32 1e-05, %v3025_v45  ;;  %v5795_v28 = vsub.f32 %v5713_v11, %v2934_v12 }
 0x870   : > { %v3060_v59 = vmul.f32 %v4420_v31, %v3059_v62  ;;  %v3066_v49 = vmul.f32 %v4422_v9, %v3040_v52  ;;  %vm3072_vm5 = vweird.f32 %v4422_v9 }
 0x871   : > { %4423 = vrsqrt.f32 %v3041_v30  ;;  %v2966_v14 = vmul.f32 %v5795_v28, %v5795_v28  ;;  %vm3073_vm7 = vmor %vm3071_vm6, %vm3072_vm5  ;;  %vm3081_vm10 = vweird.f32 %v3041_v30 }
 0x872   : > { %v3064_v22 = vsel %vm3063_vm4, %v4420_v31, %v3060_v59  ;;  %v3067_v29 = vmul.f32 %v4422_v9, %v3066_v49 }
 0x873   : > { %v3215_v32 = vmul.f32 %v3064_v22, %v5691_v54  ;;  %v2996_v38 = vsel %vm1303_vm1, %v2966_v14, 0.0 }
 0x874   : > { %v3068_v11 = vmul.f32 0.5, %v3067_v29  ;;  %v2905_v20 = vpop.xlane.xlu1 %2904  ;;  %2997 = vadd.xlane.f32.xlu1 %v2996_v38  ;;  %v2986_v6 = vpop.xlane.xlu2 %2985 }
 0x875   : > { %v2935_v27 = vmul.f32 %v2905_v20, %v5265_v21  ;;  %v3026_v57 = vmul.f32 %v2986_v6, %v5265_v21  ;;  %v3234_v25 = vmul.f32 %v5800_v41, %v3215_v32 }
 0x876   : > { %v3069_v24 = vsub.f32 1.5, %v3068_v11  ;;  %v2857_v63 = vpop.f32.mrf.mxu3 }
 0x877   : > { %v4424_v1 = vpop.eup %4423  ;;  %v5811_v54 = vsub.f32 %v5726_v4, %v2935_v27  ;;  %v3042_v40 = vadd.f32 1e-05, %v3026_v57  ;;  %v2858_v44 = vadd.f32 %v5600_v7, %v2857_v63  ;;  %v3253_v0 = vadd.f32 %v5805_v55, %v3234_v25 }
 0x878   : > { %v3070_v36 = vmul.f32 %v4422_v9, %v3069_v24  ;;  %v3076_v48 = vmul.f32 %v4424_v1, %v3041_v30  ;;  %vm3082_vm8 = vweird.f32 %v4424_v1 }
 0x879   : > { %4425 = vrsqrt.f32 %v3042_v40  ;;  %4136 = vmatmul.msk.f32.vlgmr.msrb.gmra.mxu2 %vm1303_vm1, %v3253_v0  ;;  %v2967_v34 = vmul.f32 %v5811_v54, %v5811_v54  ;;  %v5819_v61 = vadd.f32 %v2858_v44, %v5613_v26  ;;  %vm3083_vm13 = vmor %vm3081_vm10, %vm3082_vm8  ;;  %vm3091_vm15 = vweird.f32 %v3042_v40 }
 0x87a   : > { %v3074_v4 = vsel %vm3073_vm7, %v4422_v9, %v3070_v36  ;;  %v3077_v56 = vmul.f32 %v4424_v1, %v3076_v48 }
 0x87b   : > { %v2999_v17 = vsel %vm1303_vm1, %v2967_v34, 0.0  ;;  %v2921_v23 = vsel %vm1303_vm1, %v5819_v61, 0.0  ;;  %v3216_v15 = vmul.f32 %v3074_v4, %v5698_v5 }
 0x87c   : > { %v3078_v37 = vmul.f32 0.5, %v3077_v56  ;;  %3000 = vadd.xlane.f32.xlu0 %v2999_v17  ;;  %v2908_v19 = vpop.xlane.xlu0 %2907  ;;  %2922 = vadd.xlane.f32.xlu1 %v2921_v23 }
 0x87d   : > { %v2936_v51 = vmul.f32 %v2908_v19, %v5265_v21  ;;  %v3235_v31 = vmul.f32 %v5800_v41, %v3216_v15 }
 0x87e   : > { %v3079_v52 = vsub.f32 1.5, %v3078_v37  ;;  %v2860_v26 = vpop.f32.mrf.mxu3 }
 0x87f   : > { %v4426_v16 = vpop.eup %4425  ;;  %v5828_v33 = vsub.f32 %v5735_v43, %v2936_v51  ;;  %v2861_v50 = vadd.f32 %v5600_v7, %v2860_v26  ;;  %v3254_v60 = vadd.f32 %v5805_v55, %v3235_v31 }
 0x880   : > { %v3080_v5 = vmul.f32 %v4424_v1, %v3079_v52  ;;  %v3086_v2 = vmul.f32 %v4426_v16, %v3042_v40  ;;  %vm3092_vm14 = vweird.f32 %v4426_v16 }
 0x881   : > { %4137 = vmatmul.msk.f32.gmra.mxu2 %vm1303_vm1, %v3254_v60  ;;  %v5834_v45 = vadd.f32 %v2861_v50, %v5627_v13  ;;  %v2968_v12 = vmul.f32 %v5828_v33, %v5828_v33  ;;  %vm3093_vm11 = vmor %vm3091_vm15, %vm3092_vm14 }
 0x882   : > { %v3084_v62 = vsel %vm3083_vm13, %v4424_v1, %v3080_v5  ;;  %v3087_v9 = vmul.f32 %v4426_v16, %v3086_v2  ;;  %v4304_v2 = vld [vmem:[%s6054_s26] ss:$0 sm:$0xff] }
 0x883   : > { %v2924_v43 = vsel %vm1303_vm1, %v5834_v45, 0.0  ;;  %v3002_v7 = vsel %vm1303_vm1, %v2968_v12, 0.0  ;;  %v3217_v59 = vmul.f32 %v3084_v62, %v5707_v46 }
 0x884   : > { %v3088_v30 = vmul.f32 0.5, %v3087_v9  ;;  %2925 = vadd.xlane.f32.xlu0 %v2924_v43  ;;  %3003 = vadd.xlane.f32.xlu2 %v3002_v7 }
 0x885   : > { %v3236_v49 = vmul.f32 %v5800_v41, %v3217_v59 }
 0x886   : > { %v3089_v14 = vsub.f32 1.5, %v3088_v30 }
 0x887   : > { %v3255_v13 = vadd.f32 %v5805_v55, %v3236_v49 }
 0x888   : > { %v3090_v22 = vmul.f32 %v4426_v16, %v3089_v14  ;;  %v2989_v29 = vpop.xlane.xlu1 %2988 }
 0x889   : > { %v3027_v32 = vmul.f32 %v2989_v29, %v5265_v21  ;;  %4138 = vmatmul.msk.f32.gmra.mxu2 %vm1303_vm1, %v3255_v13 }
 0x88a   : > { %v3094_v38 = vsel %vm3093_vm11, %v4426_v16, %v3090_v22 }
 0x88b   : > { %v3043_v11 = vadd.f32 1e-05, %v3027_v32  ;;  %v3218_v46 = vmul.f32 %v3094_v38, %v5722_v42 }
 0x88d   : > { %4427 = vrsqrt.f32 %v3043_v11  ;;  %v3237_v20 = vmul.f32 %v5800_v41, %v3218_v46  ;;  %vm3101_vm4 = vweird.f32 %v3043_v11 }
 0x88f   : > { %v3256_v6 = vadd.f32 %v5805_v55, %v3237_v20 }
 0x890   : > { %v2992_v27 = vpop.xlane.xlu0 %2991 }
 0x891   : > { %v3028_v57 = vmul.f32 %v2992_v27, %v5265_v21  ;;  %4139 = vmatmul.msk.f32.gmra.mxu2 %vm1303_vm1, %v3256_v6 }
 0x893   : > { %v4428_v25 = vpop.eup %4427  ;;  %v3044_v24 = vadd.f32 1e-05, %v3028_v57 }
 0x894   : > { %v3096_v63 = vmul.f32 %v4428_v25, %v3043_v11  ;;  %vm3102_vm2 = vweird.f32 %v4428_v25 }
 0x895   : > { %4429 = vrsqrt.f32 %v3044_v24  ;;  %vm3103_vm5 = vmor %vm3101_vm4, %vm3102_vm2  ;;  %vm3111_vm7 = vweird.f32 %v3044_v24 }
 0x896   : > { %v3097_v1 = vmul.f32 %v4428_v25, %v3096_v63 }
 0x898   : > { %v3098_v40 = vmul.f32 0.5, %v3097_v1 }
 0x89a   : > { %v3099_v44 = vsub.f32 1.5, %v3098_v40 }
 0x89b   : > { %v4430_v0 = vpop.eup %4429 }
 0x89c   : > { %v3100_v42 = vmul.f32 %v4428_v25, %v3099_v44  ;;  %v3106_v36 = vmul.f32 %v4430_v0, %v3044_v24  ;;  %vm3112_vm6 = vweird.f32 %v4430_v0 }
 0x89d   : > { %vm3113_vm8 = vmor %vm3111_vm7, %vm3112_vm6 }
 0x89e   : > { %v3104_v48 = vsel %vm3103_vm5, %v4428_v25, %v3100_v42  ;;  %v3107_v34 = vmul.f32 %v4430_v0, %v3106_v36 }
 0x89f   : > { %v2911_v4 = vpop.xlane.xlu2 %2910  ;;  %v3219_v56 = vmul.f32 %v3104_v48, %v5742_v8 }
 0x8a0   : > { %v3108_v17 = vmul.f32 0.5, %v3107_v34  ;;  %v2937_v23 = vmul.f32 %v2911_v4, %v5265_v21 }
 0x8a1   : > { %v3238_v15 = vmul.f32 %v5800_v41, %v3219_v56 }
 0x8a2   : > { %v3109_v37 = vsub.f32 1.5, %v3108_v17  ;;  %v5855_v19 = vsub.f32 %v5757_v35, %v2937_v23 }
 0x8a3   : > { %v3257_v51 = vadd.f32 %v5805_v55, %v3238_v15 }
 0x8a4   : > { %v3110_v31 = vmul.f32 %v4430_v0, %v3109_v37  ;;  %v2969_v52 = vmul.f32 %v5855_v19, %v5855_v19 }
 0x8a5   : > { %4140 = vmatmul.msk.f32.gmra.mxu2 %vm1303_vm1, %v3257_v51 }
 0x8a6   : > { %v3114_v8 = vsel %vm3113_vm8, %v4430_v0, %v3110_v31  ;;  %v3005_v26 = vsel %vm1303_vm1, %v2969_v52, 0.0 }
 0x8a7   : > { %3006 = vadd.xlane.f32.xlu1 %v3005_v26  ;;  %v3220_v50 = vmul.f32 %v3114_v8, %v5749_v18  ;;  %v2995_v60 = vpop.xlane.xlu2 %2994 }
 0x8a8   : > { %v2914_v16 = vpop.xlane.xlu1 %2913  ;;  %v3029_v5 = vmul.f32 %v2995_v60, %v5265_v21 }
 0x8a9   : > { %v2938_v35 = vmul.f32 %v2914_v16, %v5265_v21  ;;  %v3239_v12 = vmul.f32 %v5800_v41, %v3220_v50 }
 0x8aa   : > { %v3045_v9 = vadd.f32 1e-05, %v3029_v5 }
 0x8ab   : > { %v5868_v62 = vsub.f32 %v5768_v10, %v2938_v35  ;;  %v3258_v43 = vadd.f32 %v5805_v55, %v3239_v12 }
 0x8ac   : > { %v3743_v7 = vpop.f32.mrf.mxu0  ;;  %4431 = vrsqrt.f32 %v3045_v9  ;;  %vm3121_vm13 = vweird.f32 %v3045_v9 }
 0x8ad   : > { %v2970_v59 = vmul.f32 %v5868_v62, %v5868_v62  ;;  %v3744_v18 = vadd.f32 %v4304_v2, %v3743_v7  ;;  %4141 = vmatmul.msk.f32.gmra.mxu2 %vm1303_vm1, %v3258_v43 }
 0x8af   : > { %v3008_v30 = vsel %vm1303_vm1, %v2970_v59, 0.0  ;;  %v5876_v14 = vadd.f32 %v3744_v18, %v5668_v47 }
 0x8b0   : > { %v2917_v49 = vpop.xlane.xlu0 %2916  ;;  %3009 = vadd.xlane.f32.xlu2 %v3008_v30 }
 0x8b1   : > { %v2939_v10 = vmul.f32 %v2917_v49, %v5265_v21  ;;  %v3751_v13 = vsel %vm1303_vm1, %v5876_v14, 0.0 }
 0x8b2   : > { %3752 = vadd.xlane.f32.xlu1 %v3751_v13  ;;  %v4432_v29 = vpop.eup %4431 }
 0x8b3   : > { %v5882_v22 = vsub.f32 %v5777_v53, %v2939_v10  ;;  %v3116_v32 = vmul.f32 %v4432_v29, %v3045_v9  ;;  %vm3122_vm10 = vweird.f32 %v4432_v29 }
 0x8b4   : > { %vm3123_vm14 = vmor %vm3121_vm13, %vm3122_vm10 }
 0x8b5   : > { %v2971_v38 = vmul.f32 %v5882_v22, %v5882_v22  ;;  %v3117_v11 = vmul.f32 %v4432_v29, %v3116_v32 }
 0x8b7   : > { %v3011_v46 = vsel %vm1303_vm1, %v2971_v38, 0.0  ;;  %v3118_v20 = vmul.f32 0.5, %v3117_v11 }
 0x8b8   : > { %3012 = vadd.xlane.f32.xlu0 %v3011_v46  ;;  %v2920_v47 = vpop.xlane.xlu2 %2919 }
 0x8b9   : > { %v2940_v6 = vmul.f32 %v2920_v47, %v5265_v21  ;;  %v3119_v27 = vsub.f32 1.5, %v3118_v20 }
 0x8bb   : > { %v5889_v57 = vsub.f32 %v5784_v39, %v2940_v6  ;;  %v3120_v25 = vmul.f32 %v4432_v29, %v3119_v27 }
 0x8bc   : > { %v3746_v53 = vpop.f32.mrf.mxu0 }
 0x8bd   : > { %v3747_v24 = vadd.f32 %v4304_v2, %v3746_v53  ;;  %v2972_v63 = vmul.f32 %v5889_v57, %v5889_v57  ;;  %v3124_v1 = vsel %vm3123_vm14, %v4432_v29, %v3120_v25 }
 0x8be   : > { %v3221_v0 = vmul.f32 %v3124_v1, %v5765_v58 }
 0x8bf   : > { %v3014_v40 = vsel %vm1303_vm1, %v2972_v63, 0.0  ;;  %v5895_v44 = vadd.f32 %v3747_v24, %v5683_v3 }
 0x8c0   : > { %3015 = vadd.xlane.f32.xlu2 %v3014_v40  ;;  %v3240_v42 = vmul.f32 %v5800_v41, %v3221_v0 }
 0x8c1   : > { %v3754_v39 = vsel %vm3628_vm3, %v5895_v44, 0.0 }
 0x8c2   : > { %3755 = vadd.xlane.f32.xlu0 %v3754_v39  ;;  %v3259_v36 = vadd.f32 %v5805_v55, %v3240_v42 }
 0x8c4   : > { %4142 = vmatmul.msk.f32.gmra.mxu2 %vm1303_vm1, %v3259_v36 }
 0x8e7   : > { %v2998_v48 = vpop.xlane.xlu1 %2997 }
 0x8e8   : > { %v3030_v34 = vmul.f32 %v2998_v48, %v5265_v21 }
 0x8ea   : > { %v3046_v4 = vadd.f32 1e-05, %v3030_v34 }
 0x8ec   : > { %4433 = vrsqrt.f32 %v3046_v4  ;;  %vm3131_vm11 = vweird.f32 %v3046_v4 }
 0x8ef   : > { %v3001_v3 = vpop.xlane.xlu0 %3000  ;;  %v2923_v56 = vpop.xlane.xlu1 %2922 }
 0x8f0   : > { %v3031_v17 = vmul.f32 %v3001_v3, %v5265_v21  ;;  %v2941_v58 = vmul.f32 %v2923_v56, %v5265_v21 }
 0x8f2   : > { %v4434_v23 = vpop.eup %4433  ;;  %v3047_v15 = vadd.f32 1e-05, %v3031_v17  ;;  %v5907_v37 = vsub.f32 %v5819_v61, %v2941_v58 }
 0x8f3   : > { %v3126_v51 = vmul.f32 %v4434_v23, %v3046_v4  ;;  %vm3132_vm15 = vweird.f32 %v4434_v23 }
 0x8f4   : > { %4435 = vrsqrt.f32 %v3047_v15  ;;  %v2973_v31 = vmul.f32 %v5907_v37, %v5907_v37  ;;  %vm3133_vm2 = vmor %vm3131_vm11, %vm3132_vm15  ;;  %vm3141_vm5 = vweird.f32 %v3047_v15 }
 0x8f5   : > { %v3127_v52 = vmul.f32 %v4434_v23, %v3126_v51 }
 0x8f6   : > { %v3017_v8 = vsel %vm1303_vm1, %v2973_v31, 0.0 }
 0x8f7   : > { %v3128_v26 = vmul.f32 0.5, %v3127_v52  ;;  %v2926_v16 = vpop.xlane.xlu0 %2925  ;;  %3018 = vadd.xlane.f32.xlu1 %v3017_v8  ;;  %v3004_v50 = vpop.xlane.xlu2 %3003 }
 0x8f8   : > { %v2942_v35 = vmul.f32 %v2926_v16, %v5265_v21  ;;  %v3032_v60 = vmul.f32 %v3004_v50, %v5265_v21 }
 0x8f9   : > { %v3129_v5 = vsub.f32 1.5, %v3128_v26 }
 0x8fa   : > { %v4436_v61 = vpop.eup %4435  ;;  %v5915_v2 = vsub.f32 %v5834_v45, %v2942_v35  ;;  %v3048_v12 = vadd.f32 1e-05, %v3032_v60 }
 0x8fb   : > { %v3130_v9 = vmul.f32 %v4434_v23, %v3129_v5  ;;  %v3136_v43 = vmul.f32 %v4436_v61, %v3047_v15  ;;  %vm3142_vm4 = vweird.f32 %v4436_v61 }
 0x8fc   : > { %4437 = vrsqrt.f32 %v3048_v12  ;;  %v2974_v7 = vmul.f32 %v5915_v2, %v5915_v2  ;;  %vm3143_vm6 = vmor %vm3141_vm5, %vm3142_vm4  ;;  %vm3151_vm8 = vweird.f32 %v3048_v12 }
 0x8fd   : > { %v3134_v59 = vsel %vm3133_vm2, %v4434_v23, %v3130_v9  ;;  %v3137_v18 = vmul.f32 %v4436_v61, %v3136_v43 }
 0x8fe   : > { %v3020_v30 = vsel %vm1303_vm1, %v2974_v7, 0.0  ;;  %v3222_v49 = vmul.f32 %v3134_v59, %v5795_v28 }
 0x8ff   : > { %v3138_v10 = vmul.f32 0.5, %v3137_v18  ;;  %3021 = vadd.xlane.f32.xlu2 %v3020_v30 }
 0x900   : > { %v3241_v45 = vmul.f32 %v5800_v41, %v3222_v49 }
 0x901   : > { %v3139_v13 = vsub.f32 1.5, %v3138_v10 }
 0x902   : > { %v4438_v29 = vpop.eup %4437  ;;  %v3260_v32 = vadd.f32 %v5805_v55, %v3241_v45 }
 0x903   : > { %v3140_v38 = vmul.f32 %v4436_v61, %v3139_v13  ;;  %v3146_v11 = vmul.f32 %v4438_v29, %v3048_v12  ;;  %vm3152_vm7 = vweird.f32 %v4438_v29 }
 0x904   : > { %4143 = vmatmul.msk.f32.gmra.mxu2 %vm1303_vm1, %v3260_v32  ;;  %vm3153_vm10 = vmor %vm3151_vm8, %vm3152_vm7 }
 0x905   : > { %v3144_v46 = vsel %vm3143_vm6, %v4436_v61, %v3140_v38  ;;  %v3147_v47 = vmul.f32 %v4438_v29, %v3146_v11 }
 0x906   : > { %v3223_v20 = vmul.f32 %v3144_v46, %v5811_v54 }
 0x907   : > { %v3148_v28 = vmul.f32 0.5, %v3147_v47 }
 0x908   : > { %v3242_v6 = vmul.f32 %v5800_v41, %v3223_v20 }
 0x909   : > { %v3149_v27 = vsub.f32 1.5, %v3148_v28 }
 0x90a   : > { %v3261_v53 = vadd.f32 %v5805_v55, %v3242_v6 }
 0x90b   : > { %v3150_v25 = vmul.f32 %v4438_v29, %v3149_v27 }
 0x90c   : > { %4144 = vmatmul.msk.f32.gmra.mxu2 %vm1303_vm1, %v3261_v53 }
 0x90d   : > { %v3154_v24 = vsel %vm3153_vm10, %v4438_v29, %v3150_v25 }
 0x90e   : > { %v3224_v63 = vmul.f32 %v3154_v24, %v5828_v33 }
 0x910   : > { %v3243_v1 = vmul.f32 %v5800_v41, %v3224_v63 }
 0x912   : > { %v3262_v40 = vadd.f32 %v5805_v55, %v3243_v1 }
 0x914   : > { %4145 = vmatmul.msk.f32.gmra.mxu2 %vm1303_vm1, %v3262_v40 }
 0x91a   : > { %v3007_v54 = vpop.xlane.xlu1 %3006 }
 0x91b   : > { %v3033_v0 = vmul.f32 %v3007_v54, %v5265_v21 }
 0x91d   : > { %v3049_v39 = vadd.f32 1e-05, %v3033_v0 }
 0x91f   : > { %4439 = vrsqrt.f32 %v3049_v39  ;;  %vm3161_vm14 = vweird.f32 %v3049_v39 }
 0x923   : > { %v3010_v42 = vpop.xlane.xlu2 %3009 }
 0x924   : > { %v3034_v36 = vmul.f32 %v3010_v42, %v5265_v21 }
 0x925   : > { %v4440_v48 = vpop.eup %4439  ;;  %v3753_v4 = vpop.xlane.xlu1 %3752 }
 0x926   : > { %v3050_v34 = vadd.f32 1e-05, %v3034_v36  ;;  %v3156_v3 = vmul.f32 %v4440_v48, %v3049_v39  ;;  %v3757_v33 = vmul.f32 %v3753_v4, %v5265_v21  ;;  %vm3162_vm13 = vweird.f32 %v4440_v48 }
 0x927   : > { %vm3163_vm15 = vmor %vm3161_vm14, %vm3162_vm13 }
 0x928   : > { %4441 = vrsqrt.f32 %v3050_v34  ;;  %v3157_v56 = vmul.f32 %v4440_v48, %v3156_v3  ;;  %v5936_v17 = vsub.f32 %v5876_v14, %v3757_v33  ;;  %vm3171_vm2 = vweird.f32 %v3050_v34 }
 0x92a   : > { %v3158_v58 = vmul.f32 0.5, %v3157_v56  ;;  %v3761_v15 = vmul.f32 %v5936_v17, %v5936_v17 }
 0x92b   : > { %v3013_v23 = vpop.xlane.xlu0 %3012 }
 0x92c   : > { %v3035_v51 = vmul.f32 %v3013_v23, %v5265_v21  ;;  %v3159_v31 = vsub.f32 1.5, %v3158_v58  ;;  %v3763_v52 = vsel %vm1303_vm1, %v3761_v15, 0.0 }
 0x92d   : > { %3764 = vadd.xlane.f32.xlu0 %v3763_v52 }
 0x92e   : > { %v4442_v8 = vpop.eup %4441  ;;  %v3051_v26 = vadd.f32 1e-05, %v3035_v51  ;;  %v3160_v16 = vmul.f32 %v4440_v48, %v3159_v31 }
 0x92f   : > { %v3166_v50 = vmul.f32 %v4442_v8, %v3050_v34  ;;  %vm3172_vm11 = vweird.f32 %v4442_v8 }
 0x930   : > { %4443 = vrsqrt.f32 %v3051_v26  ;;  %v3164_v14 = vsel %vm3163_vm15, %v4440_v48, %v3160_v16  ;;  %vm3173_vm4 = vmor %vm3171_vm2, %vm3172_vm11  ;;  %vm3181_vm6 = vweird.f32 %v3051_v26 }
 0x931   : > { %v3167_v35 = vmul.f32 %v4442_v8, %v3166_v50  ;;  %v3225_v60 = vmul.f32 %v3164_v14, %v5855_v19 }
 0x933   : > { %v3168_v5 = vmul.f32 0.5, %v3167_v35  ;;  %v3016_v61 = vpop.xlane.xlu2 %3015  ;;  %v3244_v9 = vmul.f32 %v5800_v41, %v3225_v60 }
 0x934   : > { %v3036_v12 = vmul.f32 %v3016_v61, %v5265_v21 }
 0x935   : > { %v3169_v43 = vsub.f32 1.5, %v3168_v5  ;;  %v3756_v7 = vpop.xlane.xlu0 %3755  ;;  %v3263_v49 = vadd.f32 %v5805_v55, %v3244_v9 }
 0x936   : > { %v4444_v59 = vpop.eup %4443  ;;  %v3052_v18 = vadd.f32 1e-05, %v3036_v12  ;;  %v3758_v30 = vmul.f32 %v3756_v7, %v5265_v21  ;;  %v5974_v12 = vpop.f32.mrf.mxu2 }
 0x937   : > { %v3170_v10 = vmul.f32 %v4442_v8, %v3169_v43  ;;  %v3176_v45 = vmul.f32 %v4444_v59, %v3051_v26  ;;  %4146 = vmatmul.msk.f32.gmra.mxu2 %vm1303_vm1, %v3263_v49  ;;  %vm3182_vm5 = vweird.f32 %v4444_v59 }
 0x938   : > { %4445 = vrsqrt.f32 %v3052_v18  ;;  %v5948_v19 = vsub.f32 %v5895_v44, %v3758_v30  ;;  %vm3183_vm7 = vmor %vm3181_vm6, %vm3182_vm5  ;;  %vm3191_vm8 = vweird.f32 %v3052_v18 }
 0x939   : > { %v3174_v13 = vsel %vm3173_vm4, %v4442_v8, %v3170_v10  ;;  %v3177_v29 = vmul.f32 %v4444_v59, %v3176_v45 }
 0x93a   : > { %v3226_v32 = vmul.f32 %v3174_v13, %v5868_v62  ;;  %v3762_v38 = vmul.f32 %v5948_v19, %v5948_v19 }
 0x93b   : > { %v3178_v11 = vmul.f32 0.5, %v3177_v29 }
 0x93c   : > { %v3766_v46 = vsel %vm3628_vm3, %v3762_v38, 0.0  ;;  %v3245_v47 = vmul.f32 %v5800_v41, %v3226_v32 }
 0x93d   : > { %v3179_v20 = vsub.f32 1.5, %v3178_v11  ;;  %3767 = vadd.xlane.f32.xlu1 %v3766_v46 }
 0x93e   : > { %v4446_v28 = vpop.eup %4445  ;;  %v3264_v44 = vadd.f32 %v5805_v55, %v3245_v47 }
 0x93f   : > { %v3180_v6 = vmul.f32 %v4444_v59, %v3179_v20  ;;  %v3186_v27 = vmul.f32 %v4446_v28, %v3052_v18  ;;  %vm3192_vm3 = vweird.f32 %v4446_v28  ;;  %v4306_v20 = vld [vmem:[%s6056_s2] ss:$0 sm:$0xff] }
 0x940   : > { %4147 = vmatmul.msk.f32.gmra.mxu2 %vm1303_vm1, %v3264_v44  ;;  %vm3193_vm10 = vmor %vm3191_vm8, %vm3192_vm3  ;;  %v4307_v44 = vld [vmem:[%s6057_s0] ss:$0 sm:$0xff] }
 0x941   : > { %v3184_v62 = vsel %vm3183_vm7, %v4444_v59, %v3180_v6  ;;  %v3187_v53 = vmul.f32 %v4446_v28, %v3186_v27  ;;  %v5980_v59 = vpop.f32.mrf.mxu2 }
 0x942   : > { %v3227_v25 = vmul.f32 %v3184_v62, %v5882_v22  ;;  %v3405_v22 = vld [vmem:[%s6055_s1] sm:$0xf] }
 0x943   : > { %v3188_v24 = vmul.f32 0.5, %v3187_v53  ;;  %4170 = vmatpush.msk.msra.mxu3 %vm1352_vm0, %v3405_v22 }
 0x944   : > { %v3246_v63 = vmul.f32 %v5800_v41, %v3227_v25 }
 0x945   : > { %v3189_v1 = vsub.f32 1.5, %v3188_v24 }
 0x946   : > { %v3265_v40 = vadd.f32 %v5805_v55, %v3246_v63 }
 0x947   : > { %v3190_v54 = vmul.f32 %v4446_v28, %v3189_v1 }
 0x948   : > { %4148 = vmatmul.msk.f32.gmra.mxu2 %vm1303_vm1, %v3265_v40 }
 0x949   : > { %v3194_v0 = vsel %vm3193_vm10, %v4446_v28, %v3190_v54  ;;  %v5982_v18 = vpop.f32.mrf.mxu2 }
 0x94a   : > { %v3228_v39 = vmul.f32 %v3194_v0, %v5889_v57 }
 0x94c   : > { %v3247_v42 = vmul.f32 %v5800_v41, %v3228_v39 }
 0x94e   : > { %v3266_v36 = vadd.f32 %v5805_v55, %v3247_v42 }
 0x950   : > { %4149 = vmatmul.msk.f32.gmra.mxu2 %vm1303_vm1, %v3266_v36 }
 0x951   : > { %v5985_v45 = vpop.f32.mrf.mxu2 }
 0x96a   : > { %v3019_v48 = vpop.xlane.xlu1 %3018 }
 0x96b   : > { %v3037_v34 = vmul.f32 %v3019_v48, %v5265_v21 }
 0x96d   : > { %v3053_v4 = vadd.f32 1e-05, %v3037_v34 }
 0x96f   : > { %4447 = vrsqrt.f32 %v3053_v4  ;;  %vm3201_vm14 = vweird.f32 %v3053_v4 }
 0x972   : > { %v3022_v3 = vpop.xlane.xlu2 %3021 }
 0x973   : > { %v3038_v33 = vmul.f32 %v3022_v3, %v5265_v21 }
 0x975   : > { %v4448_v56 = vpop.eup %4447  ;;  %v3054_v58 = vadd.f32 1e-05, %v3038_v33 }
 0x976   : > { %v3196_v57 = vmul.f32 %v4448_v56, %v3053_v4  ;;  %vm3202_vm13 = vweird.f32 %v4448_v56 }
 0x977   : > { %4449 = vrsqrt.f32 %v3054_v58  ;;  %vm3203_vm0 = vmor %vm3201_vm14, %vm3202_vm13  ;;  %vm3211_vm11 = vweird.f32 %v3054_v58 }
 0x978   : > { %v3197_v23 = vmul.f32 %v4448_v56, %v3196_v57 }
 0x97a   : > { %v3198_v15 = vmul.f32 0.5, %v3197_v23 }
 0x97c   : > { %v3199_v51 = vsub.f32 1.5, %v3198_v15 }
 0x97d   : > { %v4450_v31 = vpop.eup %4449 }
 0x97e   : > { %v3200_v52 = vmul.f32 %v4448_v56, %v3199_v51  ;;  %v3206_v8 = vmul.f32 %v4450_v31, %v3054_v58  ;;  %vm3212_vm15 = vweird.f32 %v4450_v31  ;;  %v4305_v58 = vld [vmem:[#allocation2] ss:$0 sm:$0xff] }
 0x97f   : > { %vm3213_vm2 = vmor %vm3211_vm11, %vm3212_vm15 }
 0x980   : > { %v3204_v26 = vsel %vm3203_vm0, %v4448_v56, %v3200_v52  ;;  %v3207_v16 = vmul.f32 %v4450_v31, %v3206_v8 }
 0x981   : > { %v3229_v50 = vmul.f32 %v3204_v26, %v5907_v37 }
 0x982   : > { %v3208_v14 = vmul.f32 0.5, %v3207_v16 }
 0x983   : > { %v3248_v35 = vmul.f32 %v5800_v41, %v3229_v50 }
 0x984   : > { %v3209_v60 = vsub.f32 1.5, %v3208_v14 }
 0x985   : > { %v3267_v5 = vadd.f32 %v5805_v55, %v3248_v35 }
 0x986   : > { %v3210_v61 = vmul.f32 %v4450_v31, %v3209_v60  ;;  %v3350_v60 = vadd.f32 %v4305_v58, %v5985_v45  ;;  %v3841_v45 = vld [vmem:[%s4684_s16] sm:$0x7] }
 0x987   : > { %4150 = vmatmul.msk.f32.gmra.mxu2 %vm1303_vm1, %v3267_v5  ;;  %v3347_v5 = vadd.f32 %v4305_v58, %v5982_v18 }
 0x988   : > { %v3214_v9 = vsel %vm3213_vm2, %v4450_v31, %v3210_v61  ;;  %v3344_v61 = vadd.f32 %v4305_v58, %v5980_v59 }
 0x989   : > { %v3230_v43 = vmul.f32 %v3214_v9, %v5915_v2  ;;  %v3341_v9 = vadd.f32 %v4305_v58, %v5974_v12 }
 0x98b   : > { %v3249_v7 = vmul.f32 %v5800_v41, %v3230_v43  ;;  %v5987_v41 = vpop.f32.mrf.mxu2  ;;  %v3840_v43 = vld [vmem:[%s6058_s10] sm:$0x7] }
 0x98c   : > { %v3353_v35 = vadd.f32 %v4305_v58, %v5987_v41 }
 0x98d   : > { %v3268_v37 = vadd.f32 %v5805_v55, %v3249_v7 }
 0x98f   : > { %4151 = vmatmul.msk.f32.gmra.mxu2 %vm1303_vm1, %v3268_v37  ;;  %v4308_v37 = vld [vmem:[#allocation3] ss:$0 sm:$0xff] }
 0x993   : > { %v3355_v27 = vpop.f32.mrf.mxu2 }
 0x994   : > { %v3356_v14 = vadd.f32 %v4305_v58, %v3355_v27 }
 0x99b   : > { %v3358_v1 = vpop.f32.mrf.mxu2 }
 0x99c   : > { %v3359_v50 = vadd.f32 %v4305_v58, %v3358_v1 }
 0x9a0   : > { %v3765_v30 = vpop.xlane.xlu0 %3764 }
 0x9a1   : > { %v3769_v49 = vmul.f32 %v3765_v30, %v5265_v21 }
 0x9a3   : > { %v3771_v10 = vadd.f32 1e-05, %v3769_v49  ;;  %v3361_v42 = vpop.f32.mrf.mxu2 }
 0x9a4   : > { %v3362_v16 = vadd.f32 %v4305_v58, %v3361_v42 }
 0x9a5   : > { %4451 = vrsqrt.f32 %v3771_v10  ;;  %vm3779_vm5 = vweird.f32 %v3771_v10 }
 0x9ab   : > { %v4452_v13 = vpop.eup %4451  ;;  %v3364_v22 = vpop.f32.mrf.mxu2 }
 0x9ac   : > { %v3774_v2 = vmul.f32 %v4452_v13, %v3771_v10  ;;  %vm3780_vm4 = vweird.f32 %v4452_v13  ;;  %v3365_v26 = vadd.f32 %v4305_v58, %v3364_v22 }
 0x9ad   : > { %vm3781_vm6 = vmor %vm3779_vm5, %vm3780_vm4 }
 0x9ae   : > { %v3775_v55 = vmul.f32 %v4452_v13, %v3774_v2 }
 0x9b0   : > { %v3768_v29 = vpop.xlane.xlu1 %3767  ;;  %v3776_v32 = vmul.f32 0.5, %v3775_v55 }
 0x9b1   : > { %v3770_v38 = vmul.f32 %v3768_v29, %v5265_v21 }
 0x9b2   : > { %v3777_v11 = vsub.f32 1.5, %v3776_v32 }
 0x9b3   : > { %v3772_v46 = vadd.f32 1e-05, %v3770_v38  ;;  %v3367_v48 = vpop.f32.mrf.mxu2 }
 0x9b4   : > { %v3778_v47 = vmul.f32 %v4452_v13, %v3777_v11  ;;  %v3368_v8 = vadd.f32 %v4305_v58, %v3367_v48 }
 0x9b5   : > { %4453 = vrsqrt.f32 %v3772_v46  ;;  %vm3789_vm3 = vweird.f32 %v3772_v46 }
 0x9b6   : > { %v3782_v28 = vsel %vm3781_vm6, %v4452_v13, %v3778_v47  ;;  %v3888_v13 = vld [vmem:[%s4689_s22] sm:$0x7] }
 0x9b7   : > { %v3793_v6 = vmul.f32 %v3782_v28, %v5936_v17 }
 0x9b9   : > { %v3798_v62 = vmul.f32 %v4306_v20, %v3793_v6 }
 0x9bb   : > { %v4454_v53 = vpop.eup %4453  ;;  %v3803_v25 = vadd.f32 %v4307_v44, %v3798_v62  ;;  %v3370_v34 = vpop.f32.mrf.mxu2 }
 0x9bc   : > { %v3784_v24 = vmul.f32 %v4454_v53, %v3772_v46  ;;  %vm3790_vm7 = vweird.f32 %v4454_v53  ;;  %v3371_v52 = vadd.f32 %v4305_v58, %v3370_v34 }
 0x9bd   : > { %4171 = vmatmul.msk.f32.vlgmr.msra.gmra.mxu3 %vm1303_vm1, %v3803_v25  ;;  %vm3791_vm8 = vmor %vm3789_vm3, %vm3790_vm7 }
 0x9be   : > { %v3785_v63 = vmul.f32 %v4454_v53, %v3784_v24 }
 0x9c0   : > { %v3786_v21 = vmul.f32 0.5, %v3785_v63 }
 0x9c2   : > { %v3787_v40 = vsub.f32 1.5, %v3786_v21 }
 0x9c3   : > { %v3373_v4 = vpop.f32.mrf.mxu2 }
 0x9c4   : > { %v3788_v54 = vmul.f32 %v4454_v53, %v3787_v40  ;;  %v3374_v31 = vadd.f32 %v4305_v58, %v3373_v4 }
 0x9c6   : > { %v3792_v0 = vsel %vm3791_vm8, %v4454_v53, %v3788_v54 }
 0x9c7   : > { %v3794_v39 = vmul.f32 %v3792_v0, %v5948_v19 }
 0x9c9   : > { %v3799_v17 = vmul.f32 %v4306_v20, %v3794_v39 }
 0x9cb   : > { %v3804_v36 = vadd.f32 %v4307_v44, %v3799_v17  ;;  %v3376_v3 = vpop.f32.mrf.mxu2 }
 0x9cc   : > { %v3377_v19 = vadd.f32 %v4305_v58, %v3376_v3 }
 0x9cd   : > { %4172 = vmatmul.msk.f32.gmra.mxu3 %vm1303_vm1, %v3804_v36  ;;  %vm3890_vm1 = vcmask 2048  }
 0x9d3   : > { %v3379_v33 = vpop.f32.mrf.mxu2 }
 0x9d4   : > { %v3380_v51 = vadd.f32 %v4305_v58, %v3379_v33 }
 0xa0a   : > { %v3382_v56 = vpop.f32.mrf.mxu2 }
 0xa0b   : > { %v3383_v15 = vadd.f32 %v4305_v58, %v3382_v56 }
 0xa12   : > { %v3385_v57 = vpop.f32.mrf.mxu2 }
 0xa13   : > { %v3386_v23 = vadd.f32 %v4305_v58, %v3385_v57 }
 0xa15   : > { %3868 = vmatpush.msra.mxu2 %v3386_v23 }
 0xa17   : > { %3869 = vmatpush.msra.mxu2 %v3383_v15 }
 0xa19   : > { %3870 = vmatpush.msra.mxu2 %v3380_v51 }
 0xa1b   : > { %3871 = vmatpush.msra.mxu2 %v3377_v19 }
 0xa1d   : > { %3872 = vmatpush.msra.mxu2 %v3374_v31 }
 0xa1f   : > { %3873 = vmatpush.msra.mxu2 %v3371_v52 }
 0xa21   : > { %3874 = vmatpush.msra.mxu2 %v3368_v8 }
 0xa23   : > { %3875 = vmatpush.msra.mxu2 %v3365_v26 }
 0xa25   : > { %3876 = vmatpush.msra.mxu2 %v3362_v16 }
 0xa27   : > { %3877 = vmatpush.msra.mxu2 %v3359_v50 }
 0xa29   : > { %3878 = vmatpush.msra.mxu2 %v3356_v14 }
 0xa2b   : > { %3879 = vmatpush.msra.mxu2 %v3353_v35 }
 0xa2d   : > { %3880 = vmatpush.msra.mxu2 %v3350_v60 }
 0xa2f   : > { %3881 = vmatpush.msra.mxu2 %v3347_v5 }
 0xa31   : > { %3882 = vmatpush.msra.mxu2 %v3344_v61 }
 0xa33   : > { %3883 = vmatpush.msra.mxu2 %v3341_v9 }
 0xa34   : > { %3884 = vmatmul.f32.vlgmr.msra.gmra.mxu2 %v3840_v43 }
 0xa40   : > { %v3834_v7 = vpop.f32.mrf.mxu3 }
 0xa41   : > { %v3835_v10 = vadd.f32 %v4308_v37, %v3834_v7 }
 0xa50   : > { %v3837_v30 = vpop.f32.mrf.mxu3 }
 0xa51   : > { %v3838_v49 = vadd.f32 %v4308_v37, %v3837_v30 }
 0xa53   : > { %4173 = vmatpush.msk.msra.mxu1 %vm3562_vm9, %v3838_v49 }
 0xa55   : > { %3863 = vmatpush.msra.mxu1 %v3835_v10 }
 0xa56   : > { %4174 = vmatmul.msk.f32.vlgmr.msra.gmra.mxu1 %vm3501_vm12, %v3841_v45 }
 0xab7   : > { %v3885_v59 = vpop.f32.mrf.mxu2 }
 0xad3   : > { %v3865_v18 = vpop.f32.mrf.mxu1 }
 0xad4   : > { %v3886_v12 = vadd.f32 %v3885_v59, %v3865_v18 }
 0xad6   : > { %v3889_v2 = vadd.f32 %v3888_v13, %v3886_v12 }
 0xad8   : > { %v3891_v41 = vsel %vm3890_vm1, %v3889_v2, -inf }
 0xad9   : > { %v3892_v55 = vrot.slane %v3891_v41, 4 }
 0xadb   : > { %v3893_v29 = vmax.f32 %v3891_v41, %v3892_v55 }
 0xadd   : > { %v3894_v32 = vrot.slane %v3893_v29, 2 }
 0xadf   : > { %v3895_v38 = vmax.f32 %v3893_v29, %v3894_v32 }
 0xae1   : > { %v3896_v11 = vrot.slane %v3895_v38, 1 }
 0xae3   : > { %v3897_v46 = vmax.f32 %v3895_v38, %v3896_v11 }
 0xae5   : > { %v3898_v47 = vsub.f32 %v3889_v2, %v3897_v46 }
 0xae7   : > { %v3899_v20 = vmul.f32 1.442695, %v3898_v47 }
 0xae9   : > { %4455 = vpow2.f32 %v3899_v20 }
 0xaef   : > { %v4456_v28 = vpop.eup %4455 }
 0xaf0   : > { %v3901_v44 = vsel %vm3890_vm1, %v4456_v28, 0.0 }
 0xaf1   : > { %v3902_v6 = vrot.slane %v3901_v44, 4 }
 0xaf3   : > { %v3903_v27 = vadd.f32 %v3902_v6, %v3901_v44 }
 0xaf5   : > { %v3904_v62 = vrot.slane %v3903_v27, 2 }
 0xaf7   : > { %v3905_v53 = vadd.f32 %v3904_v62, %v3903_v27 }
 0xaf9   : > { %v3906_v25 = vrot.slane %v3905_v53, 1 }
 0xafb   : > { %v3907_v24 = vadd.f32 %v3906_v25, %v3905_v53 }
 0xafd   : > { %4457 = vrcp.f32 %v3907_v24  ;;  %v3919_v40 = vand.u32 2147483648, %v3907_v24  ;;  %v3917_v0 = vand.u32 2147483647, %v3907_v24  ;;  %vm3913_vm9 = vweird.f32 %v3907_v24 }
 0xaff   : > { %v3920_v42 = vor.u32 1.1754944e-38, %v3919_v40  ;;  %vm3918_vm13 = vcmp.eq.f32.partialorder %v3917_v0, 8.507059e+37 }
 0xb03   : > { %v4458_v63 = vpop.eup %4457 }
 0xb04   : > { %v3909_v21 = vmul.f32 %v4458_v63, %v3907_v24  ;;  %vm3914_vm12 = vweird.f32 %v4458_v63 }
 0xb05   : > { %vm3915_vm10 = vmor %vm3913_vm9, %vm3914_vm12 }
 0xb06   : > { %v3910_v1 = vsub.f32 1.0, %v3909_v21 }
 0xb08   : > { %v3911_v54 = vmul.f32 %v4458_v63, %v3910_v1 }
 0xb0a   : > { %v3912_v39 = vadd.f32 %v4458_v63, %v3911_v54 }
 0xb0c   : > { %v3916_v17 = vsel %vm3915_vm10, %v4458_v63, %v3912_v39 }
 0xb0d   : > { %v3921_v36 = vsel %vm3918_vm13, %v3920_v42, %v3916_v17 }
 0xb0e   : > { %v3922_v22 = vmul.f32 %v4456_v28, %v3921_v36 }
 0xb10   : > { %3923 = vst.msk [vmem:[%s1148_s15] sm:$0x7] %vm3890_vm1, %v3922_v22 }
 0xb11 PF: > { %s89_s8 = sadd.s32 1, %s4465_s8  }
 0xb12   : > { %p86_p4 = scmp.ge.s32.totalorder %s89_s8, 4  }
 0xb14   :  { %88 = sbr.rel (!%p86_p4) target bundleno = 70 (0x46), region = 238 }

</bundles_post_ra>
